<compile_context>
chip_gen: v6e
topology: v6e:2x2x1
jax: 0.10.0
libtpu: 0.0.40
codegen_flags: <defaults>
</compile_context>

<pallas_src>
import functools

import jax
import jax.numpy as jnp
from jax import lax
from jax.experimental import pallas as pl
from jax.experimental.pallas import tpu as pltpu

RH0 = 8    # conv0 row halo (>= 2, multiple of 8 so interior stores stay aligned)
PH = 32    # strip-conv row halo (>= 30, multiple of 8)


def _attn_kernel(H, W, C,
                 x_ref,
                 w0_ref, b0_ref,
                 w01_ref, b01_ref, w02_ref, b02_ref,
                 w11_ref, b11_ref, w12_ref, b12_ref,
                 w21_ref, b21_ref, w22_ref, b22_ref,
                 w3_ref, b3_ref,
                 o_ref,
                 x0buf, hbuf):
    WC = W * C

    # ---- stage x into a row-haloed buffer (only halo slabs are zeroed) -----
    x0buf[0:RH0, :] = jnp.zeros((RH0, WC), jnp.float32)
    x0buf[RH0 + H:RH0 + H + RH0, :] = jnp.zeros((RH0, WC), jnp.float32)
    x0buf[RH0:RH0 + H, :] = x_ref[0]

    # hbuf halos zeroed once per grid step; interiors are overwritten per use.
    hbuf[0:PH, :] = jnp.zeros((PH, WC), jnp.float32)
    hbuf[PH + H:PH + H + PH, :] = jnp.zeros((PH, WC), jnp.float32)

    # ---- conv0: depthwise 5x5, padding 2 -----------------------------------
    # Column (W) shifts = lane rolls of the flattened (row, W*C) layout with
    # out-of-range columns killed by mask-folded weights; row shifts = sublane
    # slices of the zero-haloed buffer.  Bias folded into the first tap.
    xpadv = x0buf[...]                                    # (H + 2*RH0, W*C)
    acc = None
    for kw in range(5):
        d = kw - 2
        xk = xpadv if d == 0 else pltpu.roll(xpadv, shift=(-d * C) % WC, axis=1)
        for kh in range(5):
            t = kh * 5 + kw
            r0 = RH0 - 2 + kh
            term = xk[r0:r0 + H, :] * w0_ref[t]
            acc = (term + b0_ref[0]) if acc is None else (acc + term)
    attn = acc                                            # (H, W*C), f32

    # ---- three horizontal strip convs share one set of rolled inputs -------
    hps = ((7, 9, w01_ref, b01_ref),
           (11, 15, w11_ref, b11_ref),
           (21, 30, w21_ref, b21_ref))
    # offset-0 tap + bias initialises each accumulator
    haccs = [attn * w[P // 3] + b[0] for (_, P, w, b) in hps]
    for d in range(-30, 31, 3):
        if d == 0 or abs(d) >= W:       # |d| >= W reads only zero padding
            continue
        r = pltpu.roll(attn, shift=(-d * C) % WC, axis=1)
        for j, (K, P, w, _) in enumerate(hps):
            k = (d + P) // 3
            if 0 <= k < K:
                haccs[j] = haccs[j] + r * w[k]

    # ---- vertical strip convs: sublane-offset slices of zero-haloed hbuf ---
    def vconv(K, P, hin, w_ref, b_ref):
        hbuf[PH:PH + H, :] = hin
        k0 = P // 3                                        # offset-0 tap
        acc = hin * w_ref[k0] + b_ref[0]
        for k in range(K):
            off = 3 * k - P
            if k == k0 or abs(off) >= H:                   # halo-only taps = 0
                continue
            r0 = PH + off
            acc = acc + hbuf[r0:r0 + H, :] * w_ref[k]
        return acc

    s = attn
    s = s + vconv(7, 9, haccs[0], w02_ref, b02_ref)
    s = s + vconv(11, 15, haccs[1], w12_ref, b12_ref)
    s = s + vconv(21, 30, haccs[2], w22_ref, b22_ref)

    # ---- conv3: 1x1 channel mix as (2C-1) lane-rolled MACs (exact f32) -----
    out = s * w3_ref[C - 1] + b3_ref[0]                    # diagonal (d=0) term
    for d in range(-(C - 1), C):
        if d == 0:
            continue
        out = out + pltpu.roll(s, shift=d % WC, axis=1) * w3_ref[C - 1 + d]

    # residual multiply against u, read late to keep its live range short
    o_ref[0] = (out * x_ref[0]).astype(o_ref.dtype)


def attention_module_ex1(x_nchw, params):
    """Forward of AttentionModuleEx1. x_nchw: (B, C, H, W) f32 -> (B, C, H, W)."""
    B, C, H, W = x_nchw.shape
    WC = W * C

    # NCHW -> (B, H, W*C): channels-minor, lane-dense flattened spatial layout.
    x = jnp.transpose(x_nchw, (0, 2, 3, 1)).astype(jnp.float32).reshape(B, H, WC)

    w_idx = jnp.arange(WC) // C                 # column index of every lane

    def tile_ch(w_kc):                          # (K, C) -> (K, W*C)
        return jnp.tile(w_kc.astype(jnp.float32), (1, W))

    def mask_cols(w_kwc, deltas):               # zero taps whose source col is OOB
        d = jnp.asarray(deltas, jnp.int32)[:, None]
        valid = (w_idx[None, :] + d >= 0) & (w_idx[None, :] + d < W)
        return jnp.where(valid, w_kwc, 0.0)

    def bias(name):
        return jnp.tile(params[name].astype(jnp.float32), W).reshape(1, WC)

    # conv0 (5x5 depthwise): torch (C,1,5,5) -> (25, W*C), column-masked per tap.
    w0 = jnp.transpose(params['conv0_w'][:, 0], (1, 2, 0)).reshape(25, C)
    w0 = mask_cols(tile_ch(w0), [t % 5 - 2 for t in range(25)])

    def hweights(name, K, P):                   # (1,K) strips, column-masked
        w = jnp.transpose(params[name][:, 0, 0], (1, 0))           # (K, C)
        return mask_cols(tile_ch(w), [3 * k - P for k in range(K)])

    def vweights(name):                         # (K,1) strips (no mask needed)
        return tile_ch(jnp.transpose(params[name][:, 0, :, 0], (1, 0)))

    w01 = hweights('conv0_1_w', 7, 9)
    w11 = hweights('conv1_1_w', 11, 15)
    w21 = hweights('conv2_1_w', 21, 30)
    w02 = vweights('conv0_2_w')
    w12 = vweights('conv1_2_w')
    w22 = vweights('conv2_2_w')

    # conv3 (1x1): channel mix expressed as 2C-1 lane-shift weight vectors.
    w3 = jnp.transpose(params['conv3_w'][:, :, 0, 0], (1, 0)).astype(jnp.float32)
    co = jnp.arange(WC) % C
    rows = []
    for d in range(-(C - 1), C):
        ci = co - d
        valid = (ci >= 0) & (ci < C)
        rows.append(jnp.where(valid, w3[jnp.clip(ci, 0, C - 1), co], 0.0))
    w3s = jnp.stack(rows, axis=0)                                   # (2C-1, W*C)

    b0, b01, b02 = bias('conv0_b'), bias('conv0_1_b'), bias('conv0_2_b')
    b11, b12 = bias('conv1_1_b'), bias('conv1_2_b')
    b21, b22 = bias('conv2_1_b'), bias('conv2_2_b')
    b3 = bias('conv3_b')

    def full(shape):
        return pl.BlockSpec(shape, lambda b: (0,) * len(shape))

    kernel = functools.partial(_attn_kernel, H, W, C)

    grid_spec = pltpu.PrefetchScalarGridSpec(
        num_scalar_prefetch=0,
        grid=(B,),
        in_specs=[
            pl.BlockSpec((1, H, WC), lambda b: (b, 0, 0)),     # x (lane-dense)
            full((25, WC)), full((1, WC)),                     # conv0
            full((7, WC)), full((1, WC)),                      # conv0_1
            full((7, WC)), full((1, WC)),                      # conv0_2
            full((11, WC)), full((1, WC)),                     # conv1_1
            full((11, WC)), full((1, WC)),                     # conv1_2
            full((21, WC)), full((1, WC)),                     # conv2_1
            full((21, WC)), full((1, WC)),                     # conv2_2
            full((2 * C - 1, WC)), full((1, WC)),              # conv3
        ],
        out_specs=pl.BlockSpec((1, H, WC), lambda b: (b, 0, 0)),   # lane-dense out
        scratch_shapes=[
            pltpu.VMEM((H + 2 * RH0, WC), jnp.float32),        # conv0 row-haloed x
            pltpu.VMEM((H + 2 * PH, WC), jnp.float32),         # vertical-conv halo buf
        ],
    )

    out = pl.pallas_call(
        kernel,
        out_shape=jax.ShapeDtypeStruct((B, H, WC), jnp.float32),
        grid_spec=grid_spec,
        compiler_params=pltpu.CompilerParams(
            dimension_semantics=("parallel",)),   # batch shards across v7x cores
    )(x, w0, b0, w01, b01, w02, b02,
      w11, b11, w12, b12, w21, b21, w22, b22, w3s, b3)

    return jnp.transpose(out.reshape(B, H, W, C), (0, 3, 1, 2))   # -> NCHW


# ---------------- deterministic parameter init (synthetic) ----------------
def init_params(key, dim):
    keys = jax.random.split(key, 16)

    def w(k, shape):
        return 0.1 * jax.random.normal(k, shape, jnp.float32)

    return {
        'conv0_w': w(keys[0], (dim, 1, 5, 5)),    'conv0_b': w(keys[1], (dim,)),
        'conv0_1_w': w(keys[2], (dim, 1, 1, 7)),  'conv0_1_b': w(keys[3], (dim,)),
        'conv0_2_w': w(keys[4], (dim, 1, 7, 1)),  'conv0_2_b': w(keys[5], (dim,)),
        'conv1_1_w': w(keys[6], (dim, 1, 1, 11)), 'conv1_1_b': w(keys[7], (dim,)),
        'conv1_2_w': w(keys[8], (dim, 1, 11, 1)), 'conv1_2_b': w(keys[9], (dim,)),
        'conv2_1_w': w(keys[10], (dim, 1, 1, 21)), 'conv2_1_b': w(keys[11], (dim,)),
        'conv2_2_w': w(keys[12], (dim, 1, 21, 1)), 'conv2_2_b': w(keys[13], (dim,)),
        'conv3_w': w(keys[14], (dim, dim, 1, 1)),  'conv3_b': w(keys[15], (dim,)),
    }


# ---------------- pure-JAX reference (XLA convs) for validation ----------------
def _conv_nchw(x, w, b, pad_hw, dil_hw, groups):
    out = lax.conv_general_dilated(
        x, w, window_strides=(1, 1),
        padding=[(pad_hw[0], pad_hw[0]), (pad_hw[1], pad_hw[1])],
        rhs_dilation=dil_hw,
        dimension_numbers=('NCHW', 'OIHW', 'NCHW'),
        feature_group_count=groups,
        precision=lax.Precision.HIGHEST)
    return out + b[None, :, None, None]


def reference_forward(x, p, dim):
    u = x
    attn = _conv_nchw(x, p['conv0_w'], p['conv0_b'], (2, 2), (1, 1), dim)
    attn_0 = _conv_nchw(attn, p['conv0_1_w'], p['conv0_1_b'], (0, 9), (3, 3), dim)
    attn_0 = _conv_nchw(attn_0, p['conv0_2_w'], p['conv0_2_b'], (9, 0), (3, 3), dim)
    attn_1 = _conv_nchw(attn, p['conv1_1_w'], p['conv1_1_b'], (0, 15), (3, 3), dim)
    attn_1 = _conv_nchw(attn_1, p['conv1_2_w'], p['conv1_2_b'], (15, 0), (3, 3), dim)
    attn_2 = _conv_nchw(attn, p['conv2_1_w'], p['conv2_1_b'], (0, 30), (3, 3), dim)
    attn_2 = _conv_nchw(attn_2, p['conv2_2_w'], p['conv2_2_b'], (30, 0), (3, 3), dim)
    attn = attn + attn_0 + attn_1 + attn_2
    attn = _conv_nchw(attn, p['conv3_w'], p['conv3_b'], (0, 0), (1, 1), 1)
    return attn * u


if __name__ == "__main__":
    dim = 8
    B, H, W = 2, 16, 16   # W * dim = 128 -> fully lane-dense at the test shape

    key = jax.random.PRNGKey(0)
    kx, kp = jax.random.split(key)
    x = jax.random.normal(kx, (B, dim, H, W), jnp.float32)
    params = init_params(kp, dim)

    out = attention_module_ex1(x, params)
    out = jax.block_until_ready(out)

    ref = reference_forward(x, params, dim)
    err = float(jnp.max(jnp.abs(out - ref)))
    assert out.shape == (B, dim, H, W), out.shape
    assert err < 2e-3, f"max abs err {err}"
    print("KERNEL_OK")
</pallas_src>

<mosaic_0001>
module attributes {stable_mosaic.version = 11 : i64} {
  func.func @_attn_kernel(%arg0: i32, %arg1: memref<1x16x128xf32, #tpu.memory_space<vmem>>, %arg2: memref<25x128xf32, #tpu.memory_space<vmem>>, %arg3: memref<1x128xf32, #tpu.memory_space<vmem>>, %arg4: memref<7x128xf32, #tpu.memory_space<vmem>>, %arg5: memref<1x128xf32, #tpu.memory_space<vmem>>, %arg6: memref<7x128xf32, #tpu.memory_space<vmem>>, %arg7: memref<1x128xf32, #tpu.memory_space<vmem>>, %arg8: memref<11x128xf32, #tpu.memory_space<vmem>>, %arg9: memref<1x128xf32, #tpu.memory_space<vmem>>, %arg10: memref<11x128xf32, #tpu.memory_space<vmem>>, %arg11: memref<1x128xf32, #tpu.memory_space<vmem>>, %arg12: memref<21x128xf32, #tpu.memory_space<vmem>>, %arg13: memref<1x128xf32, #tpu.memory_space<vmem>>, %arg14: memref<21x128xf32, #tpu.memory_space<vmem>>, %arg15: memref<1x128xf32, #tpu.memory_space<vmem>>, %arg16: memref<15x128xf32, #tpu.memory_space<vmem>>, %arg17: memref<1x128xf32, #tpu.memory_space<vmem>>, %arg18: memref<1x16x128xf32, #tpu.memory_space<vmem>>, %arg19: memref<32x128xf32, #tpu.memory_space<vmem>>, %arg20: memref<80x128xf32, #tpu.memory_space<vmem>>) attributes {dimension_semantics = [#tpu.dimension_semantics<parallel>], iteration_bounds = array<i64: 2>, scalar_prefetch = 0 : i64, scratch_operands = 2 : i64, tpu.core_type = #tpu.core_type<tc>, window_params = [{transform_indices = @transform_0, window_bounds = array<i64: 1, 16, 128>}, {pipeline_mode = #tpu.pipeline_mode<synchronous>, transform_indices = @transform_1, window_bounds = array<i64: 25, 128>}, {pipeline_mode = #tpu.pipeline_mode<synchronous>, transform_indices = @transform_2, window_bounds = array<i64: 1, 128>}, {pipeline_mode = #tpu.pipeline_mode<synchronous>, transform_indices = @transform_3, window_bounds = array<i64: 7, 128>}, {pipeline_mode = #tpu.pipeline_mode<synchronous>, transform_indices = @transform_4, window_bounds = array<i64: 1, 128>}, {pipeline_mode = #tpu.pipeline_mode<synchronous>, transform_indices = @transform_5, window_bounds = array<i64: 7, 128>}, {pipeline_mode = #tpu.pipeline_mode<synchronous>, transform_indices = @transform_6, window_bounds = array<i64: 1, 128>}, {pipeline_mode = #tpu.pipeline_mode<synchronous>, transform_indices = @transform_7, window_bounds = array<i64: 11, 128>}, {pipeline_mode = #tpu.pipeline_mode<synchronous>, transform_indices = @transform_8, window_bounds = array<i64: 1, 128>}, {pipeline_mode = #tpu.pipeline_mode<synchronous>, transform_indices = @transform_9, window_bounds = array<i64: 11, 128>}, {pipeline_mode = #tpu.pipeline_mode<synchronous>, transform_indices = @transform_10, window_bounds = array<i64: 1, 128>}, {pipeline_mode = #tpu.pipeline_mode<synchronous>, transform_indices = @transform_11, window_bounds = array<i64: 21, 128>}, {pipeline_mode = #tpu.pipeline_mode<synchronous>, transform_indices = @transform_12, window_bounds = array<i64: 1, 128>}, {pipeline_mode = #tpu.pipeline_mode<synchronous>, transform_indices = @transform_13, window_bounds = array<i64: 21, 128>}, {pipeline_mode = #tpu.pipeline_mode<synchronous>, transform_indices = @transform_14, window_bounds = array<i64: 1, 128>}, {pipeline_mode = #tpu.pipeline_mode<synchronous>, transform_indices = @transform_15, window_bounds = array<i64: 15, 128>}, {pipeline_mode = #tpu.pipeline_mode<synchronous>, transform_indices = @transform_16, window_bounds = array<i64: 1, 128>}, {transform_indices = @transform_17, window_bounds = array<i64: 1, 16, 128>}]} {
    %cst = arith.constant 0.000000e+00 : f32
    %0 = vector.broadcast %cst : f32 to vector<8x128xf32>
    %c0 = arith.constant 0 : index
    %c0_0 = arith.constant 0 : index
    %1 = vector.load %arg19[%c0, %c0_0] : memref<32x128xf32, #tpu.memory_space<vmem>>, vector<8x128xf32>
    tpu.vector_store %arg19[%c0, %c0_0], %0 {strides = array<i32>} : memref<32x128xf32, #tpu.memory_space<vmem>>, vector<8x128xf32>,
    %cst_1 = arith.constant 0.000000e+00 : f32
    %2 = vector.broadcast %cst_1 : f32 to vector<8x128xf32>
    %c24 = arith.constant 24 : index
    %c0_2 = arith.constant 0 : index
    %3 = vector.load %arg19[%c24, %c0_2] : memref<32x128xf32, #tpu.memory_space<vmem>>, vector<8x128xf32>
    tpu.vector_store %arg19[%c24, %c0_2], %2 {strides = array<i32>} : memref<32x128xf32, #tpu.memory_space<vmem>>, vector<8x128xf32>,
    %c0_3 = arith.constant 0 : index
    %c0_4 = arith.constant 0 : index
    %c0_5 = arith.constant 0 : index
    %4 = vector.load %arg1[%c0_3, %c0_4, %c0_5] : memref<1x16x128xf32, #tpu.memory_space<vmem>>, vector<1x16x128xf32>
    %5 = vector.shape_cast %4 : vector<1x16x128xf32> to vector<16x128xf32>
    %c8 = arith.constant 8 : index
    %c0_6 = arith.constant 0 : index
    %6 = vector.load %arg19[%c8, %c0_6] : memref<32x128xf32, #tpu.memory_space<vmem>>, vector<16x128xf32>
    tpu.vector_store %arg19[%c8, %c0_6], %5 {strides = array<i32>} : memref<32x128xf32, #tpu.memory_space<vmem>>, vector<16x128xf32>,
    %cst_7 = arith.constant 0.000000e+00 : f32
    %7 = vector.broadcast %cst_7 : f32 to vector<32x128xf32>
    %c0_8 = arith.constant 0 : index
    %c0_9 = arith.constant 0 : index
    %8 = vector.load %arg20[%c0_8, %c0_9] : memref<80x128xf32, #tpu.memory_space<vmem>>, vector<32x128xf32>
    tpu.vector_store %arg20[%c0_8, %c0_9], %7 {strides = array<i32>} : memref<80x128xf32, #tpu.memory_space<vmem>>, vector<32x128xf32>,
    %cst_10 = arith.constant 0.000000e+00 : f32
    %9 = vector.broadcast %cst_10 : f32 to vector<32x128xf32>
    %c48 = arith.constant 48 : index
    %c0_11 = arith.constant 0 : index
    %10 = vector.load %arg20[%c48, %c0_11] : memref<80x128xf32, #tpu.memory_space<vmem>>, vector<32x128xf32>
    tpu.vector_store %arg20[%c48, %c0_11], %9 {strides = array<i32>} : memref<80x128xf32, #tpu.memory_space<vmem>>, vector<32x128xf32>,
    %c0_12 = arith.constant 0 : index
    %c0_13 = arith.constant 0 : index
    %11 = vector.load %arg19[%c0_12, %c0_13] : memref<32x128xf32, #tpu.memory_space<vmem>>, vector<32x128xf32>
    %c16_i32 = arith.constant 16 : i32
    %12 = tpu.dynamic_rotate %11 by %c16_i32 dim 1 : vector<32x128xf32>, i32 -> vector<32x128xf32>
    %13 = vector.extract_strided_slice %12 {offsets = [6, 0], sizes = [16, 128], strides = [1, 1]} : vector<32x128xf32> to vector<16x128xf32>
    %c0_14 = arith.constant 0 : index
    %c0_15 = arith.constant 0 : index
    %14 = vector.load %arg2[%c0_14, %c0_15] : memref<25x128xf32, #tpu.memory_space<vmem>>, vector<1x128xf32>
    %15 = vector.shape_cast %14 : vector<1x128xf32> to vector<128xf32>
    %16 = vector.shape_cast %15 : vector<128xf32> to vector<1x128xf32>
    %17 = vector.broadcast %16 : vector<1x128xf32> to vector<16x128xf32>
    %18 = arith.mulf %13, %17 : vector<16x128xf32>
    %c0_16 = arith.constant 0 : index
    %c0_17 = arith.constant 0 : index
    %19 = vector.load %arg3[%c0_16, %c0_17] : memref<1x128xf32, #tpu.memory_space<vmem>>, vector<1x128xf32>
    %20 = vector.shape_cast %19 : vector<1x128xf32> to vector<128xf32>
    %21 = vector.shape_cast %20 : vector<128xf32> to vector<1x128xf32>
    %22 = vector.broadcast %21 : vector<1x128xf32> to vector<16x128xf32>
    %23 = arith.addf %18, %22 : vector<16x128xf32>
    %24 = vector.extract_strided_slice %12 {offsets = [7, 0], sizes = [16, 128], strides = [1, 1]} : vector<32x128xf32> to vector<16x128xf32>
    %c5 = arith.constant 5 : index
    %c0_18 = arith.constant 0 : index
    %25 = vector.load %arg2[%c5, %c0_18] : memref<25x128xf32, #tpu.memory_space<vmem>>, vector<1x128xf32>
    %26 = vector.shape_cast %25 : vector<1x128xf32> to vector<128xf32>
    %27 = vector.shape_cast %26 : vector<128xf32> to vector<1x128xf32>
    %28 = vector.broadcast %27 : vector<1x128xf32> to vector<16x128xf32>
    %29 = arith.mulf %24, %28 : vector<16x128xf32>
    %30 = arith.addf %23, %29 : vector<16x128xf32>
    %31 = vector.extract_strided_slice %12 {offsets = [8, 0], sizes = [16, 128], strides = [1, 1]} : vector<32x128xf32> to vector<16x128xf32>
    %c10 = arith.constant 10 : index
    %c0_19 = arith.constant 0 : index
    %32 = vector.load %arg2[%c10, %c0_19] : memref<25x128xf32, #tpu.memory_space<vmem>>, vector<1x128xf32>
    %33 = vector.shape_cast %32 : vector<1x128xf32> to vector<128xf32>
    %34 = vector.shape_cast %33 : vector<128xf32> to vector<1x128xf32>
    %35 = vector.broadcast %34 : vector<1x128xf32> to vector<16x128xf32>
    %36 = arith.mulf %31, %35 : vector<16x128xf32>
    %37 = arith.addf %30, %36 : vector<16x128xf32>
    %38 = vector.extract_strided_slice %12 {offsets = [9, 0], sizes = [16, 128], strides = [1, 1]} : vector<32x128xf32> to vector<16x128xf32>
    %c15 = arith.constant 15 : index
    %c0_20 = arith.constant 0 : index
    %39 = vector.load %arg2[%c15, %c0_20] : memref<25x128xf32, #tpu.memory_space<vmem>>, vector<1x128xf32>
    %40 = vector.shape_cast %39 : vector<1x128xf32> to vector<128xf32>
    %41 = vector.shape_cast %40 : vector<128xf32> to vector<1x128xf32>
    %42 = vector.broadcast %41 : vector<1x128xf32> to vector<16x128xf32>
    %43 = arith.mulf %38, %42 : vector<16x128xf32>
    %44 = arith.addf %37, %43 : vector<16x128xf32>
    %45 = vector.extract_strided_slice %12 {offsets = [10, 0], sizes = [16, 128], strides = [1, 1]} : vector<32x128xf32> to vector<16x128xf32>
    %c20 = arith.constant 20 : index
    %c0_21 = arith.constant 0 : index
    %46 = vector.load %arg2[%c20, %c0_21] : memref<25x128xf32, #tpu.memory_space<vmem>>, vector<1x128xf32>
    %47 = vector.shape_cast %46 : vector<1x128xf32> to vector<128xf32>
    %48 = vector.shape_cast %47 : vector<128xf32> to vector<1x128xf32>
    %49 = vector.broadcast %48 : vector<1x128xf32> to vector<16x128xf32>
    %50 = arith.mulf %45, %49 : vector<16x128xf32>
    %51 = arith.addf %44, %50 : vector<16x128xf32>
    %c8_i32 = arith.constant 8 : i32
    %52 = tpu.dynamic_rotate %11 by %c8_i32 dim 1 : vector<32x128xf32>, i32 -> vector<32x128xf32>
    %53 = vector.extract_strided_slice %52 {offsets = [6, 0], sizes = [16, 128], strides = [1, 1]} : vector<32x128xf32> to vector<16x128xf32>
    %c1 = arith.constant 1 : index
    %c0_22 = arith.constant 0 : index
    %54 = vector.load %arg2[%c1, %c0_22] : memref<25x128xf32, #tpu.memory_space<vmem>>, vector<1x128xf32>
    %55 = vector.shape_cast %54 : vector<1x128xf32> to vector<128xf32>
    %56 = vector.shape_cast %55 : vector<128xf32> to vector<1x128xf32>
    %57 = vector.broadcast %56 : vector<1x128xf32> to vector<16x128xf32>
    %58 = arith.mulf %53, %57 : vector<16x128xf32>
    %59 = arith.addf %51, %58 : vector<16x128xf32>
    %60 = vector.extract_strided_slice %52 {offsets = [7, 0], sizes = [16, 128], strides = [1, 1]} : vector<32x128xf32> to vector<16x128xf32>
    %c6 = arith.constant 6 : index
    %c0_23 = arith.constant 0 : index
    %61 = vector.load %arg2[%c6, %c0_23] : memref<25x128xf32, #tpu.memory_space<vmem>>, vector<1x128xf32>
    %62 = vector.shape_cast %61 : vector<1x128xf32> to vector<128xf32>
    %63 = vector.shape_cast %62 : vector<128xf32> to vector<1x128xf32>
    %64 = vector.broadcast %63 : vector<1x128xf32> to vector<16x128xf32>
    %65 = arith.mulf %60, %64 : vector<16x128xf32>
    %66 = arith.addf %59, %65 : vector<16x128xf32>
    %67 = vector.extract_strided_slice %52 {offsets = [8, 0], sizes = [16, 128], strides = [1, 1]} : vector<32x128xf32> to vector<16x128xf32>
    %c11 = arith.constant 11 : index
    %c0_24 = arith.constant 0 : index
    %68 = vector.load %arg2[%c11, %c0_24] : memref<25x128xf32, #tpu.memory_space<vmem>>, vector<1x128xf32>
    %69 = vector.shape_cast %68 : vector<1x128xf32> to vector<128xf32>
    %70 = vector.shape_cast %69 : vector<128xf32> to vector<1x128xf32>
    %71 = vector.broadcast %70 : vector<1x128xf32> to vector<16x128xf32>
    %72 = arith.mulf %67, %71 : vector<16x128xf32>
    %73 = arith.addf %66, %72 : vector<16x128xf32>
    %74 = vector.extract_strided_slice %52 {offsets = [9, 0], sizes = [16, 128], strides = [1, 1]} : vector<32x128xf32> to vector<16x128xf32>
    %c16 = arith.constant 16 : index
    %c0_25 = arith.constant 0 : index
    %75 = vector.load %arg2[%c16, %c0_25] : memref<25x128xf32, #tpu.memory_space<vmem>>, vector<1x128xf32>
    %76 = vector.shape_cast %75 : vector<1x128xf32> to vector<128xf32>
    %77 = vector.shape_cast %76 : vector<128xf32> to vector<1x128xf32>
    %78 = vector.broadcast %77 : vector<1x128xf32> to vector<16x128xf32>
    %79 = arith.mulf %74, %78 : vector<16x128xf32>
    %80 = arith.addf %73, %79 : vector<16x128xf32>
    %81 = vector.extract_strided_slice %52 {offsets = [10, 0], sizes = [16, 128], strides = [1, 1]} : vector<32x128xf32> to vector<16x128xf32>
    %c21 = arith.constant 21 : index
    %c0_26 = arith.constant 0 : index
    %82 = vector.load %arg2[%c21, %c0_26] : memref<25x128xf32, #tpu.memory_space<vmem>>, vector<1x128xf32>
    %83 = vector.shape_cast %82 : vector<1x128xf32> to vector<128xf32>
    %84 = vector.shape_cast %83 : vector<128xf32> to vector<1x128xf32>
    %85 = vector.broadcast %84 : vector<1x128xf32> to vector<16x128xf32>
    %86 = arith.mulf %81, %85 : vector<16x128xf32>
    %87 = arith.addf %80, %86 : vector<16x128xf32>
    %88 = vector.extract_strided_slice %11 {offsets = [6, 0], sizes = [16, 128], strides = [1, 1]} : vector<32x128xf32> to vector<16x128xf32>
    %c2 = arith.constant 2 : index
    %c0_27 = arith.constant 0 : index
    %89 = vector.load %arg2[%c2, %c0_27] : memref<25x128xf32, #tpu.memory_space<vmem>>, vector<1x128xf32>
    %90 = vector.shape_cast %89 : vector<1x128xf32> to vector<128xf32>
    %91 = vector.shape_cast %90 : vector<128xf32> to vector<1x128xf32>
    %92 = vector.broadcast %91 : vector<1x128xf32> to vector<16x128xf32>
    %93 = arith.mulf %88, %92 : vector<16x128xf32>
    %94 = arith.addf %87, %93 : vector<16x128xf32>
    %95 = vector.extract_strided_slice %11 {offsets = [7, 0], sizes = [16, 128], strides = [1, 1]} : vector<32x128xf32> to vector<16x128xf32>
    %c7 = arith.constant 7 : index
    %c0_28 = arith.constant 0 : index
    %96 = vector.load %arg2[%c7, %c0_28] : memref<25x128xf32, #tpu.memory_space<vmem>>, vector<1x128xf32>
    %97 = vector.shape_cast %96 : vector<1x128xf32> to vector<128xf32>
    %98 = vector.shape_cast %97 : vector<128xf32> to vector<1x128xf32>
    %99 = vector.broadcast %98 : vector<1x128xf32> to vector<16x128xf32>
    %100 = arith.mulf %95, %99 : vector<16x128xf32>
    %101 = arith.addf %94, %100 : vector<16x128xf32>
    %102 = vector.extract_strided_slice %11 {offsets = [8, 0], sizes = [16, 128], strides = [1, 1]} : vector<32x128xf32> to vector<16x128xf32>
    %c12 = arith.constant 12 : index
    %c0_29 = arith.constant 0 : index
    %103 = vector.load %arg2[%c12, %c0_29] : memref<25x128xf32, #tpu.memory_space<vmem>>, vector<1x128xf32>
    %104 = vector.shape_cast %103 : vector<1x128xf32> to vector<128xf32>
    %105 = vector.shape_cast %104 : vector<128xf32> to vector<1x128xf32>
    %106 = vector.broadcast %105 : vector<1x128xf32> to vector<16x128xf32>
    %107 = arith.mulf %102, %106 : vector<16x128xf32>
    %108 = arith.addf %101, %107 : vector<16x128xf32>
    %109 = vector.extract_strided_slice %11 {offsets = [9, 0], sizes = [16, 128], strides = [1, 1]} : vector<32x128xf32> to vector<16x128xf32>
    %c17 = arith.constant 17 : index
    %c0_30 = arith.constant 0 : index
    %110 = vector.load %arg2[%c17, %c0_30] : memref<25x128xf32, #tpu.memory_space<vmem>>, vector<1x128xf32>
    %111 = vector.shape_cast %110 : vector<1x128xf32> to vector<128xf32>
    %112 = vector.shape_cast %111 : vector<128xf32> to vector<1x128xf32>
    %113 = vector.broadcast %112 : vector<1x128xf32> to vector<16x128xf32>
    %114 = arith.mulf %109, %113 : vector<16x128xf32>
    %115 = arith.addf %108, %114 : vector<16x128xf32>
    %116 = vector.extract_strided_slice %11 {offsets = [10, 0], sizes = [16, 128], strides = [1, 1]} : vector<32x128xf32> to vector<16x128xf32>
    %c22 = arith.constant 22 : index
    %c0_31 = arith.constant 0 : index
    %117 = vector.load %arg2[%c22, %c0_31] : memref<25x128xf32, #tpu.memory_space<vmem>>, vector<1x128xf32>
    %118 = vector.shape_cast %117 : vector<1x128xf32> to vector<128xf32>
    %119 = vector.shape_cast %118 : vector<128xf32> to vector<1x128xf32>
    %120 = vector.broadcast %119 : vector<1x128xf32> to vector<16x128xf32>
    %121 = arith.mulf %116, %120 : vector<16x128xf32>
    %122 = arith.addf %115, %121 : vector<16x128xf32>
    %c120_i32 = arith.constant 120 : i32
    %123 = tpu.dynamic_rotate %11 by %c120_i32 dim 1 : vector<32x128xf32>, i32 -> vector<32x128xf32>
    %124 = vector.extract_strided_slice %123 {offsets = [6, 0], sizes = [16, 128], strides = [1, 1]} : vector<32x128xf32> to vector<16x128xf32>
    %c3 = arith.constant 3 : index
    %c0_32 = arith.constant 0 : index
    %125 = vector.load %arg2[%c3, %c0_32] : memref<25x128xf32, #tpu.memory_space<vmem>>, vector<1x128xf32>
    %126 = vector.shape_cast %125 : vector<1x128xf32> to vector<128xf32>
    %127 = vector.shape_cast %126 : vector<128xf32> to vector<1x128xf32>
    %128 = vector.broadcast %127 : vector<1x128xf32> to vector<16x128xf32>
    %129 = arith.mulf %124, %128 : vector<16x128xf32>
    %130 = arith.addf %122, %129 : vector<16x128xf32>
    %131 = vector.extract_strided_slice %123 {offsets = [7, 0], sizes = [16, 128], strides = [1, 1]} : vector<32x128xf32> to vector<16x128xf32>
    %c8_33 = arith.constant 8 : index
    %c0_34 = arith.constant 0 : index
    %132 = vector.load %arg2[%c8_33, %c0_34] : memref<25x128xf32, #tpu.memory_space<vmem>>, vector<1x128xf32>
    %133 = vector.shape_cast %132 : vector<1x128xf32> to vector<128xf32>
    %134 = vector.shape_cast %133 : vector<128xf32> to vector<1x128xf32>
    %135 = vector.broadcast %134 : vector<1x128xf32> to vector<16x128xf32>
    %136 = arith.mulf %131, %135 : vector<16x128xf32>
    %137 = arith.addf %130, %136 : vector<16x128xf32>
    %138 = vector.extract_strided_slice %123 {offsets = [8, 0], sizes = [16, 128], strides = [1, 1]} : vector<32x128xf32> to vector<16x128xf32>
    %c13 = arith.constant 13 : index
    %c0_35 = arith.constant 0 : index
    %139 = vector.load %arg2[%c13, %c0_35] : memref<25x128xf32, #tpu.memory_space<vmem>>, vector<1x128xf32>
    %140 = vector.shape_cast %139 : vector<1x128xf32> to vector<128xf32>
    %141 = vector.shape_cast %140 : vector<128xf32> to vector<1x128xf32>
    %142 = vector.broadcast %141 : vector<1x128xf32> to vector<16x128xf32>
    %143 = arith.mulf %138, %142 : vector<16x128xf32>
    %144 = arith.addf %137, %143 : vector<16x128xf32>
    %145 = vector.extract_strided_slice %123 {offsets = [9, 0], sizes = [16, 128], strides = [1, 1]} : vector<32x128xf32> to vector<16x128xf32>
    %c18 = arith.constant 18 : index
    %c0_36 = arith.constant 0 : index
    %146 = vector.load %arg2[%c18, %c0_36] : memref<25x128xf32, #tpu.memory_space<vmem>>, vector<1x128xf32>
    %147 = vector.shape_cast %146 : vector<1x128xf32> to vector<128xf32>
    %148 = vector.shape_cast %147 : vector<128xf32> to vector<1x128xf32>
    %149 = vector.broadcast %148 : vector<1x128xf32> to vector<16x128xf32>
    %150 = arith.mulf %145, %149 : vector<16x128xf32>
    %151 = arith.addf %144, %150 : vector<16x128xf32>
    %152 = vector.extract_strided_slice %123 {offsets = [10, 0], sizes = [16, 128], strides = [1, 1]} : vector<32x128xf32> to vector<16x128xf32>
    %c23 = arith.constant 23 : index
    %c0_37 = arith.constant 0 : index
    %153 = vector.load %arg2[%c23, %c0_37] : memref<25x128xf32, #tpu.memory_space<vmem>>, vector<1x128xf32>
    %154 = vector.shape_cast %153 : vector<1x128xf32> to vector<128xf32>
    %155 = vector.shape_cast %154 : vector<128xf32> to vector<1x128xf32>
    %156 = vector.broadcast %155 : vector<1x128xf32> to vector<16x128xf32>
    %157 = arith.mulf %152, %156 : vector<16x128xf32>
    %158 = arith.addf %151, %157 : vector<16x128xf32>
    %c112_i32 = arith.constant 112 : i32
    %159 = tpu.dynamic_rotate %11 by %c112_i32 dim 1 : vector<32x128xf32>, i32 -> vector<32x128xf32>
    %160 = vector.extract_strided_slice %159 {offsets = [6, 0], sizes = [16, 128], strides = [1, 1]} : vector<32x128xf32> to vector<16x128xf32>
    %c4 = arith.constant 4 : index
    %c0_38 = arith.constant 0 : index
    %161 = vector.load %arg2[%c4, %c0_38] : memref<25x128xf32, #tpu.memory_space<vmem>>, vector<1x128xf32>
    %162 = vector.shape_cast %161 : vector<1x128xf32> to vector<128xf32>
    %163 = vector.shape_cast %162 : vector<128xf32> to vector<1x128xf32>
    %164 = vector.broadcast %163 : vector<1x128xf32> to vector<16x128xf32>
    %165 = arith.mulf %160, %164 : vector<16x128xf32>
    %166 = arith.addf %158, %165 : vector<16x128xf32>
    %167 = vector.extract_strided_slice %159 {offsets = [7, 0], sizes = [16, 128], strides = [1, 1]} : vector<32x128xf32> to vector<16x128xf32>
    %c9 = arith.constant 9 : index
    %c0_39 = arith.constant 0 : index
    %168 = vector.load %arg2[%c9, %c0_39] : memref<25x128xf32, #tpu.memory_space<vmem>>, vector<1x128xf32>
    %169 = vector.shape_cast %168 : vector<1x128xf32> to vector<128xf32>
    %170 = vector.shape_cast %169 : vector<128xf32> to vector<1x128xf32>
    %171 = vector.broadcast %170 : vector<1x128xf32> to vector<16x128xf32>
    %172 = arith.mulf %167, %171 : vector<16x128xf32>
    %173 = arith.addf %166, %172 : vector<16x128xf32>
    %174 = vector.extract_strided_slice %159 {offsets = [8, 0], sizes = [16, 128], strides = [1, 1]} : vector<32x128xf32> to vector<16x128xf32>
    %c14 = arith.constant 14 : index
    %c0_40 = arith.constant 0 : index
    %175 = vector.load %arg2[%c14, %c0_40] : memref<25x128xf32, #tpu.memory_space<vmem>>, vector<1x128xf32>
    %176 = vector.shape_cast %175 : vector<1x128xf32> to vector<128xf32>
    %177 = vector.shape_cast %176 : vector<128xf32> to vector<1x128xf32>
    %178 = vector.broadcast %177 : vector<1x128xf32> to vector<16x128xf32>
    %179 = arith.mulf %174, %178 : vector<16x128xf32>
    %180 = arith.addf %173, %179 : vector<16x128xf32>
    %181 = vector.extract_strided_slice %159 {offsets = [9, 0], sizes = [16, 128], strides = [1, 1]} : vector<32x128xf32> to vector<16x128xf32>
    %c19 = arith.constant 19 : index
    %c0_41 = arith.constant 0 : index
    %182 = vector.load %arg2[%c19, %c0_41] : memref<25x128xf32, #tpu.memory_space<vmem>>, vector<1x128xf32>
    %183 = vector.shape_cast %182 : vector<1x128xf32> to vector<128xf32>
    %184 = vector.shape_cast %183 : vector<128xf32> to vector<1x128xf32>
    %185 = vector.broadcast %184 : vector<1x128xf32> to vector<16x128xf32>
    %186 = arith.mulf %181, %185 : vector<16x128xf32>
    %187 = arith.addf %180, %186 : vector<16x128xf32>
    %188 = vector.extract_strided_slice %159 {offsets = [10, 0], sizes = [16, 128], strides = [1, 1]} : vector<32x128xf32> to vector<16x128xf32>
    %c24_42 = arith.constant 24 : index
    %c0_43 = arith.constant 0 : index
    %189 = vector.load %arg2[%c24_42, %c0_43] : memref<25x128xf32, #tpu.memory_space<vmem>>, vector<1x128xf32>
    %190 = vector.shape_cast %189 : vector<1x128xf32> to vector<128xf32>
    %191 = vector.shape_cast %190 : vector<128xf32> to vector<1x128xf32>
    %192 = vector.broadcast %191 : vector<1x128xf32> to vector<16x128xf32>
    %193 = arith.mulf %188, %192 : vector<16x128xf32>
    %194 = arith.addf %187, %193 : vector<16x128xf32>
    %c3_44 = arith.constant 3 : index
    %c0_45 = arith.constant 0 : index
    %195 = vector.load %arg4[%c3_44, %c0_45] : memref<7x128xf32, #tpu.memory_space<vmem>>, vector<1x128xf32>
    %196 = vector.shape_cast %195 : vector<1x128xf32> to vector<128xf32>
    %197 = vector.shape_cast %196 : vector<128xf32> to vector<1x128xf32>
    %198 = vector.broadcast %197 : vector<1x128xf32> to vector<16x128xf32>
    %199 = arith.mulf %194, %198 : vector<16x128xf32>
    %c0_46 = arith.constant 0 : index
    %c0_47 = arith.constant 0 : index
    %200 = vector.load %arg5[%c0_46, %c0_47] : memref<1x128xf32, #tpu.memory_space<vmem>>, vector<1x128xf32>
    %201 = vector.shape_cast %200 : vector<1x128xf32> to vector<128xf32>
    %202 = vector.shape_cast %201 : vector<128xf32> to vector<1x128xf32>
    %203 = vector.broadcast %202 : vector<1x128xf32> to vector<16x128xf32>
    %204 = arith.addf %199, %203 : vector<16x128xf32>
    %c5_48 = arith.constant 5 : index
    %c0_49 = arith.constant 0 : index
    %205 = vector.load %arg8[%c5_48, %c0_49] : memref<11x128xf32, #tpu.memory_space<vmem>>, vector<1x128xf32>
    %206 = vector.shape_cast %205 : vector<1x128xf32> to vector<128xf32>
    %207 = vector.shape_cast %206 : vector<128xf32> to vector<1x128xf32>
    %208 = vector.broadcast %207 : vector<1x128xf32> to vector<16x128xf32>
    %209 = arith.mulf %194, %208 : vector<16x128xf32>
    %c0_50 = arith.constant 0 : index
    %c0_51 = arith.constant 0 : index
    %210 = vector.load %arg9[%c0_50, %c0_51] : memref<1x128xf32, #tpu.memory_space<vmem>>, vector<1x128xf32>
    %211 = vector.shape_cast %210 : vector<1x128xf32> to vector<128xf32>
    %212 = vector.shape_cast %211 : vector<128xf32> to vector<1x128xf32>
    %213 = vector.broadcast %212 : vector<1x128xf32> to vector<16x128xf32>
    %214 = arith.addf %209, %213 : vector<16x128xf32>
    %c10_52 = arith.constant 10 : index
    %c0_53 = arith.constant 0 : index
    %215 = vector.load %arg12[%c10_52, %c0_53] : memref<21x128xf32, #tpu.memory_space<vmem>>, vector<1x128xf32>
    %216 = vector.shape_cast %215 : vector<1x128xf32> to vector<128xf32>
    %217 = vector.shape_cast %216 : vector<128xf32> to vector<1x128xf32>
    %218 = vector.broadcast %217 : vector<1x128xf32> to vector<16x128xf32>
    %219 = arith.mulf %194, %218 : vector<16x128xf32>
    %c0_54 = arith.constant 0 : index
    %c0_55 = arith.constant 0 : index
    %220 = vector.load %arg13[%c0_54, %c0_55] : memref<1x128xf32, #tpu.memory_space<vmem>>, vector<1x128xf32>
    %221 = vector.shape_cast %220 : vector<1x128xf32> to vector<128xf32>
    %222 = vector.shape_cast %221 : vector<128xf32> to vector<1x128xf32>
    %223 = vector.broadcast %222 : vector<1x128xf32> to vector<16x128xf32>
    %224 = arith.addf %219, %223 : vector<16x128xf32>
    %c120_i32_56 = arith.constant 120 : i32
    %225 = tpu.dynamic_rotate %194 by %c120_i32_56 dim 1 : vector<16x128xf32>, i32 -> vector<16x128xf32>
    %c0_57 = arith.constant 0 : index
    %c0_58 = arith.constant 0 : index
    %226 = vector.load %arg8[%c0_57, %c0_58] : memref<11x128xf32, #tpu.memory_space<vmem>>, vector<1x128xf32>
    %227 = vector.shape_cast %226 : vector<1x128xf32> to vector<128xf32>
    %228 = vector.shape_cast %227 : vector<128xf32> to vector<1x128xf32>
    %229 = vector.broadcast %228 : vector<1x128xf32> to vector<16x128xf32>
    %230 = arith.mulf %225, %229 : vector<16x128xf32>
    %231 = arith.addf %214, %230 : vector<16x128xf32>
    %c5_59 = arith.constant 5 : index
    %c0_60 = arith.constant 0 : index
    %232 = vector.load %arg12[%c5_59, %c0_60] : memref<21x128xf32, #tpu.memory_space<vmem>>, vector<1x128xf32>
    %233 = vector.shape_cast %232 : vector<1x128xf32> to vector<128xf32>
    %234 = vector.shape_cast %233 : vector<128xf32> to vector<1x128xf32>
    %235 = vector.broadcast %234 : vector<1x128xf32> to vector<16x128xf32>
    %236 = arith.mulf %225, %235 : vector<16x128xf32>
    %237 = arith.addf %224, %236 : vector<16x128xf32>
    %c96_i32 = arith.constant 96 : i32
    %238 = tpu.dynamic_rotate %194 by %c96_i32 dim 1 : vector<16x128xf32>, i32 -> vector<16x128xf32>
    %c1_61 = arith.constant 1 : index
    %c0_62 = arith.constant 0 : index
    %239 = vector.load %arg8[%c1_61, %c0_62] : memref<11x128xf32, #tpu.memory_space<vmem>>, vector<1x128xf32>
    %240 = vector.shape_cast %239 : vector<1x128xf32> to vector<128xf32>
    %241 = vector.shape_cast %240 : vector<128xf32> to vector<1x128xf32>
    %242 = vector.broadcast %241 : vector<1x128xf32> to vector<16x128xf32>
    %243 = arith.mulf %238, %242 : vector<16x128xf32>
    %244 = arith.addf %231, %243 : vector<16x128xf32>
    %c6_63 = arith.constant 6 : index
    %c0_64 = arith.constant 0 : index
    %245 = vector.load %arg12[%c6_63, %c0_64] : memref<21x128xf32, #tpu.memory_space<vmem>>, vector<1x128xf32>
    %246 = vector.shape_cast %245 : vector<1x128xf32> to vector<128xf32>
    %247 = vector.shape_cast %246 : vector<128xf32> to vector<1x128xf32>
    %248 = vector.broadcast %247 : vector<1x128xf32> to vector<16x128xf32>
    %249 = arith.mulf %238, %248 : vector<16x128xf32>
    %250 = arith.addf %237, %249 : vector<16x128xf32>
    %c72_i32 = arith.constant 72 : i32
    %251 = tpu.dynamic_rotate %194 by %c72_i32 dim 1 : vector<16x128xf32>, i32 -> vector<16x128xf32>
    %c0_65 = arith.constant 0 : index
    %c0_66 = arith.constant 0 : index
    %252 = vector.load %arg4[%c0_65, %c0_66] : memref<7x128xf32, #tpu.memory_space<vmem>>, vector<1x128xf32>
    %253 = vector.shape_cast %252 : vector<1x128xf32> to vector<128xf32>
    %254 = vector.shape_cast %253 : vector<128xf32> to vector<1x128xf32>
    %255 = vector.broadcast %254 : vector<1x128xf32> to vector<16x128xf32>
    %256 = arith.mulf %251, %255 : vector<16x128xf32>
    %257 = arith.addf %204, %256 : vector<16x128xf32>
    %c2_67 = arith.constant 2 : index
    %c0_68 = arith.constant 0 : index
    %258 = vector.load %arg8[%c2_67, %c0_68] : memref<11x128xf32, #tpu.memory_space<vmem>>, vector<1x128xf32>
    %259 = vector.shape_cast %258 : vector<1x128xf32> to vector<128xf32>
    %260 = vector.shape_cast %259 : vector<128xf32> to vector<1x128xf32>
    %261 = vector.broadcast %260 : vector<1x128xf32> to vector<16x128xf32>
    %262 = arith.mulf %251, %261 : vector<16x128xf32>
    %263 = arith.addf %244, %262 : vector<16x128xf32>
    %c7_69 = arith.constant 7 : index
    %c0_70 = arith.constant 0 : index
    %264 = vector.load %arg12[%c7_69, %c0_70] : memref<21x128xf32, #tpu.memory_space<vmem>>, vector<1x128xf32>
    %265 = vector.shape_cast %264 : vector<1x128xf32> to vector<128xf32>
    %266 = vector.shape_cast %265 : vector<128xf32> to vector<1x128xf32>
    %267 = vector.broadcast %266 : vector<1x128xf32> to vector<16x128xf32>
    %268 = arith.mulf %251, %267 : vector<16x128xf32>
    %269 = arith.addf %250, %268 : vector<16x128xf32>
    %c48_i32 = arith.constant 48 : i32
    %270 = tpu.dynamic_rotate %194 by %c48_i32 dim 1 : vector<16x128xf32>, i32 -> vector<16x128xf32>
    %c1_71 = arith.constant 1 : index
    %c0_72 = arith.constant 0 : index
    %271 = vector.load %arg4[%c1_71, %c0_72] : memref<7x128xf32, #tpu.memory_space<vmem>>, vector<1x128xf32>
    %272 = vector.shape_cast %271 : vector<1x128xf32> to vector<128xf32>
    %273 = vector.shape_cast %272 : vector<128xf32> to vector<1x128xf32>
    %274 = vector.broadcast %273 : vector<1x128xf32> to vector<16x128xf32>
    %275 = arith.mulf %270, %274 : vector<16x128xf32>
    %276 = arith.addf %257, %275 : vector<16x128xf32>
    %c3_73 = arith.constant 3 : index
    %c0_74 = arith.constant 0 : index
    %277 = vector.load %arg8[%c3_73, %c0_74] : memref<11x128xf32, #tpu.memory_space<vmem>>, vector<1x128xf32>
    %278 = vector.shape_cast %277 : vector<1x128xf32> to vector<128xf32>
    %279 = vector.shape_cast %278 : vector<128xf32> to vector<1x128xf32>
    %280 = vector.broadcast %279 : vector<1x128xf32> to vector<16x128xf32>
    %281 = arith.mulf %270, %280 : vector<16x128xf32>
    %282 = arith.addf %263, %281 : vector<16x128xf32>
    %c8_75 = arith.constant 8 : index
    %c0_76 = arith.constant 0 : index
    %283 = vector.load %arg12[%c8_75, %c0_76] : memref<21x128xf32, #tpu.memory_space<vmem>>, vector<1x128xf32>
    %284 = vector.shape_cast %283 : vector<1x128xf32> to vector<128xf32>
    %285 = vector.shape_cast %284 : vector<128xf32> to vector<1x128xf32>
    %286 = vector.broadcast %285 : vector<1x128xf32> to vector<16x128xf32>
    %287 = arith.mulf %270, %286 : vector<16x128xf32>
    %288 = arith.addf %269, %287 : vector<16x128xf32>
    %c24_i32 = arith.constant 24 : i32
    %289 = tpu.dynamic_rotate %194 by %c24_i32 dim 1 : vector<16x128xf32>, i32 -> vector<16x128xf32>
    %c2_77 = arith.constant 2 : index
    %c0_78 = arith.constant 0 : index
    %290 = vector.load %arg4[%c2_77, %c0_78] : memref<7x128xf32, #tpu.memory_space<vmem>>, vector<1x128xf32>
    %291 = vector.shape_cast %290 : vector<1x128xf32> to vector<128xf32>
    %292 = vector.shape_cast %291 : vector<128xf32> to vector<1x128xf32>
    %293 = vector.broadcast %292 : vector<1x128xf32> to vector<16x128xf32>
    %294 = arith.mulf %289, %293 : vector<16x128xf32>
    %295 = arith.addf %276, %294 : vector<16x128xf32>
    %c4_79 = arith.constant 4 : index
    %c0_80 = arith.constant 0 : index
    %296 = vector.load %arg8[%c4_79, %c0_80] : memref<11x128xf32, #tpu.memory_space<vmem>>, vector<1x128xf32>
    %297 = vector.shape_cast %296 : vector<1x128xf32> to vector<128xf32>
    %298 = vector.shape_cast %297 : vector<128xf32> to vector<1x128xf32>
    %299 = vector.broadcast %298 : vector<1x128xf32> to vector<16x128xf32>
    %300 = arith.mulf %289, %299 : vector<16x128xf32>
    %301 = arith.addf %282, %300 : vector<16x128xf32>
    %c9_81 = arith.constant 9 : index
    %c0_82 = arith.constant 0 : index
    %302 = vector.load %arg12[%c9_81, %c0_82] : memref<21x128xf32, #tpu.memory_space<vmem>>, vector<1x128xf32>
    %303 = vector.shape_cast %302 : vector<1x128xf32> to vector<128xf32>
    %304 = vector.shape_cast %303 : vector<128xf32> to vector<1x128xf32>
    %305 = vector.broadcast %304 : vector<1x128xf32> to vector<16x128xf32>
    %306 = arith.mulf %289, %305 : vector<16x128xf32>
    %307 = arith.addf %288, %306 : vector<16x128xf32>
    %c104_i32 = arith.constant 104 : i32
    %308 = tpu.dynamic_rotate %194 by %c104_i32 dim 1 : vector<16x128xf32>, i32 -> vector<16x128xf32>
    %c4_83 = arith.constant 4 : index
    %c0_84 = arith.constant 0 : index
    %309 = vector.load %arg4[%c4_83, %c0_84] : memref<7x128xf32, #tpu.memory_space<vmem>>, vector<1x128xf32>
    %310 = vector.shape_cast %309 : vector<1x128xf32> to vector<128xf32>
    %311 = vector.shape_cast %310 : vector<128xf32> to vector<1x128xf32>
    %312 = vector.broadcast %311 : vector<1x128xf32> to vector<16x128xf32>
    %313 = arith.mulf %308, %312 : vector<16x128xf32>
    %314 = arith.addf %295, %313 : vector<16x128xf32>
    %c6_85 = arith.constant 6 : index
    %c0_86 = arith.constant 0 : index
    %315 = vector.load %arg8[%c6_85, %c0_86] : memref<11x128xf32, #tpu.memory_space<vmem>>, vector<1x128xf32>
    %316 = vector.shape_cast %315 : vector<1x128xf32> to vector<128xf32>
    %317 = vector.shape_cast %316 : vector<128xf32> to vector<1x128xf32>
    %318 = vector.broadcast %317 : vector<1x128xf32> to vector<16x128xf32>
    %319 = arith.mulf %308, %318 : vector<16x128xf32>
    %320 = arith.addf %301, %319 : vector<16x128xf32>
    %c11_87 = arith.constant 11 : index
    %c0_88 = arith.constant 0 : index
    %321 = vector.load %arg12[%c11_87, %c0_88] : memref<21x128xf32, #tpu.memory_space<vmem>>, vector<1x128xf32>
    %322 = vector.shape_cast %321 : vector<1x128xf32> to vector<128xf32>
    %323 = vector.shape_cast %322 : vector<128xf32> to vector<1x128xf32>
    %324 = vector.broadcast %323 : vector<1x128xf32> to vector<16x128xf32>
    %325 = arith.mulf %308, %324 : vector<16x128xf32>
    %326 = arith.addf %307, %325 : vector<16x128xf32>
    %c80_i32 = arith.constant 80 : i32
    %327 = tpu.dynamic_rotate %194 by %c80_i32 dim 1 : vector<16x128xf32>, i32 -> vector<16x128xf32>
    %c5_89 = arith.constant 5 : index
    %c0_90 = arith.constant 0 : index
    %328 = vector.load %arg4[%c5_89, %c0_90] : memref<7x128xf32, #tpu.memory_space<vmem>>, vector<1x128xf32>
    %329 = vector.shape_cast %328 : vector<1x128xf32> to vector<128xf32>
    %330 = vector.shape_cast %329 : vector<128xf32> to vector<1x128xf32>
    %331 = vector.broadcast %330 : vector<1x128xf32> to vector<16x128xf32>
    %332 = arith.mulf %327, %331 : vector<16x128xf32>
    %333 = arith.addf %314, %332 : vector<16x128xf32>
    %c7_91 = arith.constant 7 : index
    %c0_92 = arith.constant 0 : index
    %334 = vector.load %arg8[%c7_91, %c0_92] : memref<11x128xf32, #tpu.memory_space<vmem>>, vector<1x128xf32>
    %335 = vector.shape_cast %334 : vector<1x128xf32> to vector<128xf32>
    %336 = vector.shape_cast %335 : vector<128xf32> to vector<1x128xf32>
    %337 = vector.broadcast %336 : vector<1x128xf32> to vector<16x128xf32>
    %338 = arith.mulf %327, %337 : vector<16x128xf32>
    %339 = arith.addf %320, %338 : vector<16x128xf32>
    %c12_93 = arith.constant 12 : index
    %c0_94 = arith.constant 0 : index
    %340 = vector.load %arg12[%c12_93, %c0_94] : memref<21x128xf32, #tpu.memory_space<vmem>>, vector<1x128xf32>
    %341 = vector.shape_cast %340 : vector<1x128xf32> to vector<128xf32>
    %342 = vector.shape_cast %341 : vector<128xf32> to vector<1x128xf32>
    %343 = vector.broadcast %342 : vector<1x128xf32> to vector<16x128xf32>
    %344 = arith.mulf %327, %343 : vector<16x128xf32>
    %345 = arith.addf %326, %344 : vector<16x128xf32>
    %c56_i32 = arith.constant 56 : i32
    %346 = tpu.dynamic_rotate %194 by %c56_i32 dim 1 : vector<16x128xf32>, i32 -> vector<16x128xf32>
    %c6_95 = arith.constant 6 : index
    %c0_96 = arith.constant 0 : index
    %347 = vector.load %arg4[%c6_95, %c0_96] : memref<7x128xf32, #tpu.memory_space<vmem>>, vector<1x128xf32>
    %348 = vector.shape_cast %347 : vector<1x128xf32> to vector<128xf32>
    %349 = vector.shape_cast %348 : vector<128xf32> to vector<1x128xf32>
    %350 = vector.broadcast %349 : vector<1x128xf32> to vector<16x128xf32>
    %351 = arith.mulf %346, %350 : vector<16x128xf32>
    %352 = arith.addf %333, %351 : vector<16x128xf32>
    %c8_97 = arith.constant 8 : index
    %c0_98 = arith.constant 0 : index
    %353 = vector.load %arg8[%c8_97, %c0_98] : memref<11x128xf32, #tpu.memory_space<vmem>>, vector<1x128xf32>
    %354 = vector.shape_cast %353 : vector<1x128xf32> to vector<128xf32>
    %355 = vector.shape_cast %354 : vector<128xf32> to vector<1x128xf32>
    %356 = vector.broadcast %355 : vector<1x128xf32> to vector<16x128xf32>
    %357 = arith.mulf %346, %356 : vector<16x128xf32>
    %358 = arith.addf %339, %357 : vector<16x128xf32>
    %c13_99 = arith.constant 13 : index
    %c0_100 = arith.constant 0 : index
    %359 = vector.load %arg12[%c13_99, %c0_100] : memref<21x128xf32, #tpu.memory_space<vmem>>, vector<1x128xf32>
    %360 = vector.shape_cast %359 : vector<1x128xf32> to vector<128xf32>
    %361 = vector.shape_cast %360 : vector<128xf32> to vector<1x128xf32>
    %362 = vector.broadcast %361 : vector<1x128xf32> to vector<16x128xf32>
    %363 = arith.mulf %346, %362 : vector<16x128xf32>
    %364 = arith.addf %345, %363 : vector<16x128xf32>
    %c32_i32 = arith.constant 32 : i32
    %365 = tpu.dynamic_rotate %194 by %c32_i32 dim 1 : vector<16x128xf32>, i32 -> vector<16x128xf32>
    %c9_101 = arith.constant 9 : index
    %c0_102 = arith.constant 0 : index
    %366 = vector.load %arg8[%c9_101, %c0_102] : memref<11x128xf32, #tpu.memory_space<vmem>>, vector<1x128xf32>
    %367 = vector.shape_cast %366 : vector<1x128xf32> to vector<128xf32>
    %368 = vector.shape_cast %367 : vector<128xf32> to vector<1x128xf32>
    %369 = vector.broadcast %368 : vector<1x128xf32> to vector<16x128xf32>
    %370 = arith.mulf %365, %369 : vector<16x128xf32>
    %371 = arith.addf %358, %370 : vector<16x128xf32>
    %c14_103 = arith.constant 14 : index
    %c0_104 = arith.constant 0 : index
    %372 = vector.load %arg12[%c14_103, %c0_104] : memref<21x128xf32, #tpu.memory_space<vmem>>, vector<1x128xf32>
    %373 = vector.shape_cast %372 : vector<1x128xf32> to vector<128xf32>
    %374 = vector.shape_cast %373 : vector<128xf32> to vector<1x128xf32>
    %375 = vector.broadcast %374 : vector<1x128xf32> to vector<16x128xf32>
    %376 = arith.mulf %365, %375 : vector<16x128xf32>
    %377 = arith.addf %364, %376 : vector<16x128xf32>
    %c8_i32_105 = arith.constant 8 : i32
    %378 = tpu.dynamic_rotate %194 by %c8_i32_105 dim 1 : vector<16x128xf32>, i32 -> vector<16x128xf32>
    %c10_106 = arith.constant 10 : index
    %c0_107 = arith.constant 0 : index
    %379 = vector.load %arg8[%c10_106, %c0_107] : memref<11x128xf32, #tpu.memory_space<vmem>>, vector<1x128xf32>
    %380 = vector.shape_cast %379 : vector<1x128xf32> to vector<128xf32>
    %381 = vector.shape_cast %380 : vector<128xf32> to vector<1x128xf32>
    %382 = vector.broadcast %381 : vector<1x128xf32> to vector<16x128xf32>
    %383 = arith.mulf %378, %382 : vector<16x128xf32>
    %384 = arith.addf %371, %383 : vector<16x128xf32>
    %c15_108 = arith.constant 15 : index
    %c0_109 = arith.constant 0 : index
    %385 = vector.load %arg12[%c15_108, %c0_109] : memref<21x128xf32, #tpu.memory_space<vmem>>, vector<1x128xf32>
    %386 = vector.shape_cast %385 : vector<1x128xf32> to vector<128xf32>
    %387 = vector.shape_cast %386 : vector<128xf32> to vector<1x128xf32>
    %388 = vector.broadcast %387 : vector<1x128xf32> to vector<16x128xf32>
    %389 = arith.mulf %378, %388 : vector<16x128xf32>
    %390 = arith.addf %377, %389 : vector<16x128xf32>
    %c32 = arith.constant 32 : index
    %c0_110 = arith.constant 0 : index
    %391 = vector.load %arg20[%c32, %c0_110] : memref<80x128xf32, #tpu.memory_space<vmem>>, vector<16x128xf32>
    tpu.vector_store %arg20[%c32, %c0_110], %352 {strides = array<i32>} : memref<80x128xf32, #tpu.memory_space<vmem>>, vector<16x128xf32>,
    %c3_111 = arith.constant 3 : index
    %c0_112 = arith.constant 0 : index
    %392 = vector.load %arg6[%c3_111, %c0_112] : memref<7x128xf32, #tpu.memory_space<vmem>>, vector<1x128xf32>
    %393 = vector.shape_cast %392 : vector<1x128xf32> to vector<128xf32>
    %394 = vector.shape_cast %393 : vector<128xf32> to vector<1x128xf32>
    %395 = vector.broadcast %394 : vector<1x128xf32> to vector<16x128xf32>
    %396 = arith.mulf %352, %395 : vector<16x128xf32>
    %c0_113 = arith.constant 0 : index
    %c0_114 = arith.constant 0 : index
    %397 = vector.load %arg7[%c0_113, %c0_114] : memref<1x128xf32, #tpu.memory_space<vmem>>, vector<1x128xf32>
    %398 = vector.shape_cast %397 : vector<1x128xf32> to vector<128xf32>
    %399 = vector.shape_cast %398 : vector<128xf32> to vector<1x128xf32>
    %400 = vector.broadcast %399 : vector<1x128xf32> to vector<16x128xf32>
    %401 = arith.addf %396, %400 : vector<16x128xf32>
    %c23_115 = arith.constant 23 : index
    %c0_116 = arith.constant 0 : index
    %402 = vector.load %arg20[%c23_115, %c0_116] : memref<80x128xf32, #tpu.memory_space<vmem>>, vector<16x128xf32>
    %c0_117 = arith.constant 0 : index
    %c0_118 = arith.constant 0 : index
    %403 = vector.load %arg6[%c0_117, %c0_118] : memref<7x128xf32, #tpu.memory_space<vmem>>, vector<1x128xf32>
    %404 = vector.shape_cast %403 : vector<1x128xf32> to vector<128xf32>
    %405 = vector.shape_cast %404 : vector<128xf32> to vector<1x128xf32>
    %406 = vector.broadcast %405 : vector<1x128xf32> to vector<16x128xf32>
    %407 = arith.mulf %402, %406 : vector<16x128xf32>
    %408 = arith.addf %401, %407 : vector<16x128xf32>
    %c26 = arith.constant 26 : index
    %c0_119 = arith.constant 0 : index
    %409 = vector.load %arg20[%c26, %c0_119] : memref<80x128xf32, #tpu.memory_space<vmem>>, vector<16x128xf32>
    %c1_120 = arith.constant 1 : index
    %c0_121 = arith.constant 0 : index
    %410 = vector.load %arg6[%c1_120, %c0_121] : memref<7x128xf32, #tpu.memory_space<vmem>>, vector<1x128xf32>
    %411 = vector.shape_cast %410 : vector<1x128xf32> to vector<128xf32>
    %412 = vector.shape_cast %411 : vector<128xf32> to vector<1x128xf32>
    %413 = vector.broadcast %412 : vector<1x128xf32> to vector<16x128xf32>
    %414 = arith.mulf %409, %413 : vector<16x128xf32>
    %415 = arith.addf %408, %414 : vector<16x128xf32>
    %c29 = arith.constant 29 : index
    %c0_122 = arith.constant 0 : index
    %416 = vector.load %arg20[%c29, %c0_122] : memref<80x128xf32, #tpu.memory_space<vmem>>, vector<16x128xf32>
    %c2_123 = arith.constant 2 : index
    %c0_124 = arith.constant 0 : index
    %417 = vector.load %arg6[%c2_123, %c0_124] : memref<7x128xf32, #tpu.memory_space<vmem>>, vector<1x128xf32>
    %418 = vector.shape_cast %417 : vector<1x128xf32> to vector<128xf32>
    %419 = vector.shape_cast %418 : vector<128xf32> to vector<1x128xf32>
    %420 = vector.broadcast %419 : vector<1x128xf32> to vector<16x128xf32>
    %421 = arith.mulf %416, %420 : vector<16x128xf32>
    %422 = arith.addf %415, %421 : vector<16x128xf32>
    %c35 = arith.constant 35 : index
    %c0_125 = arith.constant 0 : index
    %423 = vector.load %arg20[%c35, %c0_125] : memref<80x128xf32, #tpu.memory_space<vmem>>, vector<16x128xf32>
    %c4_126 = arith.constant 4 : index
    %c0_127 = arith.constant 0 : index
    %424 = vector.load %arg6[%c4_126, %c0_127] : memref<7x128xf32, #tpu.memory_space<vmem>>, vector<1x128xf32>
    %425 = vector.shape_cast %424 : vector<1x128xf32> to vector<128xf32>
    %426 = vector.shape_cast %425 : vector<128xf32> to vector<1x128xf32>
    %427 = vector.broadcast %426 : vector<1x128xf32> to vector<16x128xf32>
    %428 = arith.mulf %423, %427 : vector<16x128xf32>
    %429 = arith.addf %422, %428 : vector<16x128xf32>
    %c38 = arith.constant 38 : index
    %c0_128 = arith.constant 0 : index
    %430 = vector.load %arg20[%c38, %c0_128] : memref<80x128xf32, #tpu.memory_space<vmem>>, vector<16x128xf32>
    %c5_129 = arith.constant 5 : index
    %c0_130 = arith.constant 0 : index
    %431 = vector.load %arg6[%c5_129, %c0_130] : memref<7x128xf32, #tpu.memory_space<vmem>>, vector<1x128xf32>
    %432 = vector.shape_cast %431 : vector<1x128xf32> to vector<128xf32>
    %433 = vector.shape_cast %432 : vector<128xf32> to vector<1x128xf32>
    %434 = vector.broadcast %433 : vector<1x128xf32> to vector<16x128xf32>
    %435 = arith.mulf %430, %434 : vector<16x128xf32>
    %436 = arith.addf %429, %435 : vector<16x128xf32>
    %c41 = arith.constant 41 : index
    %c0_131 = arith.constant 0 : index
    %437 = vector.load %arg20[%c41, %c0_131] : memref<80x128xf32, #tpu.memory_space<vmem>>, vector<16x128xf32>
    %c6_132 = arith.constant 6 : index
    %c0_133 = arith.constant 0 : index
    %438 = vector.load %arg6[%c6_132, %c0_133] : memref<7x128xf32, #tpu.memory_space<vmem>>, vector<1x128xf32>
    %439 = vector.shape_cast %438 : vector<1x128xf32> to vector<128xf32>
    %440 = vector.shape_cast %439 : vector<128xf32> to vector<1x128xf32>
    %441 = vector.broadcast %440 : vector<1x128xf32> to vector<16x128xf32>
    %442 = arith.mulf %437, %441 : vector<16x128xf32>
    %443 = arith.addf %436, %442 : vector<16x128xf32>
    %444 = arith.addf %194, %443 : vector<16x128xf32>
    %c32_134 = arith.constant 32 : index
    %c0_135 = arith.constant 0 : index
    %445 = vector.load %arg20[%c32_134, %c0_135] : memref<80x128xf32, #tpu.memory_space<vmem>>, vector<16x128xf32>
    tpu.vector_store %arg20[%c32_134, %c0_135], %384 {strides = array<i32>} : memref<80x128xf32, #tpu.memory_space<vmem>>, vector<16x128xf32>,
    %c5_136 = arith.constant 5 : index
    %c0_137 = arith.constant 0 : index
    %446 = vector.load %arg10[%c5_136, %c0_137] : memref<11x128xf32, #tpu.memory_space<vmem>>, vector<1x128xf32>
    %447 = vector.shape_cast %446 : vector<1x128xf32> to vector<128xf32>
    %448 = vector.shape_cast %447 : vector<128xf32> to vector<1x128xf32>
    %449 = vector.broadcast %448 : vector<1x128xf32> to vector<16x128xf32>
    %450 = arith.mulf %384, %449 : vector<16x128xf32>
    %c0_138 = arith.constant 0 : index
    %c0_139 = arith.constant 0 : index
    %451 = vector.load %arg11[%c0_138, %c0_139] : memref<1x128xf32, #tpu.memory_space<vmem>>, vector<1x128xf32>
    %452 = vector.shape_cast %451 : vector<1x128xf32> to vector<128xf32>
    %453 = vector.shape_cast %452 : vector<128xf32> to vector<1x128xf32>
    %454 = vector.broadcast %453 : vector<1x128xf32> to vector<16x128xf32>
    %455 = arith.addf %450, %454 : vector<16x128xf32>
    %c17_140 = arith.constant 17 : index
    %c0_141 = arith.constant 0 : index
    %456 = vector.load %arg20[%c17_140, %c0_141] : memref<80x128xf32, #tpu.memory_space<vmem>>, vector<16x128xf32>
    %c0_142 = arith.constant 0 : index
    %c0_143 = arith.constant 0 : index
    %457 = vector.load %arg10[%c0_142, %c0_143] : memref<11x128xf32, #tpu.memory_space<vmem>>, vector<1x128xf32>
    %458 = vector.shape_cast %457 : vector<1x128xf32> to vector<128xf32>
    %459 = vector.shape_cast %458 : vector<128xf32> to vector<1x128xf32>
    %460 = vector.broadcast %459 : vector<1x128xf32> to vector<16x128xf32>
    %461 = arith.mulf %456, %460 : vector<16x128xf32>
    %462 = arith.addf %455, %461 : vector<16x128xf32>
    %c20_144 = arith.constant 20 : index
    %c0_145 = arith.constant 0 : index
    %463 = vector.load %arg20[%c20_144, %c0_145] : memref<80x128xf32, #tpu.memory_space<vmem>>, vector<16x128xf32>
    %c1_146 = arith.constant 1 : index
    %c0_147 = arith.constant 0 : index
    %464 = vector.load %arg10[%c1_146, %c0_147] : memref<11x128xf32, #tpu.memory_space<vmem>>, vector<1x128xf32>
    %465 = vector.shape_cast %464 : vector<1x128xf32> to vector<128xf32>
    %466 = vector.shape_cast %465 : vector<128xf32> to vector<1x128xf32>
    %467 = vector.broadcast %466 : vector<1x128xf32> to vector<16x128xf32>
    %468 = arith.mulf %463, %467 : vector<16x128xf32>
    %469 = arith.addf %462, %468 : vector<16x128xf32>
    %c23_148 = arith.constant 23 : index
    %c0_149 = arith.constant 0 : index
    %470 = vector.load %arg20[%c23_148, %c0_149] : memref<80x128xf32, #tpu.memory_space<vmem>>, vector<16x128xf32>
    %c2_150 = arith.constant 2 : index
    %c0_151 = arith.constant 0 : index
    %471 = vector.load %arg10[%c2_150, %c0_151] : memref<11x128xf32, #tpu.memory_space<vmem>>, vector<1x128xf32>
    %472 = vector.shape_cast %471 : vector<1x128xf32> to vector<128xf32>
    %473 = vector.shape_cast %472 : vector<128xf32> to vector<1x128xf32>
    %474 = vector.broadcast %473 : vector<1x128xf32> to vector<16x128xf32>
    %475 = arith.mulf %470, %474 : vector<16x128xf32>
    %476 = arith.addf %469, %475 : vector<16x128xf32>
    %c26_152 = arith.constant 26 : index
    %c0_153 = arith.constant 0 : index
    %477 = vector.load %arg20[%c26_152, %c0_153] : memref<80x128xf32, #tpu.memory_space<vmem>>, vector<16x128xf32>
    %c3_154 = arith.constant 3 : index
    %c0_155 = arith.constant 0 : index
    %478 = vector.load %arg10[%c3_154, %c0_155] : memref<11x128xf32, #tpu.memory_space<vmem>>, vector<1x128xf32>
    %479 = vector.shape_cast %478 : vector<1x128xf32> to vector<128xf32>
    %480 = vector.shape_cast %479 : vector<128xf32> to vector<1x128xf32>
    %481 = vector.broadcast %480 : vector<1x128xf32> to vector<16x128xf32>
    %482 = arith.mulf %477, %481 : vector<16x128xf32>
    %483 = arith.addf %476, %482 : vector<16x128xf32>
    %c29_156 = arith.constant 29 : index
    %c0_157 = arith.constant 0 : index
    %484 = vector.load %arg20[%c29_156, %c0_157] : memref<80x128xf32, #tpu.memory_space<vmem>>, vector<16x128xf32>
    %c4_158 = arith.constant 4 : index
    %c0_159 = arith.constant 0 : index
    %485 = vector.load %arg10[%c4_158, %c0_159] : memref<11x128xf32, #tpu.memory_space<vmem>>, vector<1x128xf32>
    %486 = vector.shape_cast %485 : vector<1x128xf32> to vector<128xf32>
    %487 = vector.shape_cast %486 : vector<128xf32> to vector<1x128xf32>
    %488 = vector.broadcast %487 : vector<1x128xf32> to vector<16x128xf32>
    %489 = arith.mulf %484, %488 : vector<16x128xf32>
    %490 = arith.addf %483, %489 : vector<16x128xf32>
    %c35_160 = arith.constant 35 : index
    %c0_161 = arith.constant 0 : index
    %491 = vector.load %arg20[%c35_160, %c0_161] : memref<80x128xf32, #tpu.memory_space<vmem>>, vector<16x128xf32>
    %c6_162 = arith.constant 6 : index
    %c0_163 = arith.constant 0 : index
    %492 = vector.load %arg10[%c6_162, %c0_163] : memref<11x128xf32, #tpu.memory_space<vmem>>, vector<1x128xf32>
    %493 = vector.shape_cast %492 : vector<1x128xf32> to vector<128xf32>
    %494 = vector.shape_cast %493 : vector<128xf32> to vector<1x128xf32>
    %495 = vector.broadcast %494 : vector<1x128xf32> to vector<16x128xf32>
    %496 = arith.mulf %491, %495 : vector<16x128xf32>
    %497 = arith.addf %490, %496 : vector<16x128xf32>
    %c38_164 = arith.constant 38 : index
    %c0_165 = arith.constant 0 : index
    %498 = vector.load %arg20[%c38_164, %c0_165] : memref<80x128xf32, #tpu.memory_space<vmem>>, vector<16x128xf32>
    %c7_166 = arith.constant 7 : index
    %c0_167 = arith.constant 0 : index
    %499 = vector.load %arg10[%c7_166, %c0_167] : memref<11x128xf32, #tpu.memory_space<vmem>>, vector<1x128xf32>
    %500 = vector.shape_cast %499 : vector<1x128xf32> to vector<128xf32>
    %501 = vector.shape_cast %500 : vector<128xf32> to vector<1x128xf32>
    %502 = vector.broadcast %501 : vector<1x128xf32> to vector<16x128xf32>
    %503 = arith.mulf %498, %502 : vector<16x128xf32>
    %504 = arith.addf %497, %503 : vector<16x128xf32>
    %c41_168 = arith.constant 41 : index
    %c0_169 = arith.constant 0 : index
    %505 = vector.load %arg20[%c41_168, %c0_169] : memref<80x128xf32, #tpu.memory_space<vmem>>, vector<16x128xf32>
    %c8_170 = arith.constant 8 : index
    %c0_171 = arith.constant 0 : index
    %506 = vector.load %arg10[%c8_170, %c0_171] : memref<11x128xf32, #tpu.memory_space<vmem>>, vector<1x128xf32>
    %507 = vector.shape_cast %506 : vector<1x128xf32> to vector<128xf32>
    %508 = vector.shape_cast %507 : vector<128xf32> to vector<1x128xf32>
    %509 = vector.broadcast %508 : vector<1x128xf32> to vector<16x128xf32>
    %510 = arith.mulf %505, %509 : vector<16x128xf32>
    %511 = arith.addf %504, %510 : vector<16x128xf32>
    %c44 = arith.constant 44 : index
    %c0_172 = arith.constant 0 : index
    %512 = vector.load %arg20[%c44, %c0_172] : memref<80x128xf32, #tpu.memory_space<vmem>>, vector<16x128xf32>
    %c9_173 = arith.constant 9 : index
    %c0_174 = arith.constant 0 : index
    %513 = vector.load %arg10[%c9_173, %c0_174] : memref<11x128xf32, #tpu.memory_space<vmem>>, vector<1x128xf32>
    %514 = vector.shape_cast %513 : vector<1x128xf32> to vector<128xf32>
    %515 = vector.shape_cast %514 : vector<128xf32> to vector<1x128xf32>
    %516 = vector.broadcast %515 : vector<1x128xf32> to vector<16x128xf32>
    %517 = arith.mulf %512, %516 : vector<16x128xf32>
    %518 = arith.addf %511, %517 : vector<16x128xf32>
    %c47 = arith.constant 47 : index
    %c0_175 = arith.constant 0 : index
    %519 = vector.load %arg20[%c47, %c0_175] : memref<80x128xf32, #tpu.memory_space<vmem>>, vector<16x128xf32>
    %c10_176 = arith.constant 10 : index
    %c0_177 = arith.constant 0 : index
    %520 = vector.load %arg10[%c10_176, %c0_177] : memref<11x128xf32, #tpu.memory_space<vmem>>, vector<1x128xf32>
    %521 = vector.shape_cast %520 : vector<1x128xf32> to vector<128xf32>
    %522 = vector.shape_cast %521 : vector<128xf32> to vector<1x128xf32>
    %523 = vector.broadcast %522 : vector<1x128xf32> to vector<16x128xf32>
    %524 = arith.mulf %519, %523 : vector<16x128xf32>
    %525 = arith.addf %518, %524 : vector<16x128xf32>
    %526 = arith.addf %444, %525 : vector<16x128xf32>
    %c32_178 = arith.constant 32 : index
    %c0_179 = arith.constant 0 : index
    %527 = vector.load %arg20[%c32_178, %c0_179] : memref<80x128xf32, #tpu.memory_space<vmem>>, vector<16x128xf32>
    tpu.vector_store %arg20[%c32_178, %c0_179], %390 {strides = array<i32>} : memref<80x128xf32, #tpu.memory_space<vmem>>, vector<16x128xf32>,
    %c10_180 = arith.constant 10 : index
    %c0_181 = arith.constant 0 : index
    %528 = vector.load %arg14[%c10_180, %c0_181] : memref<21x128xf32, #tpu.memory_space<vmem>>, vector<1x128xf32>
    %529 = vector.shape_cast %528 : vector<1x128xf32> to vector<128xf32>
    %530 = vector.shape_cast %529 : vector<128xf32> to vector<1x128xf32>
    %531 = vector.broadcast %530 : vector<1x128xf32> to vector<16x128xf32>
    %532 = arith.mulf %390, %531 : vector<16x128xf32>
    %c0_182 = arith.constant 0 : index
    %c0_183 = arith.constant 0 : index
    %533 = vector.load %arg15[%c0_182, %c0_183] : memref<1x128xf32, #tpu.memory_space<vmem>>, vector<1x128xf32>
    %534 = vector.shape_cast %533 : vector<1x128xf32> to vector<128xf32>
    %535 = vector.shape_cast %534 : vector<128xf32> to vector<1x128xf32>
    %536 = vector.broadcast %535 : vector<1x128xf32> to vector<16x128xf32>
    %537 = arith.addf %532, %536 : vector<16x128xf32>
    %c17_184 = arith.constant 17 : index
    %c0_185 = arith.constant 0 : index
    %538 = vector.load %arg20[%c17_184, %c0_185] : memref<80x128xf32, #tpu.memory_space<vmem>>, vector<16x128xf32>
    %c5_186 = arith.constant 5 : index
    %c0_187 = arith.constant 0 : index
    %539 = vector.load %arg14[%c5_186, %c0_187] : memref<21x128xf32, #tpu.memory_space<vmem>>, vector<1x128xf32>
    %540 = vector.shape_cast %539 : vector<1x128xf32> to vector<128xf32>
    %541 = vector.shape_cast %540 : vector<128xf32> to vector<1x128xf32>
    %542 = vector.broadcast %541 : vector<1x128xf32> to vector<16x128xf32>
    %543 = arith.mulf %538, %542 : vector<16x128xf32>
    %544 = arith.addf %537, %543 : vector<16x128xf32>
    %c20_188 = arith.constant 20 : index
    %c0_189 = arith.constant 0 : index
    %545 = vector.load %arg20[%c20_188, %c0_189] : memref<80x128xf32, #tpu.memory_space<vmem>>, vector<16x128xf32>
    %c6_190 = arith.constant 6 : index
    %c0_191 = arith.constant 0 : index
    %546 = vector.load %arg14[%c6_190, %c0_191] : memref<21x128xf32, #tpu.memory_space<vmem>>, vector<1x128xf32>
    %547 = vector.shape_cast %546 : vector<1x128xf32> to vector<128xf32>
    %548 = vector.shape_cast %547 : vector<128xf32> to vector<1x128xf32>
    %549 = vector.broadcast %548 : vector<1x128xf32> to vector<16x128xf32>
    %550 = arith.mulf %545, %549 : vector<16x128xf32>
    %551 = arith.addf %544, %550 : vector<16x128xf32>
    %c23_192 = arith.constant 23 : index
    %c0_193 = arith.constant 0 : index
    %552 = vector.load %arg20[%c23_192, %c0_193] : memref<80x128xf32, #tpu.memory_space<vmem>>, vector<16x128xf32>
    %c7_194 = arith.constant 7 : index
    %c0_195 = arith.constant 0 : index
    %553 = vector.load %arg14[%c7_194, %c0_195] : memref<21x128xf32, #tpu.memory_space<vmem>>, vector<1x128xf32>
    %554 = vector.shape_cast %553 : vector<1x128xf32> to vector<128xf32>
    %555 = vector.shape_cast %554 : vector<128xf32> to vector<1x128xf32>
    %556 = vector.broadcast %555 : vector<1x128xf32> to vector<16x128xf32>
    %557 = arith.mulf %552, %556 : vector<16x128xf32>
    %558 = arith.addf %551, %557 : vector<16x128xf32>
    %c26_196 = arith.constant 26 : index
    %c0_197 = arith.constant 0 : index
    %559 = vector.load %arg20[%c26_196, %c0_197] : memref<80x128xf32, #tpu.memory_space<vmem>>, vector<16x128xf32>
    %c8_198 = arith.constant 8 : index
    %c0_199 = arith.constant 0 : index
    %560 = vector.load %arg14[%c8_198, %c0_199] : memref<21x128xf32, #tpu.memory_space<vmem>>, vector<1x128xf32>
    %561 = vector.shape_cast %560 : vector<1x128xf32> to vector<128xf32>
    %562 = vector.shape_cast %561 : vector<128xf32> to vector<1x128xf32>
    %563 = vector.broadcast %562 : vector<1x128xf32> to vector<16x128xf32>
    %564 = arith.mulf %559, %563 : vector<16x128xf32>
    %565 = arith.addf %558, %564 : vector<16x128xf32>
    %c29_200 = arith.constant 29 : index
    %c0_201 = arith.constant 0 : index
    %566 = vector.load %arg20[%c29_200, %c0_201] : memref<80x128xf32, #tpu.memory_space<vmem>>, vector<16x128xf32>
    %c9_202 = arith.constant 9 : index
    %c0_203 = arith.constant 0 : index
    %567 = vector.load %arg14[%c9_202, %c0_203] : memref<21x128xf32, #tpu.memory_space<vmem>>, vector<1x128xf32>
    %568 = vector.shape_cast %567 : vector<1x128xf32> to vector<128xf32>
    %569 = vector.shape_cast %568 : vector<128xf32> to vector<1x128xf32>
    %570 = vector.broadcast %569 : vector<1x128xf32> to vector<16x128xf32>
    %571 = arith.mulf %566, %570 : vector<16x128xf32>
    %572 = arith.addf %565, %571 : vector<16x128xf32>
    %c35_204 = arith.constant 35 : index
    %c0_205 = arith.constant 0 : index
    %573 = vector.load %arg20[%c35_204, %c0_205] : memref<80x128xf32, #tpu.memory_space<vmem>>, vector<16x128xf32>
    %c11_206 = arith.constant 11 : index
    %c0_207 = arith.constant 0 : index
    %574 = vector.load %arg14[%c11_206, %c0_207] : memref<21x128xf32, #tpu.memory_space<vmem>>, vector<1x128xf32>
    %575 = vector.shape_cast %574 : vector<1x128xf32> to vector<128xf32>
    %576 = vector.shape_cast %575 : vector<128xf32> to vector<1x128xf32>
    %577 = vector.broadcast %576 : vector<1x128xf32> to vector<16x128xf32>
    %578 = arith.mulf %573, %577 : vector<16x128xf32>
    %579 = arith.addf %572, %578 : vector<16x128xf32>
    %c38_208 = arith.constant 38 : index
    %c0_209 = arith.constant 0 : index
    %580 = vector.load %arg20[%c38_208, %c0_209] : memref<80x128xf32, #tpu.memory_space<vmem>>, vector<16x128xf32>
    %c12_210 = arith.constant 12 : index
    %c0_211 = arith.constant 0 : index
    %581 = vector.load %arg14[%c12_210, %c0_211] : memref<21x128xf32, #tpu.memory_space<vmem>>, vector<1x128xf32>
    %582 = vector.shape_cast %581 : vector<1x128xf32> to vector<128xf32>
    %583 = vector.shape_cast %582 : vector<128xf32> to vector<1x128xf32>
    %584 = vector.broadcast %583 : vector<1x128xf32> to vector<16x128xf32>
    %585 = arith.mulf %580, %584 : vector<16x128xf32>
    %586 = arith.addf %579, %585 : vector<16x128xf32>
    %c41_212 = arith.constant 41 : index
    %c0_213 = arith.constant 0 : index
    %587 = vector.load %arg20[%c41_212, %c0_213] : memref<80x128xf32, #tpu.memory_space<vmem>>, vector<16x128xf32>
    %c13_214 = arith.constant 13 : index
    %c0_215 = arith.constant 0 : index
    %588 = vector.load %arg14[%c13_214, %c0_215] : memref<21x128xf32, #tpu.memory_space<vmem>>, vector<1x128xf32>
    %589 = vector.shape_cast %588 : vector<1x128xf32> to vector<128xf32>
    %590 = vector.shape_cast %589 : vector<128xf32> to vector<1x128xf32>
    %591 = vector.broadcast %590 : vector<1x128xf32> to vector<16x128xf32>
    %592 = arith.mulf %587, %591 : vector<16x128xf32>
    %593 = arith.addf %586, %592 : vector<16x128xf32>
    %c44_216 = arith.constant 44 : index
    %c0_217 = arith.constant 0 : index
    %594 = vector.load %arg20[%c44_216, %c0_217] : memref<80x128xf32, #tpu.memory_space<vmem>>, vector<16x128xf32>
    %c14_218 = arith.constant 14 : index
    %c0_219 = arith.constant 0 : index
    %595 = vector.load %arg14[%c14_218, %c0_219] : memref<21x128xf32, #tpu.memory_space<vmem>>, vector<1x128xf32>
    %596 = vector.shape_cast %595 : vector<1x128xf32> to vector<128xf32>
    %597 = vector.shape_cast %596 : vector<128xf32> to vector<1x128xf32>
    %598 = vector.broadcast %597 : vector<1x128xf32> to vector<16x128xf32>
    %599 = arith.mulf %594, %598 : vector<16x128xf32>
    %600 = arith.addf %593, %599 : vector<16x128xf32>
    %c47_220 = arith.constant 47 : index
    %c0_221 = arith.constant 0 : index
    %601 = vector.load %arg20[%c47_220, %c0_221] : memref<80x128xf32, #tpu.memory_space<vmem>>, vector<16x128xf32>
    %c15_222 = arith.constant 15 : index
    %c0_223 = arith.constant 0 : index
    %602 = vector.load %arg14[%c15_222, %c0_223] : memref<21x128xf32, #tpu.memory_space<vmem>>, vector<1x128xf32>
    %603 = vector.shape_cast %602 : vector<1x128xf32> to vector<128xf32>
    %604 = vector.shape_cast %603 : vector<128xf32> to vector<1x128xf32>
    %605 = vector.broadcast %604 : vector<1x128xf32> to vector<16x128xf32>
    %606 = arith.mulf %601, %605 : vector<16x128xf32>
    %607 = arith.addf %600, %606 : vector<16x128xf32>
    %608 = arith.addf %526, %607 : vector<16x128xf32>
    %c7_224 = arith.constant 7 : index
    %c0_225 = arith.constant 0 : index
    %609 = vector.load %arg16[%c7_224, %c0_225] : memref<15x128xf32, #tpu.memory_space<vmem>>, vector<1x128xf32>
    %610 = vector.shape_cast %609 : vector<1x128xf32> to vector<128xf32>
    %611 = vector.shape_cast %610 : vector<128xf32> to vector<1x128xf32>
    %612 = vector.broadcast %611 : vector<1x128xf32> to vector<16x128xf32>
    %613 = arith.mulf %608, %612 : vector<16x128xf32>
    %c0_226 = arith.constant 0 : index
    %c0_227 = arith.constant 0 : index
    %614 = vector.load %arg17[%c0_226, %c0_227] : memref<1x128xf32, #tpu.memory_space<vmem>>, vector<1x128xf32>
    %615 = vector.shape_cast %614 : vector<1x128xf32> to vector<128xf32>
    %616 = vector.shape_cast %615 : vector<128xf32> to vector<1x128xf32>
    %617 = vector.broadcast %616 : vector<1x128xf32> to vector<16x128xf32>
    %618 = arith.addf %613, %617 : vector<16x128xf32>
    %c121_i32 = arith.constant 121 : i32
    %619 = tpu.dynamic_rotate %608 by %c121_i32 dim 1 : vector<16x128xf32>, i32 -> vector<16x128xf32>
    %c0_228 = arith.constant 0 : index
    %c0_229 = arith.constant 0 : index
    %620 = vector.load %arg16[%c0_228, %c0_229] : memref<15x128xf32, #tpu.memory_space<vmem>>, vector<1x128xf32>
    %621 = vector.shape_cast %620 : vector<1x128xf32> to vector<128xf32>
    %622 = vector.shape_cast %621 : vector<128xf32> to vector<1x128xf32>
    %623 = vector.broadcast %622 : vector<1x128xf32> to vector<16x128xf32>
    %624 = arith.mulf %619, %623 : vector<16x128xf32>
    %625 = arith.addf %618, %624 : vector<16x128xf32>
    %c122_i32 = arith.constant 122 : i32
    %626 = tpu.dynamic_rotate %608 by %c122_i32 dim 1 : vector<16x128xf32>, i32 -> vector<16x128xf32>
    %c1_230 = arith.constant 1 : index
    %c0_231 = arith.constant 0 : index
    %627 = vector.load %arg16[%c1_230, %c0_231] : memref<15x128xf32, #tpu.memory_space<vmem>>, vector<1x128xf32>
    %628 = vector.shape_cast %627 : vector<1x128xf32> to vector<128xf32>
    %629 = vector.shape_cast %628 : vector<128xf32> to vector<1x128xf32>
    %630 = vector.broadcast %629 : vector<1x128xf32> to vector<16x128xf32>
    %631 = arith.mulf %626, %630 : vector<16x128xf32>
    %632 = arith.addf %625, %631 : vector<16x128xf32>
    %c123_i32 = arith.constant 123 : i32
    %633 = tpu.dynamic_rotate %608 by %c123_i32 dim 1 : vector<16x128xf32>, i32 -> vector<16x128xf32>
    %c2_232 = arith.constant 2 : index
    %c0_233 = arith.constant 0 : index
    %634 = vector.load %arg16[%c2_232, %c0_233] : memref<15x128xf32, #tpu.memory_space<vmem>>, vector<1x128xf32>
    %635 = vector.shape_cast %634 : vector<1x128xf32> to vector<128xf32>
    %636 = vector.shape_cast %635 : vector<128xf32> to vector<1x128xf32>
    %637 = vector.broadcast %636 : vector<1x128xf32> to vector<16x128xf32>
    %638 = arith.mulf %633, %637 : vector<16x128xf32>
    %639 = arith.addf %632, %638 : vector<16x128xf32>
    %c124_i32 = arith.constant 124 : i32
    %640 = tpu.dynamic_rotate %608 by %c124_i32 dim 1 : vector<16x128xf32>, i32 -> vector<16x128xf32>
    %c3_234 = arith.constant 3 : index
    %c0_235 = arith.constant 0 : index
    %641 = vector.load %arg16[%c3_234, %c0_235] : memref<15x128xf32, #tpu.memory_space<vmem>>, vector<1x128xf32>
    %642 = vector.shape_cast %641 : vector<1x128xf32> to vector<128xf32>
    %643 = vector.shape_cast %642 : vector<128xf32> to vector<1x128xf32>
    %644 = vector.broadcast %643 : vector<1x128xf32> to vector<16x128xf32>
    %645 = arith.mulf %640, %644 : vector<16x128xf32>
    %646 = arith.addf %639, %645 : vector<16x128xf32>
    %c125_i32 = arith.constant 125 : i32
    %647 = tpu.dynamic_rotate %608 by %c125_i32 dim 1 : vector<16x128xf32>, i32 -> vector<16x128xf32>
    %c4_236 = arith.constant 4 : index
    %c0_237 = arith.constant 0 : index
    %648 = vector.load %arg16[%c4_236, %c0_237] : memref<15x128xf32, #tpu.memory_space<vmem>>, vector<1x128xf32>
    %649 = vector.shape_cast %648 : vector<1x128xf32> to vector<128xf32>
    %650 = vector.shape_cast %649 : vector<128xf32> to vector<1x128xf32>
    %651 = vector.broadcast %650 : vector<1x128xf32> to vector<16x128xf32>
    %652 = arith.mulf %647, %651 : vector<16x128xf32>
    %653 = arith.addf %646, %652 : vector<16x128xf32>
    %c126_i32 = arith.constant 126 : i32
    %654 = tpu.dynamic_rotate %608 by %c126_i32 dim 1 : vector<16x128xf32>, i32 -> vector<16x128xf32>
    %c5_238 = arith.constant 5 : index
    %c0_239 = arith.constant 0 : index
    %655 = vector.load %arg16[%c5_238, %c0_239] : memref<15x128xf32, #tpu.memory_space<vmem>>, vector<1x128xf32>
    %656 = vector.shape_cast %655 : vector<1x128xf32> to vector<128xf32>
    %657 = vector.shape_cast %656 : vector<128xf32> to vector<1x128xf32>
    %658 = vector.broadcast %657 : vector<1x128xf32> to vector<16x128xf32>
    %659 = arith.mulf %654, %658 : vector<16x128xf32>
    %660 = arith.addf %653, %659 : vector<16x128xf32>
    %c127_i32 = arith.constant 127 : i32
    %661 = tpu.dynamic_rotate %608 by %c127_i32 dim 1 : vector<16x128xf32>, i32 -> vector<16x128xf32>
    %c6_240 = arith.constant 6 : index
    %c0_241 = arith.constant 0 : index
    %662 = vector.load %arg16[%c6_240, %c0_241] : memref<15x128xf32, #tpu.memory_space<vmem>>, vector<1x128xf32>
    %663 = vector.shape_cast %662 : vector<1x128xf32> to vector<128xf32>
    %664 = vector.shape_cast %663 : vector<128xf32> to vector<1x128xf32>
    %665 = vector.broadcast %664 : vector<1x128xf32> to vector<16x128xf32>
    %666 = arith.mulf %661, %665 : vector<16x128xf32>
    %667 = arith.addf %660, %666 : vector<16x128xf32>
    %c1_i32 = arith.constant 1 : i32
    %668 = tpu.dynamic_rotate %608 by %c1_i32 dim 1 : vector<16x128xf32>, i32 -> vector<16x128xf32>
    %c8_242 = arith.constant 8 : index
    %c0_243 = arith.constant 0 : index
    %669 = vector.load %arg16[%c8_242, %c0_243] : memref<15x128xf32, #tpu.memory_space<vmem>>, vector<1x128xf32>
    %670 = vector.shape_cast %669 : vector<1x128xf32> to vector<128xf32>
    %671 = vector.shape_cast %670 : vector<128xf32> to vector<1x128xf32>
    %672 = vector.broadcast %671 : vector<1x128xf32> to vector<16x128xf32>
    %673 = arith.mulf %668, %672 : vector<16x128xf32>
    %674 = arith.addf %667, %673 : vector<16x128xf32>
    %c2_i32 = arith.constant 2 : i32
    %675 = tpu.dynamic_rotate %608 by %c2_i32 dim 1 : vector<16x128xf32>, i32 -> vector<16x128xf32>
    %c9_244 = arith.constant 9 : index
    %c0_245 = arith.constant 0 : index
    %676 = vector.load %arg16[%c9_244, %c0_245] : memref<15x128xf32, #tpu.memory_space<vmem>>, vector<1x128xf32>
    %677 = vector.shape_cast %676 : vector<1x128xf32> to vector<128xf32>
    %678 = vector.shape_cast %677 : vector<128xf32> to vector<1x128xf32>
    %679 = vector.broadcast %678 : vector<1x128xf32> to vector<16x128xf32>
    %680 = arith.mulf %675, %679 : vector<16x128xf32>
    %681 = arith.addf %674, %680 : vector<16x128xf32>
    %c3_i32 = arith.constant 3 : i32
    %682 = tpu.dynamic_rotate %608 by %c3_i32 dim 1 : vector<16x128xf32>, i32 -> vector<16x128xf32>
    %c10_246 = arith.constant 10 : index
    %c0_247 = arith.constant 0 : index
    %683 = vector.load %arg16[%c10_246, %c0_247] : memref<15x128xf32, #tpu.memory_space<vmem>>, vector<1x128xf32>
    %684 = vector.shape_cast %683 : vector<1x128xf32> to vector<128xf32>
    %685 = vector.shape_cast %684 : vector<128xf32> to vector<1x128xf32>
    %686 = vector.broadcast %685 : vector<1x128xf32> to vector<16x128xf32>
    %687 = arith.mulf %682, %686 : vector<16x128xf32>
    %688 = arith.addf %681, %687 : vector<16x128xf32>
    %c4_i32 = arith.constant 4 : i32
    %689 = tpu.dynamic_rotate %608 by %c4_i32 dim 1 : vector<16x128xf32>, i32 -> vector<16x128xf32>
    %c11_248 = arith.constant 11 : index
    %c0_249 = arith.constant 0 : index
    %690 = vector.load %arg16[%c11_248, %c0_249] : memref<15x128xf32, #tpu.memory_space<vmem>>, vector<1x128xf32>
    %691 = vector.shape_cast %690 : vector<1x128xf32> to vector<128xf32>
    %692 = vector.shape_cast %691 : vector<128xf32> to vector<1x128xf32>
    %693 = vector.broadcast %692 : vector<1x128xf32> to vector<16x128xf32>
    %694 = arith.mulf %689, %693 : vector<16x128xf32>
    %695 = arith.addf %688, %694 : vector<16x128xf32>
    %c5_i32 = arith.constant 5 : i32
    %696 = tpu.dynamic_rotate %608 by %c5_i32 dim 1 : vector<16x128xf32>, i32 -> vector<16x128xf32>
    %c12_250 = arith.constant 12 : index
    %c0_251 = arith.constant 0 : index
    %697 = vector.load %arg16[%c12_250, %c0_251] : memref<15x128xf32, #tpu.memory_space<vmem>>, vector<1x128xf32>
    %698 = vector.shape_cast %697 : vector<1x128xf32> to vector<128xf32>
    %699 = vector.shape_cast %698 : vector<128xf32> to vector<1x128xf32>
    %700 = vector.broadcast %699 : vector<1x128xf32> to vector<16x128xf32>
    %701 = arith.mulf %696, %700 : vector<16x128xf32>
    %702 = arith.addf %695, %701 : vector<16x128xf32>
    %c6_i32 = arith.constant 6 : i32
    %703 = tpu.dynamic_rotate %608 by %c6_i32 dim 1 : vector<16x128xf32>, i32 -> vector<16x128xf32>
    %c13_252 = arith.constant 13 : index
    %c0_253 = arith.constant 0 : index
    %704 = vector.load %arg16[%c13_252, %c0_253] : memref<15x128xf32, #tpu.memory_space<vmem>>, vector<1x128xf32>
    %705 = vector.shape_cast %704 : vector<1x128xf32> to vector<128xf32>
    %706 = vector.shape_cast %705 : vector<128xf32> to vector<1x128xf32>
    %707 = vector.broadcast %706 : vector<1x128xf32> to vector<16x128xf32>
    %708 = arith.mulf %703, %707 : vector<16x128xf32>
    %709 = arith.addf %702, %708 : vector<16x128xf32>
    %c7_i32 = arith.constant 7 : i32
    %710 = tpu.dynamic_rotate %608 by %c7_i32 dim 1 : vector<16x128xf32>, i32 -> vector<16x128xf32>
    %c14_254 = arith.constant 14 : index
    %c0_255 = arith.constant 0 : index
    %711 = vector.load %arg16[%c14_254, %c0_255] : memref<15x128xf32, #tpu.memory_space<vmem>>, vector<1x128xf32>
    %712 = vector.shape_cast %711 : vector<1x128xf32> to vector<128xf32>
    %713 = vector.shape_cast %712 : vector<128xf32> to vector<1x128xf32>
    %714 = vector.broadcast %713 : vector<1x128xf32> to vector<16x128xf32>
    %715 = arith.mulf %710, %714 : vector<16x128xf32>
    %716 = arith.addf %709, %715 : vector<16x128xf32>
    %c0_256 = arith.constant 0 : index
    %c0_257 = arith.constant 0 : index
    %c0_258 = arith.constant 0 : index
    %717 = vector.load %arg1[%c0_256, %c0_257, %c0_258] : memref<1x16x128xf32, #tpu.memory_space<vmem>>, vector<1x16x128xf32>
    %718 = vector.shape_cast %717 : vector<1x16x128xf32> to vector<16x128xf32>
    %719 = arith.mulf %716, %718 : vector<16x128xf32>
    %c0_259 = arith.constant 0 : index
    %c0_260 = arith.constant 0 : index
    %c0_261 = arith.constant 0 : index
    %720 = vector.load %arg18[%c0_259, %c0_260, %c0_261] : memref<1x16x128xf32, #tpu.memory_space<vmem>>, vector<1x16x128xf32>
    %721 = vector.shape_cast %720 : vector<1x16x128xf32> to vector<16x128xf32>
    %722 = vector.shape_cast %719 : vector<16x128xf32> to vector<1x16x128xf32>
    tpu.vector_store %arg18[%c0_259, %c0_260, %c0_261], %722 {strides = array<i32>} : memref<1x16x128xf32, #tpu.memory_space<vmem>>, vector<1x16x128xf32>,
    return
  }
  func.func @transform_0(%arg0: i32) -> (i32, i32, i32) {
    %c0_i32 = arith.constant 0 : i32
    %c0_i32_0 = arith.constant 0 : i32
    %c0_i32_1 = arith.constant 0 : i32
    return %arg0, %c0_i32, %c0_i32_0 : i32, i32, i32
  }
  func.func @transform_1(%arg0: i32) -> (i32, i32) {
    %c0_i32 = arith.constant 0 : i32
    %c0_i32_0 = arith.constant 0 : i32
    %c0_i32_1 = arith.constant 0 : i32
    return %c0_i32, %c0_i32_0 : i32, i32
  }
  func.func @transform_2(%arg0: i32) -> (i32, i32) {
    %c0_i32 = arith.constant 0 : i32
    %c0_i32_0 = arith.constant 0 : i32
    %c0_i32_1 = arith.constant 0 : i32
    return %c0_i32, %c0_i32_0 : i32, i32
  }
  func.func @transform_3(%arg0: i32) -> (i32, i32) {
    %c0_i32 = arith.constant 0 : i32
    %c0_i32_0 = arith.constant 0 : i32
    %c0_i32_1 = arith.constant 0 : i32
    return %c0_i32, %c0_i32_0 : i32, i32
  }
  func.func @transform_4(%arg0: i32) -> (i32, i32) {
    %c0_i32 = arith.constant 0 : i32
    %c0_i32_0 = arith.constant 0 : i32
    %c0_i32_1 = arith.constant 0 : i32
    return %c0_i32, %c0_i32_0 : i32, i32
  }
  func.func @transform_5(%arg0: i32) -> (i32, i32) {
    %c0_i32 = arith.constant 0 : i32
    %c0_i32_0 = arith.constant 0 : i32
    %c0_i32_1 = arith.constant 0 : i32
    return %c0_i32, %c0_i32_0 : i32, i32
  }
  func.func @transform_6(%arg0: i32) -> (i32, i32) {
    %c0_i32 = arith.constant 0 : i32
    %c0_i32_0 = arith.constant 0 : i32
    %c0_i32_1 = arith.constant 0 : i32
    return %c0_i32, %c0_i32_0 : i32, i32
  }
  func.func @transform_7(%arg0: i32) -> (i32, i32) {
    %c0_i32 = arith.constant 0 : i32
    %c0_i32_0 = arith.constant 0 : i32
    %c0_i32_1 = arith.constant 0 : i32
    return %c0_i32, %c0_i32_0 : i32, i32
  }
  func.func @transform_8(%arg0: i32) -> (i32, i32) {
    %c0_i32 = arith.constant 0 : i32
    %c0_i32_0 = arith.constant 0 : i32
    %c0_i32_1 = arith.constant 0 : i32
    return %c0_i32, %c0_i32_0 : i32, i32
  }
  func.func @transform_9(%arg0: i32) -> (i32, i32) {
    %c0_i32 = arith.constant 0 : i32
    %c0_i32_0 = arith.constant 0 : i32
    %c0_i32_1 = arith.constant 0 : i32
    return %c0_i32, %c0_i32_0 : i32, i32
  }
  func.func @transform_10(%arg0: i32) -> (i32, i32) {
    %c0_i32 = arith.constant 0 : i32
    %c0_i32_0 = arith.constant 0 : i32
    %c0_i32_1 = arith.constant 0 : i32
    return %c0_i32, %c0_i32_0 : i32, i32
  }
  func.func @transform_11(%arg0: i32) -> (i32, i32) {
    %c0_i32 = arith.constant 0 : i32
    %c0_i32_0 = arith.constant 0 : i32
    %c0_i32_1 = arith.constant 0 : i32
    return %c0_i32, %c0_i32_0 : i32, i32
  }
  func.func @transform_12(%arg0: i32) -> (i32, i32) {
    %c0_i32 = arith.constant 0 : i32
    %c0_i32_0 = arith.constant 0 : i32
    %c0_i32_1 = arith.constant 0 : i32
    return %c0_i32, %c0_i32_0 : i32, i32
  }
  func.func @transform_13(%arg0: i32) -> (i32, i32) {
    %c0_i32 = arith.constant 0 : i32
    %c0_i32_0 = arith.constant 0 : i32
    %c0_i32_1 = arith.constant 0 : i32
    return %c0_i32, %c0_i32_0 : i32, i32
  }
  func.func @transform_14(%arg0: i32) -> (i32, i32) {
    %c0_i32 = arith.constant 0 : i32
    %c0_i32_0 = arith.constant 0 : i32
    %c0_i32_1 = arith.constant 0 : i32
    return %c0_i32, %c0_i32_0 : i32, i32
  }
  func.func @transform_15(%arg0: i32) -> (i32, i32) {
    %c0_i32 = arith.constant 0 : i32
    %c0_i32_0 = arith.constant 0 : i32
    %c0_i32_1 = arith.constant 0 : i32
    return %c0_i32, %c0_i32_0 : i32, i32
  }
  func.func @transform_16(%arg0: i32) -> (i32, i32) {
    %c0_i32 = arith.constant 0 : i32
    %c0_i32_0 = arith.constant 0 : i32
    %c0_i32_1 = arith.constant 0 : i32
    return %c0_i32, %c0_i32_0 : i32, i32
  }
  func.func @transform_17(%arg0: i32) -> (i32, i32, i32) {
    %c0_i32 = arith.constant 0 : i32
    %c0_i32_0 = arith.constant 0 : i32
    %c0_i32_1 = arith.constant 0 : i32
    return %arg0, %c0_i32, %c0_i32_0 : i32, i32, i32
  }
}

</mosaic_0001>

<bundles_post_ra>
// kernel: tpu_custom_call.1
= control target key start
LH: loop header
LB: loop body
LE: loop exit
PB: predicated region body
PF: predicated region fallthrough
CT: control target
= control target key end

     0   :  { %s4707_s0 = inlined_call_operand.hbm [shape: f32[2,16,128], index: 0, kind: input, shape index: {}]   ;;  %s4708_s1 = inlined_call_operand.hbm [shape: f32[25,128], index: 1, kind: input, shape index: {}]   ;;  %s4709_s2 = inlined_call_operand.hbm [shape: f32[1,128], index: 2, kind: input, shape index: {}]   ;;  %s4710_s3 = inlined_call_operand.hbm [shape: f32[7,128], index: 3, kind: input, shape index: {}]   ;;  %s4711_s4 = inlined_call_operand.hbm [shape: f32[1,128], index: 4, kind: input, shape index: {}]   ;;  %s4712_s5 = inlined_call_operand.hbm [shape: f32[7,128], index: 5, kind: input, shape index: {}]   ;;  %s4713_s6 = inlined_call_operand.hbm [shape: f32[1,128], index: 6, kind: input, shape index: {}]   ;;  %s4714_s7 = inlined_call_operand.hbm [shape: f32[11,128], index: 7, kind: input, shape index: {}]   ;;  %s4715_s8 = inlined_call_operand.hbm [shape: f32[1,128], index: 8, kind: input, shape index: {}]   ;;  %s4716_s9 = inlined_call_operand.vmem [shape: f32[11,128], index: 9, kind: input, shape index: {}]   ;;  %s4717_s10 = inlined_call_operand.vmem [shape: f32[1,128], index: 10, kind: input, shape index: {}]   ;;  %s4718_s11 = inlined_call_operand.hbm [shape: f32[21,128], index: 11, kind: input, shape index: {}]   ;;  %s4719_s12 = inlined_call_operand.vmem [shape: f32[1,128], index: 12, kind: input, shape index: {}]   ;;  %s4720_s13 = inlined_call_operand.hbm [shape: f32[21,128], index: 13, kind: input, shape index: {}]   ;;  %s4721_s14 = inlined_call_operand.vmem [shape: f32[1,128], index: 14, kind: input, shape index: {}]   ;;  %s4722_s15 = inlined_call_operand.hbm [shape: f32[15,128], index: 15, kind: input, shape index: {}]   ;;  %s4723_s16 = inlined_call_operand.vmem [shape: f32[1,128], index: 16, kind: input, shape index: {}]   ;;  %s4724_s17 = inlined_call_operand.hbm [shape: f32[2,16,128], index: 17, kind: output, shape index: {}]  }
   0x1   :  { %4756 = sst [smem:[#allocation47_spill]] %s4707_s0 }
   0x2   :  { %4757 = sst [smem:[#allocation48_spill]] %s4708_s1 }
   0x3   :  { %4758 = sst [smem:[#allocation49_spill]] %s4709_s2 }
   0x4   :  { %4759 = sst [smem:[#allocation50_spill]] %s4710_s3 }
   0x5   :  { %4760 = sst [smem:[#allocation51_spill]] %s4711_s4 }
   0x6   :  { %4761 = sst [smem:[#allocation52_spill]] %s4712_s5 }
   0x7   :  { %4762 = sst [smem:[#allocation53_spill]] %s4713_s6 }
   0x8   :  { %4763 = sst [smem:[#allocation54_spill]] %s4714_s7 }
   0x9   :  { %4764 = sst [smem:[#allocation55_spill]] %s4715_s8 }
   0xa   :  { %4765 = sst [smem:[#allocation56_spill]] %s4717_s10 }
   0xb   :  { %4766 = sst [smem:[#allocation57_spill]] %s4721_s14 }
   0xc   :  { %4767 = sst [smem:[#allocation58_spill]] %s4723_s16 }
   0xd   :  { %4768 = sst [smem:[#allocation59_spill]] %s4724_s17 }
   0xe   :  { %22 = vsyncpa [#allocation5], 0 }
   0xf   :  { %24 = vsyncpa [#allocation5 + $0x1], 0 }
  0x10   :  { %25 = vsyncpa [#allocation8], 0 }
  0x11   :  { %26 = vsyncpa [#allocation11], 0 }
  0x12   :  { %27 = vsyncpa [#allocation14], 0 }
  0x13   :  { %28 = vsyncpa [#allocation17], 0 }
  0x14   :  { %29 = vsyncpa [#allocation20], 0 }
  0x15   :  { %30 = vsyncpa [#allocation23], 0 }
  0x16   :  { %31 = vsyncpa [#allocation6], 0 }
  0x17   :  { %33 = vsyncpa [#allocation6 + $0x1], 0  ;;  %s3828_s24 = smov 0   ;;  %s3830_s25 = smov 0  }
  0x18   :  { %s3832_s26 = smov 0   ;;  %s3834_s27 = smov 0  }
  0x19 LB: > { %s3695_s28 = smov [#allocation7]   ;;  %s3849_s0 = sadd.s32 4294967295, %s3693_s27   ;;  %s3693_s27 = sphi %s3834_s27, %s4867_s27   ;;  %s3689_s26 = sphi %s3832_s26, %s4866_s26   ;;  %s3685_s25 = sphi %s3830_s25, %s4865_s25   ;;  %s3681_s24 = sphi %s3828_s24, %s4864_s24  }
  0x1a   : > { %s444_s29 = sshll.u32 %s3695_s28, 4  ;;  %p2961_p0 = scmp.ge.s32.totalorder %s3693_s27, 1  ;;  %s445_s29 = int_to_ptr.vmem [resolvable:$true] %s444_s29 }
  0x1b   : > { %p4727_p1 = scmp.eq.s32.totalorder %s3849_s0, 0  ;;  %p432_p2 = scmp.lt.s32.totalorder %s3693_s27, 3 }
  0x1c   : > { %s3696_s18 = smov [#allocation10]   ;;  %s3697_s20 = smov [#allocation13]  }
  0x1d   : > { %p3854_p3 = pnand %p2961_p0, %p432_p2  ;;  %s469_s19 = sshll.u32 %s3696_s18, 4  ;;  %s470_s19 = int_to_ptr.vmem [resolvable:$true] %s469_s19 }
  0x1e   : > { %s491_s21 = sshll.u32 %s3697_s20, 4  ;;  %s3302_s23 = scalar_lea.vmem %s445_s29, 512  ;;  %s3867_s21 = int_to_ptr.vmem [resolvable:$true] %s491_s21 }
  0x1f   : > { %s4769_s30 = scalar_select %p3854_p3, 1, 0 }
  0x20   : > { %p3152_p5 = pneg %p3854_p3  ;;  %p3303_p8 = scmp.ne.s32.totalorder %s445_s29, %s3302_s23 }
  0x21   : > { %p3310_p11 = scmp.lt.s32.totalorder %s445_s29, %s445_s29  ;;  %p3311_p12 = scmp.lt.s32.totalorder %s3302_s23, %s3302_s23 }
  0x22   : > { %p3863_p6 = pnand %p3152_p5, %p4727_p1 }
  0x23   : > { %p3312_p13 = por %p3311_p12, %p3310_p11 }
  0x24   : > { %p3871_p7 = pneg %p3863_p6 }
  0x26   : > { %p3305_p9 = pnand %p3303_p8, %p3871_p7 }
  0x28   : > { %p3306_p10 = pneg %p3305_p9 }
  0x2a   : > { %p3313_p0 = pnand %p3312_p13, %p3306_p10 }
  0x2c   : > { %3316 = shalt.err (!%p3313_p0)
}
  0x2d   : > { %s4728_s28 = smov 128   ;;  %s4730_s18 = smov 8  }
  0x2e   : > { %s4772_s16 = sld [smem:[#allocation48_spill]]  ;;  %s3328_s14 = scalar_lea.vmem %s470_s19, 128 }
  0x2f   : > { %p3329_p2 = scmp.ne.s32.totalorder %s470_s19, %s3328_s14  ;;  %p3336_p9 = scmp.lt.s32.totalorder %s470_s19, %s470_s19 }
  0x30   : > { %p3337_p10 = scmp.lt.s32.totalorder %s3328_s14, %s3328_s14 }
  0x31   : > { %p3331_p5 = pnand %p3329_p2, %p3871_p7 }
  0x32   : > { %p3338_p11 = por %p3337_p10, %p3336_p9 }
  0x33   : > { %p3332_p8 = pneg %p3331_p5 }
  0x34   : > { %3155 = dma.hbm_to_vmem [thread:$0]  (!%p3863_p6), %s4772_s16, 512, %s445_s29, [#allocation8], %s4728_s28, %s4728_s28, %s4730_s18  }
  0x35   : > { %p3339_p12 = pnand %p3338_p11, %p3332_p8 }
  0x37   : > { %3342 = shalt.err (!%p3339_p12)
}
  0x38   : > { %s4773_s3 = sld [smem:[#allocation50_spill]]  ;;  %s3354_s16 = scalar_lea.vmem %s3867_s21, 128 }
  0x39   : > { %p3355_p13 = scmp.ne.s32.totalorder %s3867_s21, %s3354_s16  ;;  %p3362_p5 = scmp.lt.s32.totalorder %s3867_s21, %s3867_s21 }
  0x3a   : > { %p3363_p9 = scmp.lt.s32.totalorder %s3354_s16, %s3354_s16 }
  0x3b   : > { %p3357_p0 = pnand %p3355_p13, %p3871_p7 }
  0x3c   : > { %p3364_p8 = por %p3363_p9, %p3362_p5 }
  0x3d   : > { %p3358_p2 = pneg %p3357_p0 }
  0x3e   : > { %3161 = dma.hbm_to_vmem [thread:$0]  (!%p3863_p6), %s4773_s3, 128, %s470_s19, [#allocation11]  }
  0x3f   : > { %p3365_p10 = pnand %p3364_p8, %p3358_p2 }
  0x41   : > { %3368 = shalt.err (!%p3365_p10)
}
  0x42   : > { %s4774_s5 = sld [smem:[#allocation52_spill]]  ;;  %s3700_s17 = smov [#allocation16]  }
  0x43   : > { %s512_s29 = sshll.u32 %s3700_s17, 4  ;;  %s3701_s19 = smov [#allocation19]   ;;  %s513_s29 = int_to_ptr.vmem [resolvable:$true] %s512_s29 }
  0x44   : > { %s542_s20 = sshll.u32 %s3701_s19, 4  ;;  %s3380_s23 = scalar_lea.vmem %s513_s29, 256  ;;  %s543_s20 = int_to_ptr.vmem [resolvable:$true] %s542_s20 }
  0x45   : > { %p3381_p11 = scmp.ne.s32.totalorder %s513_s29, %s3380_s23  ;;  %p3388_p0 = scmp.lt.s32.totalorder %s513_s29, %s513_s29 }
  0x46   : > { %p3389_p2 = scmp.lt.s32.totalorder %s3380_s23, %s3380_s23 }
  0x47   : > { %p3383_p12 = pnand %p3381_p11, %p3871_p7 }
  0x48   : > { %3167 = dma.hbm_to_vmem [thread:$0]  (!%p3863_p6), %s4774_s5, 128, %s3867_s21, [#allocation14]  }
  0x49   : > { %p3384_p13 = pneg %p3383_p12  ;;  %p3390_p5 = por %p3389_p2, %p3388_p0 }
  0x4b   : > { %p3391_p9 = pnand %p3390_p5, %p3384_p13 }
  0x4d   : > { %3394 = shalt.err (!%p3391_p9)
}
  0x4e   : > { %s4775_s7 = sld [smem:[#allocation54_spill]]  ;;  %s3406_s10 = scalar_lea.vmem %s543_s20, 384 }
  0x4f   : > { %p3407_p8 = scmp.ne.s32.totalorder %s543_s20, %s3406_s10  ;;  %p3414_p12 = scmp.lt.s32.totalorder %s543_s20, %s543_s20 }
  0x50   : > { %p3415_p0 = scmp.lt.s32.totalorder %s3406_s10, %s3406_s10 }
  0x51   : > { %p3409_p10 = pnand %p3407_p8, %p3871_p7 }
  0x52   : > { %p3416_p13 = por %p3415_p0, %p3414_p12 }
  0x53   : > { %p3410_p11 = pneg %p3409_p10 }
  0x54   : > { %3173 = dma.hbm_to_vmem [thread:$0]  (!%p3863_p6), %s4775_s7, 256, %s513_s29, [#allocation17], %s4728_s28, %s4728_s28, %s4730_s18  }
  0x55   : > { %p3417_p2 = pnand %p3416_p13, %p3410_p11 }
  0x57   : > { %3420 = shalt.err (!%p3417_p2)
}
  0x58   : > { %3179 = dma.hbm_to_vmem [thread:$0]  (!%p3863_p6), %s4718_s11, 384, %s543_s20, [#allocation20], %s4728_s28, %s4728_s28, %s4730_s18  }
  0x59   : > { %s3702_s29 = smov [#allocation9]   ;;  %s3703_s23 = smov [#allocation12]  }
  0x5a   : > { %s458_s19 = sshll.u32 %s3702_s29, 4  ;;  %s480_s21 = sshll.u32 %s3703_s23, 4  ;;  %s459_s19 = int_to_ptr.vmem [resolvable:$true] %s458_s19  ;;  %s481_s21 = int_to_ptr.vmem [resolvable:$true] %s480_s21 }
  0x5b   : > { %s3432_s16 = scalar_lea.vmem %s459_s19, 16  ;;  %s3439_s10 = scalar_lea.vmem %s459_s19, 32 }
  0x5c   : > { %p3433_p5 = scmp.ne.s32.totalorder %s459_s19, %s3432_s16  ;;  %p3440_p10 = scmp.lt.s32.totalorder %s459_s19, %s459_s19 }
  0x5d   : > { %p3441_p11 = scmp.lt.s32.totalorder %s3439_s10, %s3432_s16 }
  0x5e   : > { %p3435_p9 = pnand %p3433_p5, %p3871_p7 }
  0x5f   : > { %p3442_p12 = por %p3441_p11, %p3440_p10 }
  0x60   : > { %p3436_p8 = pneg %p3435_p9 }
  0x62   : > { %p3443_p0 = pnand %p3442_p12, %p3436_p8 }
  0x64   : > { %3446 = shalt.err (!%p3443_p0)
}
  0x65   : > { %s4776_s2 = sld [smem:[#allocation49_spill]]  ;;  %s3458_s17 = scalar_lea.vmem %s481_s21, 16 }
  0x66   : > { %p3459_p13 = scmp.ne.s32.totalorder %s481_s21, %s3458_s17  ;;  %s3465_s29 = scalar_lea.vmem %s481_s21, 32 }
  0x67   : > { %p3466_p9 = scmp.lt.s32.totalorder %s481_s21, %s481_s21  ;;  %p3467_p4 = scmp.lt.s32.totalorder %s3465_s29, %s3458_s17 }
  0x68   : > { %p3461_p2 = pnand %p3459_p13, %p3871_p7 }
  0x69   : > { %p3468_p1 = por %p3467_p4, %p3466_p9 }
  0x6a   : > { %p3462_p5 = pneg %p3461_p2 }
  0x6b   : > { %3158 = dma.hbm_to_vmem [thread:$0]  (!%p3863_p6), %s4776_s2, 16, %s459_s19, [#allocation8]  }
  0x6c   : > { %p3469_p10 = pnand %p3468_p1, %p3462_p5 }
  0x6e   : > { %3472 = shalt.err (!%p3469_p10)
}
  0x6f   : > { %s4777_s4 = sld [smem:[#allocation51_spill]]  ;;  %s3704_s19 = smov [#allocation15]  }
  0x70   : > { %s502_s10 = sshll.u32 %s3704_s19, 4  ;;  %s3705_s14 = smov [#allocation18]   ;;  %s503_s10 = int_to_ptr.vmem [resolvable:$true] %s502_s10 }
  0x71   : > { %s526_s20 = sshll.u32 %s3705_s14, 4  ;;  %s3484_s28 = scalar_lea.vmem %s503_s10, 16  ;;  %s527_s20 = int_to_ptr.vmem [resolvable:$true] %s526_s20 }
  0x72   : > { %p3485_p8 = scmp.ne.s32.totalorder %s503_s10, %s3484_s28  ;;  %s3491_s17 = scalar_lea.vmem %s503_s10, 32 }
  0x73   : > { %p3492_p1 = scmp.lt.s32.totalorder %s503_s10, %s503_s10  ;;  %p3493_p4 = scmp.lt.s32.totalorder %s3491_s17, %s3484_s28 }
  0x74   : > { %p3487_p11 = pnand %p3485_p8, %p3871_p7 }
  0x75   : > { %3164 = dma.hbm_to_vmem [thread:$0]  (!%p3863_p6), %s4777_s4, 16, %s481_s21, [#allocation11]  }
  0x76   : > { %p3488_p12 = pneg %p3487_p11  ;;  %p3494_p0 = por %p3493_p4, %p3492_p1 }
  0x78   : > { %p3495_p13 = pnand %p3494_p0, %p3488_p12 }
  0x7a   : > { %3498 = shalt.err (!%p3495_p13)
}
  0x7b   : > { %s4778_s6 = sld [smem:[#allocation53_spill]]  ;;  %s3510_s23 = scalar_lea.vmem %s527_s20, 16 }
  0x7c   : > { %p3511_p2 = scmp.ne.s32.totalorder %s527_s20, %s3510_s23  ;;  %s3517_s16 = scalar_lea.vmem %s527_s20, 32 }
  0x7d   : > { %p3518_p10 = scmp.lt.s32.totalorder %s527_s20, %s527_s20  ;;  %p3519_p8 = scmp.lt.s32.totalorder %s3517_s16, %s3510_s23 }
  0x7e   : > { %p3513_p5 = pnand %p3511_p2, %p3871_p7 }
  0x7f   : > { %p3520_p11 = por %p3519_p8, %p3518_p10 }
  0x80   : > { %p3514_p9 = pneg %p3513_p5 }
  0x81   : > { %3170 = dma.hbm_to_vmem [thread:$0]  (!%p3863_p6), %s4778_s6, 16, %s503_s10, [#allocation14]  }
  0x82   : > { %p3521_p1 = pnand %p3520_p11, %p3514_p9 }
  0x84   : > { %3524 = shalt.err (!%p3521_p1)
}
  0x85   : > { %s4779_s8 = sld [smem:[#allocation55_spill]]  ;;  %s3706_s10 = smov [#allocation21]  }
  0x86   : > { %s558_s14 = sshll.u32 %s3706_s10, 4  ;;  %s3707_s17 = smov [#allocation22]   ;;  %s559_s14 = int_to_ptr.vmem [resolvable:$true] %s558_s14 }
  0x87   : > { %s574_s29 = sshll.u32 %s3707_s17, 4  ;;  %s3536_s21 = scalar_lea.vmem %s559_s14, 384  ;;  %s575_s29 = int_to_ptr.vmem [resolvable:$true] %s574_s29 }
  0x88   : > { %p3537_p12 = scmp.ne.s32.totalorder %s559_s14, %s3536_s21  ;;  %p3544_p13 = scmp.lt.s32.totalorder %s559_s14, %s559_s14 }
  0x89   : > { %p3545_p2 = scmp.lt.s32.totalorder %s3536_s21, %s3536_s21 }
  0x8a   : > { %p3539_p4 = pnand %p3537_p12, %p3871_p7 }
  0x8b   : > { %3176 = dma.hbm_to_vmem [thread:$0]  (!%p3863_p6), %s4779_s8, 16, %s527_s20, [#allocation17]  }
  0x8c   : > { %p3540_p0 = pneg %p3539_p4  ;;  %p3546_p5 = por %p3545_p2, %p3544_p13 }
  0x8e   : > { %p3547_p9 = pnand %p3546_p5, %p3540_p0 }
  0x90   : > { %3550 = shalt.err (!%p3547_p9)
}
  0x91   : > { %s4780_s23 = smov 128   ;;  %s3562_s28 = scalar_lea.vmem %s575_s29, 256 }
  0x92   : > { %3182 = dma.hbm_to_vmem [thread:$0]  (!%p3863_p6), %s4720_s13, 384, %s559_s14, [#allocation20], %s4780_s23, %s4780_s23, %s4730_s18  }
  0x93   : > { %p3563_p10 = scmp.ne.s32.totalorder %s575_s29, %s3562_s28  ;;  %p3570_p1 = scmp.lt.s32.totalorder %s575_s29, %s575_s29 }
  0x94   : > { %p3571_p12 = scmp.lt.s32.totalorder %s3562_s28, %s3562_s28 }
  0x95   : > { %p3565_p8 = pnand %p3563_p10, %p3871_p7 }
  0x96   : > { %p3572_p4 = por %p3571_p12, %p3570_p1 }
  0x97   : > { %p3566_p11 = pneg %p3565_p8 }
  0x99   : > { %p3573_p0 = pnand %p3572_p4, %p3566_p11 }
  0x9b   : > { %3576 = shalt.err (!%p3573_p0)
}
  0x9c   : > { %3185 = dma.hbm_to_vmem [thread:$0]  (!%p3863_p6), %s4722_s15, 256, %s575_s29, [#allocation23], %s4780_s23, %s4780_s23, %s4730_s18  }
  0x9d   : > { %s2960_s1 = sadd.s32 4294967294, %s3693_s27   ;;  %s3974_s22 = sadd.s32 1, %s3693_s27  }
  0x9e   : > { %s46_s14 = sadd.s32 1, %s3689_s26  ;;  %s43_s17 = ssub.s32 %s3693_s27, %s3974_s22 }
  0x9f   : > { %p53_p7 = scmp.ne.s32.totalorder %s3689_s26, %s3685_s25  ;;  %p44_p13 = scmp.eq.s32.totalorder %s43_s17, 0 }
  0xa0   : > { %p54_p2 = scmp.eq.s32.totalorder %s3693_s27, 0  ;;  %p59_p5 = scmp.ne.s32.totalorder %s3685_s25, %s3681_s24 }
  0xa1   : > { %p419_p9 = scmp.eq.s32.totalorder %s3849_s0, 1  ;;  %p4781_p8 = scmp.eq.s32.totalorder %s3849_s0, 0 }
  0xa2   : > { %s3986_s21 = scalar_select %p44_p13, %s3689_s26, %s46_s14  }
  0xa3   : > { %p55_p10 = por %p54_p2, %p53_p7  ;;  %p3990_p11 = por %p4781_p8, %p59_p5 }
  0xa4   : > { %p3994_p6 = por %p419_p9, %p53_p7  ;;  %p425_p1 = scmp.eq.s32.totalorder %s2960_s1, 1 }
  0xa5   : > { %s4782_s20 = scalar_select %p3990_p11, 1, 0 }
  0xa6   : > { %s4783_s29 = scalar_select %p3994_p6, 1, 0 }
  0xa7   : > { %p3205_p12 = scmp.lt.s32.totalorder %s3693_s27, 2  ;;  %s591_s16 = sand.u32 1, %s3689_s26  }
  0xa8   : > { %p4000_p4 = por %p425_p1, %p59_p5  ;;  %s2974_s19 = sshll.u32 %s591_s16, 4 }
  0xa9   : > { %s3102_s10 = sshll.u32 %s3693_s27, 8  ;;  %s4785_s18 = sld [smem:[#allocation47_spill]] }
  0xaa   : > { %s4784_s28 = scalar_select %p4000_p4, 1, 0 }
  0xab   : > { %s595_s3 = scalar_lea.vmem [#allocation4], %s2974_s19  ;;  %p4010_p0 = pnand %p3205_p12, %p55_p10 }
  0xac   : > { %s602_s4 = sshll.u32 %s595_s3, 4  ;;  %s4016_s5 = scalar_lea.sflag [#allocation5], %s591_s16  ;;  %s4014_s4 = int_to_ptr.vmem [resolvable:$true] %s602_s4 }
  0xad   : > { %p3579_p13 = pneg %p4010_p0 }
  0xaf   : > { %s4008_s2 = scalar_lea.hbm %s4785_s18, %s3102_s10  ;;  %s3582_s19 = scalar_lea.hbm %s4785_s18, 512 }
  0xb0   : > { %s3577_s6 = scalar_lea.hbm %s4008_s2, 256  ;;  %p3583_p9 = scmp.lt.s32.totalorder %s4008_s2, %s4785_s18 }
  0xb1   : > { %p3578_p7 = scmp.ne.s32.totalorder %s4008_s2, %s3577_s6  ;;  %p3584_p10 = scmp.lt.s32.totalorder %s3582_s19, %s3577_s6 }
  0xb3   : > { %p3580_p2 = pnand %p3579_p13, %p3578_p7  ;;  %p3585_p8 = por %p3584_p10, %p3583_p9 }
  0xb5   : > { %p3581_p5 = pneg %p3580_p2 }
  0xb7   : > { %p3586_p1 = pnand %p3585_p8, %p3581_p5 }
  0xb9   : > { %3589 = shalt.err (!%p3586_p1)
}
  0xba   : > { %s3590_s16 = scalar_lea.vmem %s4014_s4, 256  ;;  %s3708_s7 = smov [#allocation4]  }
  0xbb   : > { %p3591_p12 = scmp.ne.s32.totalorder %s4014_s4, %s3590_s16  ;;  %s3595_s8 = sshll.u32 %s3708_s7, 4  ;;  %s3596_s8 = int_to_ptr.vmem [resolvable:$false] %s3595_s8 }
  0xbc   : > { %s3597_s10 = scalar_lea.vmem %s3596_s8, 512  ;;  %p3598_p2 = scmp.lt.s32.totalorder %s4014_s4, %s3596_s8 }
  0xbd   : > { %p3593_p4 = pnand %p3591_p12, %p3579_p13  ;;  %p3599_p6 = scmp.lt.s32.totalorder %s3597_s10, %s3590_s16 }
  0xbf   : > { %p3594_p7 = pneg %p3593_p4  ;;  %p3600_p11 = por %p3599_p6, %p3598_p2 }
  0xc1   : > { %p3601_p3 = pnand %p3600_p11, %p3594_p7 }
  0xc3   : > { %3604 = shalt.err (!%p3601_p3)
}
  0xc4   : > { %s4787_s6 = smov 8   ;;  %p4788_p4 = scmp.ne.s32.totalorder %s4769_s30, 0 }
  0xc5   : > { %3189 = dma.hbm_to_vmem [thread:$0]  (!%p4010_p0), %s4008_s2, 256, %s4014_s4, %s4016_s5, %s4780_s23, %s4780_s23, %s4787_s6  }
  0xc6   : > { %614 = sbr.rel (%p4788_p4) target bundleno = 828 (0x33c), region = 88 }
  0xcb   : > { %s4043_s7 = sand.u32 1, %s3685_s25   ;;  %p4789_p3 = scmp.ne.s32.totalorder %s4782_s20, 0 }
  0xcc   : > { %s2978_s8 = sshll.u32 %s4043_s7, 4  ;;  %s617_s14 = scalar_lea.sflag [#allocation5], %s4043_s7 }
  0xcd   : > { %s4049_s1 = scalar_lea.vmem [#allocation4], %s2978_s8 }
  0xce   : > { %3648 = dma.done.wait (%p4789_p3), %s617_s14, 256  }
  0xcf   : > { %3650 = vsyncadd (%p4789_p3), %s617_s14, 4294967040  ;;  %p4790_p11 = scmp.eq.s32.totalorder %s3849_s0, 0 }
  0xd1   : > { %3652 = dma.done.wait (%p4790_p11), [#allocation8], 528   ;;  %p4791_p6 = pmov %p4790_p11 }
  0xd3   : > { %3654 = vsyncadd (%p4791_p6), [#allocation8], 4294966768  ;;  %p4792_p0 = pmov %p4791_p6 }
  0xd5   : > { %3656 = dma.done.wait (%p4792_p0), [#allocation11], 144   ;;  %p4793_p13 = pmov %p4792_p0 }
  0xd6   : > { %p4794_p5 = pmov %p4792_p0 }
  0xd7   : > { %3658 = vsyncadd (%p4793_p13), [#allocation11], 4294967152 }
  0xd8   : > { %3660 = dma.done.wait (%p4794_p5), [#allocation14], 144   ;;  %p4795_p9 = pmov %p4792_p0 }
  0xd9   : > { %p4796_p10 = pmov %p4792_p0 }
  0xda   : > { %3662 = vsyncadd (%p4795_p9), [#allocation14], 4294967152 }
  0xdb   : > { %3664 = dma.done.wait (%p4796_p10), [#allocation17], 272   ;;  %p4797_p8 = pmov %p4792_p0 }
  0xdc   : > { %p4798_p1 = pmov %p4792_p0 }
  0xdd   : > { %3666 = vsyncadd (%p4797_p8), [#allocation17], 4294967024 }
  0xde   : > { %3668 = dma.done.wait (%p4798_p1), [#allocation20], 768   ;;  %p4799_p12 = pmov %p4792_p0 }
  0xdf   : > { %p4800_p7 = pmov %p4792_p0 }
  0xe0   : > { %3670 = vsyncadd (%p4799_p12), [#allocation20], 4294966528 }
  0xe1   : > { %3672 = dma.done.wait (%p4800_p7), [#allocation23], 256   ;;  %p4801_p2 = pmov %p4792_p0 }
  0xe2   : > { %v3709_v0 = vmov 0.0   ;;  %s3710_s2 = smov 16   ;;  %v718_v1 = vld [vmem:[%s4049_s1 + $0x8] sm:$0xff]  ;;  %v717_v2 = vld [vmem:[%s4049_s1] sm:$0xff]  ;;  %s3711_s4 = smov 8   ;;  %vm770_vm0 = vcmask 1046528  }
  0xe3   : > { %3674 = vsyncadd (%p4801_p2), [#allocation23], 4294967040  ;;  %733 = vrot.lane.b32.xlu0 %v3709_v0, %s3710_s2  ;;  %723 = vst [vmem:[#allocation3 + $0x10] sm:$0xff] %v3709_v0  ;;  %737 = vrot.lane.b32.xlu1 %v718_v1, %s3710_s2  ;;  %v3003_v3 = vld [vmem:[#allocation7 + $0x7] ss:$0 sm:$0xff]  ;;  %s3712_s5 = smov 120  }
  0xe4   : > { %724 = vst [vmem:[#allocation3 + $0x18] sm:$0xff] %v3709_v0  ;;  %725 = vst [vmem:[#allocation3 + $0x30] sm:$0xff] %v3709_v0  ;;  %v4084_v4 = vmul.f32 %v3003_v3, %v718_v1  ;;  %v3004_v5 = vld [vmem:[#allocation7 + $0xc] ss:$0 sm:$0xff]  ;;  %v4088_v6 = vmul.f32 %v3003_v3, %v717_v2  ;;  %v3005_v9 = vld [vmem:[#allocation7 + $0x11] ss:$0 sm:$0xff] }
  0xe5   : > { %726 = vst [vmem:[#allocation3 + $0x38] sm:$0xff] %v3709_v0  ;;  %v4091_v8 = vmul.f32 %v3004_v5, %v718_v1  ;;  %v3006_v10 = vld [vmem:[#allocation7 + $0x16] ss:$0 sm:$0xff]  ;;  %v4093_v11 = vmul.f32 %v3004_v5, %v717_v2  ;;  %v4097_v12 = vmul.f32 %v3005_v9, %v718_v1  ;;  %vm791_vm1 = vcmask 1045504   ;;  %s3713_s30 = smov 112   ;;  %s3714_s23 = smov 72  }
  0xe6   : > { %v975_v7 = vrot.slane %v4084_v4, 1  ;;  %v4099_v13 = vmul.f32 %v3006_v10, %v718_v1  ;;  %v973_v15 = vrot.slane %v4088_v6, 1  ;;  %v4105_v18 = vmul.f32 %v3005_v9, %v717_v2  ;;  %v2991_v28 = vld [vmem:[#allocation7] ss:$0 sm:$0xff]  ;;  %v2993_v29 = vld [vmem:[#allocation7 + $0x5] ss:$0 sm:$0xff] }
  0xe7   : > { %735 = vrot.lane.b32.xlu0 %v717_v2, %s3710_s2  ;;  %739 = vrot.lane.b32.xlu1 %v3709_v0, %s3710_s2  ;;  %v993_v14 = vrot.slane %v4091_v8, 2  ;;  %v992_v16 = vrot.slane %v4093_v11, 2  ;;  %v1013_v17 = vrot.slane %v4097_v12, 3  ;;  %v4124_v23 = vmul.f32 %v3006_v10, %v717_v2  ;;  %v3002_v32 = vld [vmem:[#allocation7 + $0x2] ss:$0 sm:$0xff]  ;;  %s3715_s20 = smov 96  }
  0xe8   : > { %v4112_v19 = vsel %vm770_vm0, %v973_v15, %v975_v7  ;;  %v1035_v21 = vrot.slane %v4099_v13, 4  ;;  %v1012_v22 = vrot.slane %v4105_v18, 3  ;;  %vm812_vm2 = vcmask 1044480   ;;  %v2992_v33 = vld [vmem:[#allocation9] ss:$0 sm:$0xff]  ;;  %s3716_s19 = smov 48  }
  0xe9   : > { %v4119_v20 = vsel %vm791_vm1, %v992_v16, %v993_v14  ;;  %v1034_v25 = vrot.slane %v4124_v23, 4  ;;  %vm835_vm3 = vcmask 1043456   ;;  %v2994_v34 = vld [vmem:[#allocation7 + $0xa] ss:$0 sm:$0xff]  ;;  %v2995_v35 = vld [vmem:[#allocation7 + $0xf] ss:$0 sm:$0xff]  ;;  %v4143_v38 = vmul.f32 %v3002_v32, %v718_v1 }
  0xea   : > { %v4131_v24 = vsel %vm812_vm2, %v1012_v22, %v1013_v17  ;;  %v2996_v36 = vld [vmem:[#allocation7 + $0x14] ss:$0 sm:$0xff]  ;;  %v4141_v37 = vmul.f32 0.0, %v3002_v32  ;;  %v4145_v39 = vmul.f32 %v3002_v32, %v717_v2  ;;  %v4147_v40 = vmul.f32 0.0, %v3003_v3  ;;  %v3014_v4 = vld [vmem:[#allocation7 + $0xe] ss:$0 sm:$0xff] }
  0xeb   : > { %847 = vrot.lane.b32.xlu0 %v3709_v0, %s3711_s4  ;;  %849 = vrot.lane.b32.xlu1 %v717_v2, %s3711_s4  ;;  %v4139_v26 = vsel %vm835_vm3, %v1034_v25, %v1035_v21  ;;  %v4149_v45 = vmul.f32 0.0, %v3005_v9  ;;  %v4151_v46 = vmul.f32 0.0, %v3006_v10  ;;  %v2997_v9 = vld [vmem:[#allocation7 + $0x1] ss:$0 sm:$0xff]  ;;  %v3013_v18 = vld [vmem:[#allocation7 + $0x9] ss:$0 sm:$0xff] }
  0xec   : > { %vm1308_vm4 = vcmask 1041408   ;;  %s3717_s3 = smov 24   ;;  %s3718_s17 = smov 104  }
  0xed   : > { %s3719_s16 = smov 80   ;;  %s3720_s10 = smov 56  }
  0xee   : > { %s3721_s6 = smov 32   ;;  %s3728_s14 = smov 127  }
  0xef   : > { %851 = vrot.lane.b32.xlu0 %v718_v1, %s3711_s4  ;;  %853 = vrot.lane.b32.xlu1 %v3709_v0, %s3711_s4  ;;  %s3729_s2 = smov 1   ;;  %p4861_p3 = scmp.ne.s32.totalorder %s4783_s29, 0 }
  0xf3   : > { %1045 = vrot.lane.b32.xlu0 %v3709_v0, %s3712_s5  ;;  %1047 = vrot.lane.b32.xlu1 %v717_v2, %s3712_s5 }
  0xf7   : > { %1049 = vrot.lane.b32.xlu0 %v718_v1, %s3712_s5  ;;  %1051 = vrot.lane.b32.xlu1 %v3709_v0, %s3712_s5 }
  0xfb   : > { %1148 = vrot.lane.b32.xlu0 %v3709_v0, %s3713_s30  ;;  %1150 = vrot.lane.b32.xlu1 %v717_v2, %s3713_s30 }
  0xff   : > { %1152 = vrot.lane.b32.xlu0 %v718_v1, %s3713_s30  ;;  %1154 = vrot.lane.b32.xlu1 %v3709_v0, %s3713_s30  ;;  %s4820_s30 = sld [smem:[#allocation57_spill]] }
 0x155   : > { %v734_v27 = vpop.permute.xlu0 %733  ;;  %v738_v43 = vpop.permute.xlu1 %737 }
 0x156   : > { %v746_v30 = vmul.f32 %v2991_v28, %v734_v27  ;;  %v764_v31 = vmul.f32 %v2993_v29, %v734_v27  ;;  %v748_v47 = vmul.f32 %v2991_v28, %v738_v43  ;;  %v766_v48 = vmul.f32 %v2993_v29, %v738_v43 }
 0x157   : > { %v788_v49 = vmul.f32 %v2994_v34, %v738_v43  ;;  %v807_v53 = vmul.f32 %v2995_v35, %v738_v43  ;;  %v830_v54 = vmul.f32 %v2996_v36, %v738_v43 }
 0x158   : > { %v756_v41 = vadd.f32 %v2992_v33, %v746_v30  ;;  %v771_v42 = vrot.slane %v764_v31, 1  ;;  %v758_v55 = vadd.f32 %v2992_v33, %v748_v47  ;;  %v774_v56 = vrot.slane %v766_v48, 1  ;;  %v2998_v30 = vld [vmem:[#allocation7 + $0x6] ss:$0 sm:$0xff] }
 0x159   : > { %v736_v44 = vpop.permute.xlu0 %735  ;;  %v793_v57 = vrot.slane %v788_v49, 2  ;;  %v814_v61 = vrot.slane %v807_v53, 3  ;;  %v837_v62 = vrot.slane %v830_v54, 4  ;;  %v740_v63 = vpop.permute.xlu1 %739  ;;  %v2999_v53 = vld [vmem:[#allocation7 + $0xb] ss:$0 sm:$0xff] }
 0x15a   : > { %v747_v50 = vmul.f32 %v2991_v28, %v736_v44  ;;  %v765_v51 = vmul.f32 %v2993_v29, %v736_v44  ;;  %v787_v52 = vmul.f32 %v2994_v34, %v736_v44  ;;  %v781_v1 = vadd.f32 %v774_v56, %v758_v55 }
 0x15b   : > { %v806_v2 = vmul.f32 %v2995_v35, %v736_v44  ;;  %v808_v3 = vmul.f32 %v2995_v35, %v740_v63  ;;  %v829_v5 = vmul.f32 %v2996_v36, %v736_v44  ;;  %v831_v28 = vmul.f32 %v2996_v36, %v740_v63  ;;  %v3000_v63 = vld [vmem:[#allocation7 + $0x10] ss:$0 sm:$0xff] }
 0x15c   : > { %v757_v58 = vadd.f32 %v2992_v33, %v747_v50  ;;  %v772_v59 = vrot.slane %v765_v51, 1  ;;  %v792_v60 = vrot.slane %v787_v52, 2  ;;  %v800_v32 = vadd.f32 %v793_v57, %v781_v1 }
 0x15d   : > { %v848_v0 = vpop.permute.xlu0 %847  ;;  %v813_v33 = vrot.slane %v806_v2, 3  ;;  %v816_v34 = vrot.slane %v808_v3, 3  ;;  %v836_v43 = vrot.slane %v829_v5, 4  ;;  %v839_v47 = vrot.slane %v831_v28, 4  ;;  %v850_v50 = vpop.permute.xlu1 %849  ;;  %v3001_v28 = vld [vmem:[#allocation7 + $0x15] ss:$0 sm:$0xff] }
 0x15e   : > { %v775_v10 = vsel %vm770_vm0, %v772_v59, %v774_v56  ;;  %v794_v27 = vsel %vm791_vm1, %v792_v60, %v793_v57  ;;  %v773_v29 = vsel %vm770_vm0, %v771_v42, %v772_v59  ;;  %v860_v49 = vmul.f32 %v2997_v9, %v848_v0 }
 0x15f   : > { %v780_v31 = vadd.f32 %v775_v10, %v757_v58  ;;  %v779_v48 = vadd.f32 %v773_v29, %v756_v41  ;;  %v815_v44 = vsel %vm812_vm2, %v813_v33, %v814_v61  ;;  %v817_v51 = vsel %vm812_vm2, %v814_v61, %v816_v34 }
 0x160   : > { %v871_v52 = vmul.f32 %v2998_v30, %v848_v0  ;;  %v823_v54 = vadd.f32 %v817_v51, %v800_v32  ;;  %v838_v42 = vsel %vm835_vm3, %v836_v43, %v837_v62  ;;  %v840_v55 = vsel %vm835_vm3, %v837_v62, %v839_v47 }
 0x161   : > { %v799_v35 = vadd.f32 %v794_v27, %v780_v31  ;;  %v852_v36 = vpop.permute.xlu0 %851  ;;  %v798_v56 = vadd.f32 %v792_v60, %v779_v48  ;;  %v861_v59 = vmul.f32 %v2997_v9, %v850_v50  ;;  %v872_v41 = vmul.f32 %v2998_v30, %v850_v50  ;;  %v854_v62 = vpop.permute.xlu1 %853 }
 0x162   : > { %v877_v58 = vrot.slane %v871_v52, 1  ;;  %v846_v1 = vadd.f32 %v840_v55, %v823_v54  ;;  %v893_v3 = vmul.f32 %v2999_v53, %v850_v50  ;;  %v862_v5 = vmul.f32 %v2997_v9, %v852_v36 }
 0x163   : > { %v822_v57 = vadd.f32 %v815_v44, %v799_v35  ;;  %v821_v2 = vadd.f32 %v813_v33, %v798_v56  ;;  %v878_v61 = vrot.slane %v872_v41, 1  ;;  %v873_v0 = vmul.f32 %v2998_v30, %v852_v36 }
 0x164   : > { %v894_v27 = vmul.f32 %v2999_v53, %v852_v36  ;;  %v897_v31 = vrot.slane %v893_v3, 2  ;;  %v865_v32 = vadd.f32 %v862_v5, %v846_v1  ;;  %v911_v34 = vmul.f32 %v3000_v63, %v850_v50 }
 0x165   : > { %v845_v10 = vadd.f32 %v838_v42, %v822_v57  ;;  %v844_v29 = vadd.f32 %v836_v43, %v821_v2  ;;  %v879_v47 = vsel %vm770_vm0, %v877_v58, %v878_v61  ;;  %v880_v48 = vrot.slane %v873_v0, 1  ;;  %v1048_v3 = vpop.permute.xlu1 %1047 }
 0x166   : > { %v898_v35 = vrot.slane %v894_v27, 2  ;;  %v917_v51 = vrot.slane %v911_v34, 3  ;;  %v933_v33 = vmul.f32 %v3001_v28, %v850_v50  ;;  %v912_v52 = vmul.f32 %v3000_v63, %v852_v36 }
 0x167   : > { %v864_v60 = vadd.f32 %v861_v59, %v845_v10  ;;  %v863_v44 = vadd.f32 %v860_v49, %v844_v29  ;;  %v881_v9 = vsel %vm770_vm0, %v878_v61, %v880_v48  ;;  %v887_v54 = vadd.f32 %v880_v48, %v865_v32  ;;  %v3009_v49 = vld [vmem:[#allocation7 + $0xd] ss:$0 sm:$0xff]  ;;  %v1046_v10 = vpop.permute.xlu0 %1045  ;;  %v3008_v29 = vld [vmem:[#allocation7 + $0x8] ss:$0 sm:$0xff]  ;;  %v3007_v48 = vld [vmem:[#allocation7 + $0x3] ss:$0 sm:$0xff] }
 0x168   : > { %v899_v30 = vsel %vm791_vm1, %v897_v31, %v898_v35  ;;  %v913_v53 = vmul.f32 %v3000_v63, %v854_v62  ;;  %v939_v42 = vrot.slane %v933_v33, 4  ;;  %v918_v56 = vrot.slane %v912_v52, 3 }
 0x169   : > { %v886_v43 = vadd.f32 %v881_v9, %v864_v60  ;;  %v885_v55 = vadd.f32 %v879_v47, %v863_v44  ;;  %v905_v57 = vadd.f32 %v898_v35, %v887_v54  ;;  %v934_v41 = vmul.f32 %v3001_v28, %v852_v36  ;;  %v3010_v9 = vld [vmem:[#allocation7 + $0x12] ss:$0 sm:$0xff]  ;;  %v1052_v54 = vpop.permute.xlu1 %1051 }
 0x16a   : > { %v920_v59 = vrot.slane %v913_v53, 3  ;;  %v935_v58 = vmul.f32 %v3001_v28, %v854_v62  ;;  %v972_v50 = vrot.slane %v4147_v40, 1  ;;  %v1015_v5 = vrot.slane %v4149_v45, 3 }
 0x16b   : > { %v903_v1 = vadd.f32 %v897_v31, %v885_v55  ;;  %v904_v2 = vadd.f32 %v899_v30, %v886_v43  ;;  %v919_v61 = vsel %vm812_vm2, %v917_v51, %v918_v56  ;;  %v940_v0 = vrot.slane %v934_v41, 4  ;;  %v1050_v53 = vpop.permute.xlu0 %1049 }
 0x16c   : > { %v921_v63 = vsel %vm812_vm2, %v918_v56, %v920_v59  ;;  %v942_v27 = vrot.slane %v935_v58, 4  ;;  %v1037_v28 = vrot.slane %v4151_v46, 4  ;;  %v4170_v40 = vmul.f32 %v3009_v49, %v1048_v3 }
 0x16d   : > { %v925_v32 = vadd.f32 %v917_v51, %v903_v1  ;;  %v926_v34 = vadd.f32 %v919_v61, %v904_v2  ;;  %v927_v36 = vadd.f32 %v921_v63, %v905_v57  ;;  %v941_v31 = vsel %vm835_vm3, %v939_v42, %v940_v0  ;;  %v1151_v11 = vpop.permute.xlu1 %1150 }
 0x16e   : > { %v943_v62 = vsel %vm835_vm3, %v940_v0, %v942_v27  ;;  %v1070_v35 = vmul.f32 %v3008_v29, %v1048_v3  ;;  %v974_v44 = vsel %vm770_vm0, %v972_v50, %v973_v15  ;;  %v1016_v51 = vsel %vm812_vm2, %v1013_v17, %v1015_v5 }
 0x16f   : > { %v947_v45 = vadd.f32 %v939_v42, %v925_v32  ;;  %v948_v60 = vadd.f32 %v941_v31, %v926_v34  ;;  %v949_v47 = vadd.f32 %v943_v62, %v927_v36  ;;  %v1038_v30 = vsel %vm835_vm3, %v1035_v21, %v1037_v28 }
 0x170   : > { %v1095_v6 = vrot.slane %v4170_v40, 2  ;;  %v1059_v15 = vmul.f32 %v3007_v48, %v1048_v3  ;;  %v1058_v43 = vmul.f32 %v3007_v48, %v1046_v10  ;;  %v1069_v12 = vmul.f32 %v3008_v29, %v1046_v10 }
 0x171   : > { %v958_v46 = vadd.f32 %v4141_v37, %v947_v45  ;;  %v959_v33 = vadd.f32 %v4145_v39, %v948_v60  ;;  %v960_v52 = vadd.f32 %v4143_v38, %v949_v47  ;;  %v1076_v37 = vrot.slane %v1070_v35, 1  ;;  %v3011_v38 = vld [vmem:[#allocation7 + $0x17] ss:$0 sm:$0xff]  ;;  %v3015_v35 = vld [vmem:[#allocation7 + $0x13] ss:$0 sm:$0xff] }
 0x172   : > { %v1109_v55 = vmul.f32 %v3010_v9, %v1048_v3  ;;  %v1111_v56 = vmul.f32 %v3010_v9, %v1052_v54  ;;  %v1071_v57 = vmul.f32 %v3008_v29, %v1050_v53  ;;  %v1092_v13 = vmul.f32 %v3009_v49, %v1050_v53 }
 0x173   : > { %v982_v17 = vadd.f32 %v975_v7, %v960_v52  ;;  %v980_v42 = vadd.f32 %v974_v44, %v958_v46  ;;  %v981_v39 = vadd.f32 %v4112_v19, %v959_v33  ;;  %v1110_v58 = vmul.f32 %v3010_v9, %v1050_v53  ;;  %v1155_v44 = vpop.permute.xlu1 %1154 }
 0x174   : > { %v1075_v7 = vrot.slane %v1069_v12, 1  ;;  %v1131_v1 = vmul.f32 %v3011_v38, %v1048_v3  ;;  %v1078_v2 = vrot.slane %v1071_v57, 1  ;;  %v1132_v50 = vmul.f32 %v3011_v38, %v1050_v53 }
 0x175   : > { %v998_v21 = vadd.f32 %v992_v16, %v980_v42  ;;  %v999_v59 = vadd.f32 %v4119_v20, %v981_v39  ;;  %v1000_v41 = vadd.f32 %v993_v14, %v982_v17  ;;  %v1060_v10 = vmul.f32 %v3007_v48, %v1050_v53  ;;  %v1149_v16 = vpop.permute.xlu0 %1148 }
 0x176   : > { %v1118_v61 = vrot.slane %v1111_v56, 3  ;;  %v1133_v20 = vmul.f32 %v3011_v38, %v1052_v54  ;;  %v1096_v63 = vrot.slane %v1092_v13, 2  ;;  %v4196_v8 = vmul.f32 %v3014_v4, %v1151_v11 }
 0x177   : > { %v1020_v19 = vadd.f32 %v1012_v22, %v998_v21  ;;  %v1021_v5 = vadd.f32 %v4131_v24, %v999_v59  ;;  %v1022_v49 = vadd.f32 %v1016_v51, %v1000_v41  ;;  %v1116_v27 = vrot.slane %v1110_v58, 3 }
 0x178   : > { %v1115_v22 = vrot.slane %v1109_v55, 3  ;;  %v1137_v29 = vrot.slane %v1131_v1, 4  ;;  %v1079_v24 = vsel %vm770_vm0, %v1076_v37, %v1078_v2  ;;  %v1138_v32 = vrot.slane %v1132_v50, 4  ;;  %v3016_v55 = vld [vmem:[#allocation7 + $0x18] ss:$0 sm:$0xff] }
 0x179   : > { %v1042_v14 = vadd.f32 %v1034_v25, %v1020_v19  ;;  %v1043_v3 = vadd.f32 %v4139_v26, %v1021_v5  ;;  %v1044_v0 = vadd.f32 %v1038_v30, %v1022_v49  ;;  %v1077_v28 = vsel %vm770_vm0, %v1075_v7, %v1076_v37  ;;  %v3012_v25 = vld [vmem:[#allocation7 + $0x4] ss:$0 sm:$0xff]  ;;  %v1153_v51 = vpop.permute.xlu0 %1152 }
 0x17a   : > { %v1140_v62 = vrot.slane %v1133_v20, 4  ;;  %v1097_v40 = vsel %vm791_vm1, %v1095_v6, %v1096_v63  ;;  %v1198_v23 = vrot.slane %v4196_v8, 2  ;;  %v1173_v26 = vmul.f32 %v3013_v18, %v1151_v11 }
 0x17b   : > { %v1061_v34 = vadd.f32 %v1058_v43, %v1042_v14  ;;  %v1062_v36 = vadd.f32 %v1059_v15, %v1043_v3  ;;  %v1063_v31 = vadd.f32 %v1060_v10, %v1044_v0  ;;  %v1119_v48 = vsel %vm812_vm2, %v1116_v27, %v1118_v61 }
 0x17c   : > { %v1117_v46 = vsel %vm812_vm2, %v1115_v22, %v1116_v27  ;;  %v1139_v33 = vsel %vm835_vm3, %v1137_v29, %v1138_v32  ;;  %v1162_v52 = vmul.f32 %v3012_v25, %v1151_v11  ;;  %v1172_v9 = vmul.f32 %v3013_v18, %v1149_v16 }
 0x17d   : > { %v1083_v45 = vadd.f32 %v1077_v28, %v1061_v34  ;;  %v1084_v60 = vadd.f32 %v1079_v24, %v1062_v36  ;;  %v1085_v47 = vadd.f32 %v1078_v2, %v1063_v31  ;;  %v1161_v15 = vmul.f32 %v3012_v25, %v1149_v16 }
 0x17e   : > { %v1179_v43 = vrot.slane %v1173_v26, 1  ;;  %v1212_v12 = vmul.f32 %v3015_v35, %v1151_v11  ;;  %v1214_v17 = vmul.f32 %v3015_v35, %v1155_v44  ;;  %v1163_v37 = vmul.f32 %v3012_v25, %v1153_v51 }
 0x17f   : > { %v1101_v54 = vadd.f32 %v1095_v6, %v1083_v45  ;;  %v1103_v30 = vadd.f32 %v1096_v63, %v1085_v47  ;;  %v1102_v53 = vadd.f32 %v1097_v40, %v1084_v60  ;;  %v1174_v56 = vmul.f32 %v3013_v18, %v1153_v51 }
 0x180   : > { %v1178_v57 = vrot.slane %v1172_v9, 1  ;;  %v1141_v13 = vsel %vm835_vm3, %v1138_v32, %v1140_v62  ;;  %v1195_v21 = vmul.f32 %v3014_v4, %v1153_v51  ;;  %v1213_v59 = vmul.f32 %v3015_v35, %v1153_v51 }
 0x181   : > { %v1125_v42 = vadd.f32 %v1119_v48, %v1103_v30  ;;  %v1123_v39 = vadd.f32 %v1115_v22, %v1101_v54  ;;  %v1124_v38 = vadd.f32 %v1117_v46, %v1102_v53  ;;  %v1181_v7 = vrot.slane %v1174_v56, 1  ;;  %v3017_v46 = vld [vmem:[#allocation10 + $0x3] ss:$0 sm:$0xff] }
 0x182   : > { %v1234_v1 = vmul.f32 %v3016_v55, %v1151_v11  ;;  %v1236_v2 = vmul.f32 %v3016_v55, %v1155_v44  ;;  %v1199_v50 = vrot.slane %v1195_v21, 2  ;;  %v1235_v19 = vmul.f32 %v3016_v55, %v1153_v51  ;;  %v3019_v44 = vld [vmem:[#allocation16 + $0x5] ss:$0 sm:$0xff]  ;;  %v3021_v51 = vld [vmem:[#allocation19 + $0xa] ss:$0 sm:$0xff]  ;;  %v1989_v21 = vld [vmem:[#allocation3 + $0x11] sm:$0xff] }
 0x183   : > { %v1145_v41 = vadd.f32 %v1137_v29, %v1123_v39  ;;  %v1146_v58 = vadd.f32 %v1139_v33, %v1124_v38  ;;  %v1147_v6 = vadd.f32 %v1141_v13, %v1125_v42  ;;  %v1182_v16 = vsel %vm770_vm0, %v1179_v43, %v1181_v7  ;;  %v1845_v33 = vld [vmem:[#allocation3 + $0x17] sm:$0xff]  ;;  %v3023_v38 = vld [vmem:[#allocation16] ss:$0 sm:$0xff]  ;;  %v4248_v13 = vld [vmem:[#allocation13 + $0x6] ss:$0 sm:$0xff] }
 0x184   : > { %v1180_v61 = vsel %vm770_vm0, %v1178_v57, %v1179_v43  ;;  %v1218_v20 = vrot.slane %v1212_v12, 3  ;;  %v1221_v63 = vrot.slane %v1214_v17, 3  ;;  %v1219_v8 = vrot.slane %v1213_v59, 3  ;;  %v3022_v43 = vld [vmem:[%s4719_s12] ss:$0 sm:$0xff]  ;;  %v1946_v57 = vld [vmem:[#allocation3 + $0x31] sm:$0xff] }
 0x185   : > { %v1164_v5 = vadd.f32 %v1161_v15, %v1145_v41  ;;  %v1165_v49 = vadd.f32 %v1162_v52, %v1146_v58  ;;  %v1166_v10 = vadd.f32 %v1163_v37, %v1147_v6  ;;  %v1240_v0 = vrot.slane %v1234_v1, 4  ;;  %v4231_v52 = vld [vmem:[#allocation13] ss:$0 sm:$0xff]  ;;  %v3020_v15 = vld [vmem:[#allocation18] ss:$0 sm:$0xff] }
 0x186   : > { %v1243_v27 = vrot.slane %v1236_v2, 4  ;;  %v1200_v11 = vsel %vm791_vm1, %v1198_v23, %v1199_v50  ;;  %v1241_v18 = vrot.slane %v1235_v19, 4  ;;  %v1220_v32 = vsel %vm812_vm2, %v1218_v20, %v1219_v8  ;;  %v3018_v42 = vld [vmem:[#allocation12] ss:$0 sm:$0xff]  ;;  %v3024_v59 = vld [vmem:[#allocation19 + $0x5] ss:$0 sm:$0xff] }
 0x187   : > { %v1186_v4 = vadd.f32 %v1180_v61, %v1164_v5  ;;  %v1187_v14 = vadd.f32 %v1182_v16, %v1165_v49  ;;  %v1188_v3 = vadd.f32 %v1181_v7, %v1166_v10  ;;  %v1222_v34 = vsel %vm812_vm2, %v1219_v8, %v1221_v63  ;;  %v4253_v41 = vld [vmem:[%s4716_s9] ss:$0 sm:$0xff]  ;;  %v2009_v58 = vld [vmem:[#allocation3 + $0x14] sm:$0xff]  ;;  %v4268_v19 = vld [vmem:[%s4716_s9 + $0x1] ss:$0 sm:$0xff] }
 0x188   : > { %v1242_v62 = vsel %vm835_vm3, %v1240_v0, %v1241_v18  ;;  %v1244_v40 = vsel %vm835_vm3, %v1241_v18, %v1243_v27  ;;  %v4246_v56 = vmul.f32 %v4231_v52, %v1845_v33  ;;  %v4255_v6 = vld [vmem:[#allocation21 + $0x5] ss:$0 sm:$0xff]  ;;  %v4273_v5 = vld [vmem:[%s4716_s9 + $0x2] ss:$0 sm:$0xff]  ;;  %v4275_v49 = vld [vmem:[#allocation21 + $0x6] ss:$0 sm:$0xff]  ;;  %v4299_v18 = vmul.f32 %v4253_v41, %v1989_v21 }
 0x189   : > { %v1204_v22 = vadd.f32 %v1198_v23, %v1186_v4  ;;  %v1205_v29 = vadd.f32 %v1200_v11, %v1187_v14  ;;  %v1206_v24 = vadd.f32 %v1199_v50, %v1188_v3  ;;  %v4288_v63 = vld [vmem:[%s4716_s9 + $0x8] ss:$0 sm:$0xff]  ;;  %v2150_v8 = vld [vmem:[#allocation3 + $0x34] sm:$0xff]  ;;  %v4296_v11 = vmul.f32 %v4248_v13, %v1946_v57 }
 0x18a   : > { %v4290_v4 = vld [vmem:[#allocation21 + $0x7] ss:$0 sm:$0xff] }
 0x18b   : > { %v1226_v36 = vadd.f32 %v1218_v20, %v1204_v22  ;;  %v1227_v28 = vadd.f32 %v1220_v32, %v1205_v29  ;;  %v1228_v31 = vadd.f32 %v1222_v34, %v1206_v24  ;;  %4805 = vst [vmem:[#allocation36_spill] sm:$0xff] %v4290_v4  ;;  %v4304_v22 = vld [vmem:[%s4716_s9 + $0x9] ss:$0 sm:$0xff]  ;;  %v2170_v29 = vld [vmem:[#allocation3 + $0x37] sm:$0xff]  ;;  %v4309_v24 = vld [vmem:[%s4716_s9 + $0xa] ss:$0 sm:$0xff] }
 0x18d   : > { %v4216_v25 = vadd.f32 %v1240_v0, %v1226_v36  ;;  %v4218_v26 = vadd.f32 %v1242_v62, %v1227_v28  ;;  %v4220_v45 = vadd.f32 %v1244_v40, %v1228_v31  ;;  %v4312_v36 = vmul.f32 %v4268_v19, %v2009_v58  ;;  %v4317_v31 = vld [vmem:[#allocation21 + $0xd] ss:$0 sm:$0xff]  ;;  %v4319_v62 = vld [vmem:[#allocation21 + $0xe] ss:$0 sm:$0xff] }
 0x18e   : > { %v4315_v28 = vmul.f32 %v4255_v6, %v1989_v21  ;;  %4806 = vst [vmem:[#allocation37_spill] sm:$0xff] %v4317_v31  ;;  %4807 = vst [vmem:[#allocation38_spill] sm:$0xff] %v4319_v62 }
 0x18f   : > { %4802 = vst [vmem:[#allocation33_spill] sm:$0xff] %v4216_v25  ;;  %4803 = vst [vmem:[#allocation34_spill] sm:$0xff] %v4218_v26  ;;  %v1309_v23 = vrot.slane %v4216_v25, 6  ;;  %v1310_v60 = vrot.slane %v4218_v26, 6  ;;  %v1312_v47 = vrot.slane %v4220_v45, 6  ;;  %v1276_v9 = vmul.f32 %v3019_v44, %v4220_v45 }
 0x190   : > { %4804 = vst [vmem:[#allocation35_spill] sm:$0xff] %v4220_v45  ;;  %v1294_v54 = vmul.f32 %v3021_v51, %v4220_v45  ;;  %v1274_v30 = vmul.f32 %v3019_v44, %v4216_v25  ;;  %v1292_v53 = vmul.f32 %v3021_v51, %v4216_v25  ;;  %v1275_v12 = vmul.f32 %v3019_v44, %v4218_v26 }
 0x191   : > { %v1313_v48 = vsel %vm1308_vm4, %v1310_v60, %v1312_v47  ;;  %v1311_v35 = vsel %vm1308_vm4, %v1309_v23, %v1310_v60  ;;  %v1293_v17 = vmul.f32 %v3021_v51, %v4218_v26  ;;  %v1258_v37 = vmul.f32 %v3017_v46, %v4220_v45 }
 0x192   : > { %1318 = vrot.lane.b32.xlu1 %v1313_v48, %s3712_s5  ;;  %1316 = vrot.lane.b32.xlu0 %v1311_v35, %s3712_s5  ;;  %v1256_v39 = vmul.f32 %v3017_v46, %v4216_v25  ;;  %v1257_v55 = vmul.f32 %v3017_v46, %v4218_v26  ;;  %v4257_v7 = vadd.f32 %v3020_v15, %v1276_v9  ;;  %v3027_v46 = vld [vmem:[#allocation10] ss:$0 sm:$0xff]  ;;  %s3730_s5 = smov 2  }
 0x193   : > { %v4259_v1 = vadd.f32 %v3022_v43, %v1294_v54  ;;  %v4261_v2 = vadd.f32 %v3020_v15, %v1274_v30  ;;  %v4263_v50 = vadd.f32 %v3022_v43, %v1292_v53  ;;  %v4277_v10 = vadd.f32 %v3020_v15, %v1275_v12 }
 0x194   : > { %v4279_v16 = vadd.f32 %v3022_v43, %v1293_v17  ;;  %v4281_v61 = vadd.f32 %v3018_v42, %v1258_v37  ;;  %v4283_v20 = vadd.f32 %v3018_v42, %v1256_v39  ;;  %v4292_v0 = vadd.f32 %v3018_v42, %v1257_v55  ;;  %v3028_v17 = vld [vmem:[#allocation16 + $0x2] ss:$0 sm:$0xff]  ;;  %v4349_v39 = vld [vmem:[#allocation21 + $0xf] ss:$0 sm:$0xff]  ;;  %v3025_v55 = vld [vmem:[#allocation16 + $0x1] ss:$0 sm:$0xff] }
 0x195   : > { %v4322_v23 = vmul.f32 %v4273_v5, %v1845_v33  ;;  %v4325_v60 = vmul.f32 %v4275_v49, %v2009_v58  ;;  %v4328_v47 = vmul.f32 %v4290_v4, %v1845_v33  ;;  %v4334_v44 = vmul.f32 %v4304_v22, %v2150_v8  ;;  %4815 = vst [vmem:[#allocation46_spill] sm:$0xff] %v4349_v39 }
 0x196   : > { %1398 = vrot.lane.b32.xlu1 %v1313_v48, %s3714_s23  ;;  %1396 = vrot.lane.b32.xlu0 %v1311_v35, %s3714_s23  ;;  %v4337_v51 = vmul.f32 %v4309_v24, %v2170_v29  ;;  %v4342_v33 = vmul.f32 %v4317_v31, %v1946_v57  ;;  %v4345_v15 = vmul.f32 %v4319_v62, %v2150_v8  ;;  %v3026_v8 = vld [vmem:[#allocation19 + $0x6] ss:$0 sm:$0xff]  ;;  %s3732_s23 = smov 4  }
 0x197   : > { %4808 = vst [vmem:[#allocation39_spill] sm:$0xff] %v4325_v60  ;;  %4809 = vst [vmem:[#allocation40_spill] sm:$0xff] %v4328_v47 }
 0x198   : > { %4811 = vst [vmem:[#allocation42_spill] sm:$0xff] %v4334_v44  ;;  %4812 = vst [vmem:[#allocation43_spill] sm:$0xff] %v4337_v51 }
 0x199   : > { %4813 = vst [vmem:[#allocation44_spill] sm:$0xff] %v4342_v33  ;;  %4814 = vst [vmem:[#allocation45_spill] sm:$0xff] %v4345_v15 }
 0x19a   : > { %1358 = vrot.lane.b32.xlu1 %v1313_v48, %s3715_s20  ;;  %1356 = vrot.lane.b32.xlu0 %v1311_v35, %s3715_s20  ;;  %s3733_s20 = smov 5  }
 0x19e   : > { %1456 = vrot.lane.b32.xlu1 %v1313_v48, %s3716_s19  ;;  %1454 = vrot.lane.b32.xlu0 %v1311_v35, %s3716_s19  ;;  %s4819_s19 = sld [smem:[#allocation56_spill]] }
 0x1a2   : > { %1514 = vrot.lane.b32.xlu1 %v1313_v48, %s3717_s3  ;;  %1512 = vrot.lane.b32.xlu0 %v1311_v35, %s3717_s3  ;;  %s3723_s3 = smov 122  }
 0x1a6   : > { %1572 = vrot.lane.b32.xlu1 %v1313_v48, %s3718_s17  ;;  %1570 = vrot.lane.b32.xlu0 %v1311_v35, %s3718_s17  ;;  %s3724_s17 = smov 123  }
 0x1aa   : > { %1630 = vrot.lane.b32.xlu1 %v1313_v48, %s3719_s16  ;;  %1628 = vrot.lane.b32.xlu0 %v1311_v35, %s3719_s16  ;;  %s3725_s16 = smov 124  }
 0x1ae   : > { %1688 = vrot.lane.b32.xlu1 %v1313_v48, %s3720_s10  ;;  %1686 = vrot.lane.b32.xlu0 %v1311_v35, %s3720_s10  ;;  %s3726_s10 = smov 125  }
 0x1b2   : > { %1746 = vrot.lane.b32.xlu1 %v1313_v48, %s3721_s6  ;;  %1744 = vrot.lane.b32.xlu0 %v1311_v35, %s3721_s6  ;;  %s3727_s6 = smov 126  }
 0x1b6   : > { %1786 = vrot.lane.b32.xlu1 %v1313_v48, %s3711_s4  ;;  %1784 = vrot.lane.b32.xlu0 %v1311_v35, %s3711_s4  ;;  %v4331_v35 = vmul.f32 %v4288_v63, %v1946_v57 }
 0x1b8   : > { %4810 = vst [vmem:[#allocation41_spill] sm:$0xff] %v4331_v35 }
 0x204   : > { %v1319_v14 = vpop.permute.xlu1 %1318  ;;  %v1317_v3 = vpop.permute.xlu0 %1316 }
 0x205   : > { %v1326_v32 = vmul.f32 %v3023_v38, %v1319_v14  ;;  %v1325_v34 = vmul.f32 %v3023_v38, %v1317_v3  ;;  %v1344_v40 = vmul.f32 %v3024_v59, %v1319_v14  ;;  %v1343_v48 = vmul.f32 %v3024_v59, %v1317_v3 }
 0x206   : > { %v4360_v59 = vmul.f32 %v4349_v39, %v2170_v29 }
 0x207   : > { %v1330_v43 = vrot.slane %v1326_v32, 2  ;;  %v1329_v12 = vrot.slane %v1325_v34, 2  ;;  %v1348_v38 = vrot.slane %v1344_v40, 2  ;;  %v1347_v58 = vrot.slane %v1343_v48, 2  ;;  %v3029_v34 = vld [vmem:[#allocation19 + $0x7] ss:$0 sm:$0xff] }
 0x208   : > { %v1399_v9 = vpop.permute.xlu1 %1398  ;;  %v1397_v54 = vpop.permute.xlu0 %1396 }
 0x209   : > { %v1406_v42 = vmul.f32 %v3027_v46, %v1399_v9  ;;  %v1337_v48 = vadd.f32 %v1330_v43, %v4257_v7  ;;  %v1331_v57 = vsel %vm791_vm1, %v1329_v12, %v1330_v43  ;;  %v1405_v14 = vmul.f32 %v3027_v46, %v1397_v54  ;;  %v3030_v43 = vld [vmem:[#allocation10 + $0x1] ss:$0 sm:$0xff]  ;;  %v3031_v46 = vld [vmem:[#allocation16 + $0x3] ss:$0 sm:$0xff] }
 0x20a   : > { %v1355_v3 = vadd.f32 %v1348_v38, %v4259_v1  ;;  %v1335_v32 = vadd.f32 %v1329_v12, %v4261_v2  ;;  %v1424_v27 = vmul.f32 %v3028_v17, %v1399_v9  ;;  %v1349_v45 = vsel %vm791_vm1, %v1347_v58, %v1348_v38 }
 0x20b   : > { %v1442_v40 = vmul.f32 %v3029_v34, %v1399_v9  ;;  %v1336_v29 = vadd.f32 %v1331_v57, %v4277_v10  ;;  %v1410_v15 = vrot.slane %v1406_v42, 2  ;;  %v1423_v33 = vmul.f32 %v3028_v17, %v1397_v54 }
 0x20c   : > { %v1359_v37 = vpop.permute.xlu1 %1358  ;;  %v1357_v53 = vpop.permute.xlu0 %1356  ;;  %v4368_v7 = vmul.f32 %v3029_v34, %v1397_v54  ;;  %v1409_v1 = vrot.slane %v1405_v14, 2  ;;  %v1354_v9 = vadd.f32 %v1349_v45, %v4279_v16 }
 0x20d   : > { %v1366_v30 = vmul.f32 %v3025_v55, %v1359_v37  ;;  %v1384_v26 = vmul.f32 %v3026_v8, %v1359_v37  ;;  %v1365_v21 = vmul.f32 %v3025_v55, %v1357_v53  ;;  %v1383_v12 = vmul.f32 %v3026_v8, %v1357_v53  ;;  %v3032_v55 = vld [vmem:[#allocation19 + $0x8] ss:$0 sm:$0xff] }
 0x20e   : > { %v1353_v37 = vadd.f32 %v1347_v58, %v4263_v50  ;;  %v1446_v10 = vrot.slane %v1442_v40, 2  ;;  %v1417_v57 = vadd.f32 %v1410_v15, %v4281_v61  ;;  %v1427_v34 = vrot.slane %v1423_v33, 2 }
 0x20f   : > { %v1370_v25 = vrot.slane %v1366_v30, 2  ;;  %v1388_v62 = vrot.slane %v1384_v26, 2  ;;  %v1369_v2 = vrot.slane %v1365_v21, 2  ;;  %v1428_v30 = vrot.slane %v1424_v27, 2 }
 0x210   : > { %v1457_v51 = vpop.permute.xlu1 %1456  ;;  %v1455_v39 = vpop.permute.xlu0 %1454  ;;  %v1387_v42 = vrot.slane %v1383_v12, 2  ;;  %v1411_v26 = vsel %vm791_vm1, %v1409_v1, %v1410_v15  ;;  %v1445_v53 = vrot.slane %v4368_v7, 2  ;;  %v1415_v45 = vadd.f32 %v1409_v1, %v4283_v20 }
 0x211   : > { %v1377_v38 = vadd.f32 %v1370_v25, %v1337_v48  ;;  %v1464_v17 = vmul.f32 %v3030_v43, %v1457_v51  ;;  %v1482_v54 = vmul.f32 %v3031_v46, %v1457_v51  ;;  %v1371_v31 = vsel %vm791_vm1, %v1369_v2, %v1370_v25  ;;  %v3033_v25 = vld [vmem:[#allocation10 + $0x2] ss:$0 sm:$0xff] }
 0x212   : > { %v1463_v14 = vmul.f32 %v3030_v43, %v1455_v39  ;;  %v1395_v50 = vadd.f32 %v1388_v62, %v1355_v3  ;;  %v1500_v21 = vmul.f32 %v3032_v55, %v1457_v51  ;;  %v1375_v27 = vadd.f32 %v1369_v2, %v1335_v32  ;;  %v3034_v32 = vld [vmem:[#allocation16 + $0x4] ss:$0 sm:$0xff]  ;;  %v3035_v2 = vld [vmem:[#allocation19 + $0x9] ss:$0 sm:$0xff] }
 0x213   : > { %v1435_v16 = vadd.f32 %v1428_v30, %v1377_v38  ;;  %v1389_v58 = vsel %vm791_vm1, %v1387_v42, %v1388_v62  ;;  %v1376_v48 = vadd.f32 %v1371_v31, %v1336_v29  ;;  %v1468_v61 = vrot.slane %v1464_v17, 2 }
 0x214   : > { %v1515_v8 = vpop.permute.xlu1 %1514  ;;  %v1513_v40 = vpop.permute.xlu0 %1512  ;;  %v1486_v33 = vrot.slane %v1482_v54, 2  ;;  %v1481_v12 = vmul.f32 %v3031_v46, %v1455_v39  ;;  %v1416_v43 = vadd.f32 %v1411_v26, %v4292_v0  ;;  %v1429_v15 = vsel %vm791_vm1, %v1427_v34, %v1428_v30 }
 0x215   : > { %v1467_v7 = vrot.slane %v1463_v14, 2  ;;  %v1499_v3 = vmul.f32 %v3032_v55, %v1455_v39  ;;  %v1453_v51 = vadd.f32 %v1446_v10, %v1395_v50  ;;  %v1393_v44 = vadd.f32 %v1387_v42, %v1353_v37  ;;  %v3036_v55 = vld [vmem:[#allocation10 + $0x4] ss:$0 sm:$0xff] }
 0x216   : > { %v1394_v20 = vadd.f32 %v1389_v58, %v1354_v9  ;;  %v1504_v1 = vrot.slane %v1500_v21, 2  ;;  %v1447_v62 = vsel %vm791_vm1, %v1445_v53, %v1446_v10  ;;  %v1433_v38 = vadd.f32 %v1427_v34, %v1375_v27 }
 0x217   : > { %v1485_v31 = vrot.slane %v1481_v12, 2  ;;  %v1522_v29 = vmul.f32 %v3033_v25, %v1515_v8  ;;  %v1434_v17 = vadd.f32 %v1429_v15, %v1376_v48  ;;  %v1475_v46 = vadd.f32 %v1468_v61, %v1417_v57  ;;  %v3037_v57 = vld [vmem:[#allocation16 + $0x6] ss:$0 sm:$0xff]  ;;  %v3038_v12 = vld [vmem:[#allocation19 + $0xb] ss:$0 sm:$0xff] }
 0x218   : > { %v1493_v54 = vadd.f32 %v1486_v33, %v1435_v16  ;;  %v1521_v35 = vmul.f32 %v3033_v25, %v1513_v40  ;;  %v1469_v0 = vsel %vm791_vm1, %v1467_v7, %v1468_v61  ;;  %v1503_v30 = vrot.slane %v1499_v3, 2  ;;  %v1573_v37 = vpop.permute.xlu1 %1572  ;;  %v1571_v9 = vpop.permute.xlu0 %1570 }
 0x219   : > { %v1540_v14 = vmul.f32 %v3034_v32, %v1515_v8  ;;  %v1558_v39 = vmul.f32 %v3035_v2, %v1515_v8  ;;  %v1451_v42 = vadd.f32 %v1445_v53, %v1393_v44  ;;  %v1452_v26 = vadd.f32 %v1447_v62, %v1394_v20 }
 0x21a   : > { %v1511_v50 = vadd.f32 %v1504_v1, %v1453_v51  ;;  %v1473_v21 = vadd.f32 %v1467_v7, %v1415_v45  ;;  %v1487_v10 = vsel %vm791_vm1, %v1485_v31, %v1486_v33  ;;  %v1526_v34 = vrot.slane %v1522_v29, 2 }
 0x21b   : > { %v1539_v27 = vmul.f32 %v3034_v32, %v1513_v40  ;;  %v1557_v58 = vmul.f32 %v3035_v2, %v1513_v40  ;;  %v1474_v16 = vadd.f32 %v1469_v0, %v1416_v43  ;;  %v1525_v48 = vrot.slane %v1521_v35, 2  ;;  %v3039_v40 = vld [vmem:[#allocation10 + $0x5] ss:$0 sm:$0xff] }
 0x21c   : > { %v1580_v61 = vmul.f32 %v3036_v55, %v1573_v37  ;;  %v1579_v25 = vmul.f32 %v3036_v55, %v1571_v9  ;;  %v1505_v8 = vsel %vm791_vm1, %v1503_v30, %v1504_v1  ;;  %v1544_v15 = vrot.slane %v1540_v14, 2  ;;  %v1631_v2 = vpop.permute.xlu1 %1630  ;;  %v1629_v0 = vpop.permute.xlu0 %1628 }
 0x21d   : > { %v1562_v3 = vrot.slane %v1558_v39, 2  ;;  %v1543_v47 = vrot.slane %v1539_v27, 2  ;;  %v1491_v44 = vadd.f32 %v1485_v31, %v1433_v38  ;;  %v1492_v53 = vadd.f32 %v1487_v10, %v1434_v17  ;;  %v3040_v10 = vld [vmem:[#allocation16 + $0x7] ss:$0 sm:$0xff] }
 0x21e   : > { %v1561_v51 = vrot.slane %v1557_v58, 2  ;;  %v1598_v45 = vmul.f32 %v3037_v57, %v1573_v37  ;;  %v1509_v7 = vadd.f32 %v1503_v30, %v1451_v42  ;;  %v1533_v33 = vadd.f32 %v1526_v34, %v1475_v46 }
 0x21f   : > { %v1616_v20 = vmul.f32 %v3038_v12, %v1573_v37  ;;  %v1597_v32 = vmul.f32 %v3037_v57, %v1571_v9  ;;  %v1510_v43 = vadd.f32 %v1505_v8, %v1452_v26  ;;  %v1527_v35 = vsel %vm791_vm1, %v1525_v48, %v1526_v34  ;;  %v3041_v26 = vld [vmem:[#allocation19 + $0xc] ss:$0 sm:$0xff] }
 0x220   : > { %v1584_v62 = vrot.slane %v1580_v61, 2  ;;  %v1583_v29 = vrot.slane %v1579_v25, 2  ;;  %v1551_v1 = vadd.f32 %v1544_v15, %v1493_v54  ;;  %v1569_v14 = vadd.f32 %v1562_v3, %v1511_v50  ;;  %v3042_v25 = vld [vmem:[#allocation10 + $0x6] ss:$0 sm:$0xff]  ;;  %v1689_v8 = vpop.permute.xlu1 %1688 }
 0x221   : > { %v1531_v39 = vadd.f32 %v1525_v48, %v1473_v21  ;;  %v1545_v38 = vsel %vm791_vm1, %v1543_v47, %v1544_v15  ;;  %v1563_v31 = vsel %vm791_vm1, %v1561_v51, %v1562_v3  ;;  %v1602_v17 = vrot.slane %v1598_v45, 2  ;;  %v3043_v3 = vld [vmem:[#allocation16 + $0x8] ss:$0 sm:$0xff]  ;;  %v1687_v45 = vpop.permute.xlu0 %1686 }
 0x222   : > { %v1615_v30 = vmul.f32 %v3038_v12, %v1571_v9  ;;  %v1638_v46 = vmul.f32 %v3039_v40, %v1631_v2  ;;  %v1532_v55 = vadd.f32 %v1527_v35, %v1474_v16  ;;  %v1620_v37 = vrot.slane %v1616_v20, 2 }
 0x223   : > { %v1601_v42 = vrot.slane %v1597_v32, 2  ;;  %v1637_v27 = vmul.f32 %v3039_v40, %v1629_v0  ;;  %v1549_v34 = vadd.f32 %v1543_v47, %v1491_v44  ;;  %v1550_v58 = vadd.f32 %v1545_v38, %v1492_v53 }
 0x224   : > { %v1567_v57 = vadd.f32 %v1561_v51, %v1509_v7  ;;  %v1585_v54 = vsel %vm791_vm1, %v1583_v29, %v1584_v62  ;;  %v1568_v50 = vadd.f32 %v1563_v31, %v1510_v43  ;;  %v1591_v21 = vadd.f32 %v1584_v62, %v1533_v33 }
 0x225   : > { %v1642_v48 = vrot.slane %v1638_v46, 2  ;;  %v1641_v61 = vrot.slane %v1637_v27, 2  ;;  %v1609_v15 = vadd.f32 %v1602_v17, %v1551_v1  ;;  %v1619_v9 = vrot.slane %v1615_v30, 2  ;;  %v3044_v30 = vld [vmem:[#allocation19 + $0xd] ss:$0 sm:$0xff] }
 0x226   : > { %v1656_v12 = vmul.f32 %v3040_v10, %v1631_v2  ;;  %v1674_v16 = vmul.f32 %v3041_v26, %v1631_v2  ;;  %v1627_v20 = vadd.f32 %v1620_v37, %v1569_v14  ;;  %v1589_v32 = vadd.f32 %v1583_v29, %v1531_v39  ;;  %v4391_v27 = vld [vmem:[#allocation19 + $0xe] ss:$0 sm:$0xff] }
 0x227   : > { %v1590_v40 = vadd.f32 %v1585_v54, %v1532_v55  ;;  %v1603_v47 = vsel %vm791_vm1, %v1601_v42, %v1602_v17  ;;  %v1607_v44 = vadd.f32 %v1601_v42, %v1549_v34  ;;  %v1655_v53 = vmul.f32 %v3040_v10, %v1629_v0  ;;  %v3045_v17 = vld [vmem:[#allocation16 + $0x9] ss:$0 sm:$0xff]  ;;  %v1747_v55 = vpop.permute.xlu1 %1746  ;;  %v3049_v34 = vld [vmem:[#allocation13 + $0x3] ss:$0 sm:$0xff] }
 0x228   : > { %v1673_v51 = vmul.f32 %v3041_v26, %v1629_v0  ;;  %v1696_v7 = vmul.f32 %v3042_v25, %v1689_v8  ;;  %v1643_v33 = vsel %vm791_vm1, %v1641_v61, %v1642_v48  ;;  %v1714_v43 = vmul.f32 %v3043_v3, %v1689_v8 }
 0x229   : > { %v1695_v35 = vmul.f32 %v3042_v25, %v1687_v45  ;;  %v1713_v62 = vmul.f32 %v3043_v3, %v1687_v45  ;;  %v1608_v1 = vadd.f32 %v1603_v47, %v1550_v58  ;;  %v1621_v38 = vsel %vm791_vm1, %v1619_v9, %v1620_v37 }
 0x22a   : > { %v1660_v2 = vrot.slane %v1656_v12, 2  ;;  %v1678_v31 = vrot.slane %v1674_v16, 2  ;;  %v1625_v14 = vadd.f32 %v1619_v9, %v1567_v57  ;;  %v1649_v29 = vadd.f32 %v1642_v48, %v1591_v21 }
 0x22b   : > { %v1647_v39 = vadd.f32 %v1641_v61, %v1589_v32  ;;  %v1700_v46 = vrot.slane %v1696_v7, 2  ;;  %v1648_v42 = vadd.f32 %v1643_v33, %v1590_v40  ;;  %v1659_v0 = vrot.slane %v1655_v53, 2  ;;  %v1745_v32 = vpop.permute.xlu0 %1744  ;;  %v3050_v33 = vld [vmem:[#allocation15] ss:$0 sm:$0xff] }
 0x22c   : > { %v1677_v10 = vrot.slane %v1673_v51, 2  ;;  %v1699_v26 = vrot.slane %v1695_v35, 2  ;;  %v1718_v58 = vrot.slane %v1714_v43, 2  ;;  %v1732_v25 = vmul.f32 %v3044_v30, %v1689_v8  ;;  %v3052_v8 = vld [vmem:[#allocation13 + $0x1] ss:$0 sm:$0xff]  ;;  %v1787_v35 = vpop.permute.xlu1 %1786 }
 0x22d   : > { %v1707_v54 = vadd.f32 %v1700_v46, %v1649_v29  ;;  %v1717_v37 = vrot.slane %v1713_v62, 2  ;;  %v1731_v57 = vmul.f32 %v3044_v30, %v1687_v45  ;;  %v4394_v21 = vmul.f32 %v3045_v17, %v1747_v55 }
 0x22e   : > { %v1701_v12 = vsel %vm791_vm1, %v1699_v26, %v1700_v46  ;;  %v1705_v16 = vadd.f32 %v1699_v26, %v1647_v39  ;;  %v1626_v48 = vadd.f32 %v1621_v38, %v1568_v50  ;;  %v1667_v61 = vadd.f32 %v1660_v2, %v1609_v15  ;;  %v3047_v15 = vld [vmem:[#allocation16 + $0xa] ss:$0 sm:$0xff] }
 0x22f   : > { %1826 = vst [vmem:[#allocation3 + $0x2a] sm:$0x3f] %v1707_v54  ;;  %v1706_v9 = vadd.f32 %v1701_v12, %v1648_v42  ;;  %v4397_v3 = vmul.f32 %v4391_v27, %v1747_v55  ;;  %v1685_v40 = vadd.f32 %v1678_v31, %v1627_v20  ;;  %v1661_v47 = vsel %vm791_vm1, %v1659_v0, %v1660_v2  ;;  %v3054_v12 = vld [vmem:[#allocation13 + $0x4] ss:$0 sm:$0xff] }
 0x230   : > { %v1665_v53 = vadd.f32 %v1659_v0, %v1607_v44  ;;  %1824 = vst [vmem:[#allocation3 + $0x1a] sm:$0xc0] %v1705_v16  ;;  %v1832_v51 = vmul.f32 %v3049_v34, %v1705_v16  ;;  %v1679_v7 = vsel %vm791_vm1, %v1677_v10, %v1678_v31  ;;  %v1683_v45 = vadd.f32 %v1677_v10, %v1625_v14 }
 0x231   : > { %v1736_v43 = vrot.slane %v1732_v25, 2  ;;  %v1834_v50 = vmul.f32 %v3049_v34, %v1707_v54  ;;  %1825 = vst [vmem:[#allocation3 + $0x22] sm:$0xff] %v1706_v9  ;;  %v1719_v62 = vsel %vm791_vm1, %v1717_v37, %v1718_v58  ;;  %v1735_v38 = vrot.slane %v1731_v57, 2  ;;  %v3048_v54 = vld [vmem:[#allocation19 + $0xf] ss:$0 sm:$0xff]  ;;  %v1785_v57 = vpop.permute.xlu0 %1784 }
 0x232   : > { %v1758_v20 = vrot.slane %v4394_v21, 2  ;;  %v1753_v30 = vmul.f32 %v3045_v17, %v1745_v32  ;;  %v1666_v2 = vadd.f32 %v1661_v47, %v1608_v1  ;;  %v1833_v44 = vmul.f32 %v3049_v34, %v1706_v9  ;;  %v3053_v25 = vld [vmem:[#allocation13 + $0x2] ss:$0 sm:$0xff] }
 0x233   : > { %v4403_v29 = vmul.f32 %v3052_v8, %v1706_v9  ;;  %v4752_v39 = vrot.slane %v4397_v3, 2  ;;  %v4406_v31 = vadd.f32 %v1679_v7, %v1626_v48  ;;  %v1725_v14 = vadd.f32 %v1718_v58, %v1667_v61  ;;  %v3055_v48 = vld [vmem:[#allocation13 + $0x5] ss:$0 sm:$0xff] }
 0x234   : > { %v1842_v46 = vadd.f32 %v3050_v33, %v1832_v51  ;;  %v4408_v55 = vmul.f32 %v3047_v15, %v1787_v35  ;;  %v1743_v42 = vadd.f32 %v1736_v43, %v1685_v40  ;;  %v1844_v0 = vadd.f32 %v3050_v33, %v1834_v50 }
 0x235   : > { %v1723_v10 = vadd.f32 %v1717_v37, %v1665_v53  ;;  %v1724_v26 = vadd.f32 %v1719_v62, %v1666_v2  ;;  %v4411_v1 = vsel %vm791_vm1, %v1735_v38, %v1736_v43  ;;  %v1765_v17 = vadd.f32 %v1758_v20, %v1725_v14 }
 0x236   : > { %v1757_v34 = vrot.slane %v1753_v30, 2  ;;  %v1798_v16 = vrot.slane %v4408_v55, 2  ;;  %v1906_v21 = vld [vmem:[#allocation3 + $0x2b] sm:$0xff]  ;;  %v4414_v61 = vadd.f32 %v1735_v38, %v1683_v45  ;;  %v1843_v9 = vadd.f32 %v3050_v33, %v1833_v44 }
 0x237   : > { %v1926_v58 = vld [vmem:[#allocation3 + $0x2e] sm:$0xff]  ;;  %v1865_v40 = vld [vmem:[#allocation3 + $0x1a] sm:$0xff]  ;;  %v1877_v37 = vrot.slane %v4403_v29, 2  ;;  %v1783_v47 = vadd.f32 %v4752_v39, %v1743_v42  ;;  %v4816_v51 = vrot.slane %v4246_v56, 2  ;;  %v4421_v2 = vmul.f32 %v3048_v54, %v1787_v35 }
 0x238   : > { %v1846_v53 = vld [vmem:[#allocation3 + $0x1f] sm:$0xff]  ;;  %v1872_v43 = vmul.f32 %v3052_v8, %v1865_v40  ;;  %v1805_v30 = vadd.f32 %v1798_v16, %v1765_v17  ;;  %v1945_v14 = vld [vmem:[#allocation3 + $0x29] sm:$0xff]  ;;  %v1771_v29 = vmul.f32 %v4391_v27, %v1745_v32  ;;  %v1793_v55 = vmul.f32 %v3047_v15, %v1785_v57 }
 0x239   : > { %v1862_v7 = vadd.f32 %v4816_v51, %v1842_v46  ;;  %v1885_v50 = vld [vmem:[#allocation3 + $0x1d] sm:$0xff]  ;;  %v1886_v62 = vld [vmem:[#allocation3 + $0x25] sm:$0xff]  ;;  %v1853_v45 = vmul.f32 %v4231_v52, %v1846_v53  ;;  %v1759_v60 = vsel %vm791_vm1, %v1757_v34, %v1758_v20  ;;  %v1811_v8 = vmul.f32 %v3048_v54, %v1785_v57 }
 0x23a   : > { %v1892_v38 = vmul.f32 %v3053_v25, %v1885_v50  ;;  %v1905_v33 = vld [vmem:[#allocation3 + $0x23] sm:$0xff]  ;;  %v1876_v42 = vrot.slane %v1872_v43, 2  ;;  %v1893_v39 = vmul.f32 %v3053_v25, %v1886_v62  ;;  %v1913_v46 = vmul.f32 %v3054_v12, %v1906_v21 }
 0x23b   : > { %v1925_v44 = vld [vmem:[#allocation3 + $0x26] sm:$0xff]  ;;  %v1857_v40 = vrot.slane %v1853_v45, 2  ;;  %v1912_v35 = vmul.f32 %v3054_v12, %v1905_v33  ;;  %v1933_v51 = vmul.f32 %v3055_v48, %v1926_v58  ;;  %v1763_v52 = vadd.f32 %v1757_v34, %v1723_v10 }
 0x23c   : > { %1970 = vst [vmem:[#allocation3 + $0x2a] sm:$0x3f] %v1805_v30  ;;  %v1896_v17 = vrot.slane %v1892_v38, 2  ;;  %v1882_v4 = vadd.f32 %v1876_v42, %v1862_v7  ;;  %v1816_v53 = vrot.slane %v4421_v2, 2  ;;  %v4817_v50 = vrot.slane %v4246_v56, 2 }
 0x23d   : > { %v1864_v32 = vadd.f32 %v1857_v40, %v1844_v0  ;;  %v1897_v15 = vrot.slane %v1893_v39, 2  ;;  %v1932_v25 = vmul.f32 %v3055_v48, %v1925_v44  ;;  %v1764_v62 = vadd.f32 %v1759_v60, %v1724_v26  ;;  %v3057_v60 = vld [vmem:[%s4716_s9 + $0x5] ss:$0 sm:$0xff] }
 0x23e   : > { %v1858_v27 = vsel %vm791_vm1, %v4817_v50, %v1857_v40  ;;  %v1902_v20 = vadd.f32 %v1896_v17, %v1882_v4  ;;  %v1775_v54 = vrot.slane %v1771_v29, 2  ;;  %v1917_v57 = vrot.slane %v1913_v46, 2  ;;  %v4457_v46 = vld [vmem:[%s4716_s9 + $0x6] ss:$0 sm:$0xff] }
 0x23f   : > { %v1863_v43 = vadd.f32 %v1858_v27, %v1843_v9  ;;  %v1878_v21 = vsel %vm791_vm1, %v1876_v42, %v1877_v37  ;;  %v1884_v12 = vadd.f32 %v1877_v37, %v1864_v32  ;;  %v1916_v58 = vrot.slane %v1912_v35, 2 }
 0x240   : > { %v1937_v7 = vrot.slane %v1933_v51, 2  ;;  %v1952_v34 = vmul.f32 %v4248_v13, %v1945_v14  ;;  %v1797_v2 = vrot.slane %v1793_v55, 2  ;;  %v1898_v56 = vsel %vm791_vm1, %v1896_v17, %v1897_v15  ;;  %v4440_v13 = vld [vmem:[#allocation21 + $0xa] ss:$0 sm:$0xff] }
 0x241   : > { %v1883_v10 = vadd.f32 %v1878_v21, %v1863_v43  ;;  %v1904_v45 = vadd.f32 %v1897_v15, %v1884_v12  ;;  %v1936_v0 = vrot.slane %v1932_v25, 2  ;;  %v4433_v39 = vadd.f32 %v1816_v53, %v1783_v47 }
 0x242   : > { %v1922_v4 = vadd.f32 %v1916_v58, %v1902_v20  ;;  %v1799_v26 = vsel %vm791_vm1, %v1797_v2, %v1798_v16  ;;  %v1815_v9 = vrot.slane %v1811_v8, 2  ;;  %v1918_v37 = vsel %vm791_vm1, %v1916_v58, %v1917_v57  ;;  %v3058_v16 = vld [vmem:[%s4819_s19] ss:$0 sm:$0xff]  ;;  %v3062_v8 = vld [vmem:[%s4716_s9 + $0x3] ss:$0 sm:$0xff]  ;;  %s3722_s19 = smov 121  }
 0x243   : > { %v1903_v48 = vadd.f32 %v1898_v56, %v1883_v10  ;;  %v1924_v38 = vadd.f32 %v1917_v57, %v1904_v45  ;;  %v1803_v33 = vadd.f32 %v1797_v2, %v1763_v52  ;;  %v1804_v44 = vadd.f32 %v1799_v26, %v1764_v62  ;;  %v2090_v17 = vld [vmem:[#allocation3 + $0x2b] sm:$0xff] }
 0x244   : > { %v1742_v47 = vadd.f32 %v4411_v1, %v4406_v31  ;;  %v4818_v29 = vrot.slane %v4397_v3, 2  ;;  %v1781_v42 = vadd.f32 %v1775_v54, %v4414_v61  ;;  %v1938_v31 = vsel %vm791_vm1, %v1936_v0, %v1937_v7  ;;  %v4463_v61 = vld [vmem:[%s4716_s9 + $0x7] ss:$0 sm:$0xff]  ;;  %v2110_v35 = vld [vmem:[#allocation3 + $0x2e] sm:$0xff] }
 0x245   : > { %v1923_v14 = vadd.f32 %v1918_v37, %v1903_v48  ;;  %v1956_v3 = vrot.slane %v1952_v34, 2  ;;  %v1978_v1 = vmul.f32 %v3057_v60, %v1805_v30  ;;  %1968 = vst [vmem:[#allocation3 + $0x1a] sm:$0xc0] %v1803_v33  ;;  %1969 = vst [vmem:[#allocation3 + $0x22] sm:$0xff] %v1804_v44  ;;  %v1976_v40 = vmul.f32 %v3057_v60, %v1803_v33  ;;  %v4471_v30 = vld [vmem:[%s4820_s30] ss:$0 sm:$0xff] }
 0x246   : > { %v1777_v55 = vsel %vm791_vm1, %v1775_v54, %v4818_v29  ;;  %v1942_v51 = vadd.f32 %v1936_v0, %v1922_v4  ;;  %v2202_v52 = vmul.f32 %v4440_v13, %v4433_v39  ;;  %v1817_v50 = vsel %vm791_vm1, %v1815_v9, %v1816_v53  ;;  %v2149_v20 = vld [vmem:[#allocation3 + $0x2c] sm:$0xff]  ;;  %s3731_s30 = smov 3  }
 0x247   : > { %v1821_v27 = vadd.f32 %v1815_v9, %v1781_v42  ;;  %v1943_v32 = vadd.f32 %v1938_v31, %v1923_v14  ;;  %v1944_v15 = vadd.f32 %v1937_v7, %v1924_v38  ;;  %v1977_v25 = vmul.f32 %v3057_v60, %v1804_v44  ;;  %v2169_v48 = vld [vmem:[#allocation3 + $0x2f] sm:$0xff]  ;;  %v3063_v9 = vld [vmem:[%s4716_s9 + $0x4] ss:$0 sm:$0xff] }
 0x248   : > { %v1986_v43 = vadd.f32 %v3058_v16, %v1976_v40  ;;  %v1782_v62 = vadd.f32 %v1777_v55, %v1742_v47  ;;  %v4473_v54 = vmul.f32 %v3062_v8, %v1804_v44  ;;  %v4476_v57 = vmul.f32 %v4457_v46, %v2090_v17 }
 0x249   : > { %v4479_v21 = vmul.f32 %v4463_v61, %v2110_v35  ;;  %v4821_v53 = vrot.slane %v4296_v11, 2  ;;  %v1988_v58 = vadd.f32 %v3058_v16, %v1978_v1  ;;  %v2405_v7 = vrot.slane %v4360_v59, 2 }
 0x24a   : > { %v4822_v10 = vrot.slane %v4299_v18, 2  ;;  %v4487_v2 = vadd.f32 %v1956_v3, %v1942_v51  ;;  %v4490_v56 = vadd.f32 %v4471_v30, %v2202_v52  ;;  %v1822_v45 = vadd.f32 %v1817_v50, %v1782_v62 }
 0x24b   : > { %v1958_v12 = vsel %vm791_vm1, %v1956_v3, %v4821_v53  ;;  %v4493_v0 = vmul.f32 %v4304_v22, %v2149_v20  ;;  %v4823_v60 = vmov %v4821_v53  ;;  %v1987_v37 = vadd.f32 %v3058_v16, %v1977_v25 }
 0x24c   : > { %v2006_v34 = vadd.f32 %v4822_v10, %v1986_v43  ;;  %v4495_v4 = vadd.f32 %v1958_v12, %v1943_v32  ;;  %v4499_v26 = vadd.f32 %v4823_v60, %v1944_v15  ;;  %v2200_v38 = vmul.f32 %v4440_v13, %v1821_v27  ;;  %v1990_v33 = vld [vmem:[#allocation3 + $0x19] sm:$0xff]  ;;  %v2070_v40 = vld [vmem:[#allocation3 + $0x25] sm:$0xff] }
 0x24d   : > { %v2010_v44 = vld [vmem:[#allocation3 + $0x1c] sm:$0xff]  ;;  %v4824_v47 = vrot.slane %v4312_v36, 2  ;;  %v2061_v29 = vrot.slane %v4473_v54, 2  ;;  %v2101_v55 = vrot.slane %v4476_v57, 2  ;;  %v2121_v11 = vrot.slane %v4479_v21, 2  ;;  %v2109_v32 = vld [vmem:[#allocation3 + $0x26] sm:$0xff] }
 0x24e   : > { %v2030_v14 = vld [vmem:[#allocation3 + $0x1f] sm:$0xff]  ;;  %v1997_v42 = vmul.f32 %v4253_v41, %v1990_v33  ;;  %v2017_v31 = vmul.f32 %v4268_v19, %v2010_v44  ;;  %v4514_v17 = vmul.f32 %v4309_v24, %v2169_v48  ;;  %v2077_v52 = vmul.f32 %v3063_v9, %v2070_v40  ;;  %v2129_v15 = vld [vmem:[#allocation3 + $0x29] sm:$0xff]  ;;  %v3074_v24 = vld [vmem:[#allocation21 + $0x8] ss:$0 sm:$0xff] }
 0x24f   : > { %v2026_v22 = vadd.f32 %v4824_v47, %v2006_v34  ;;  %v2037_v16 = vmul.f32 %v4273_v5, %v2030_v14  ;;  %v2049_v3 = vld [vmem:[#allocation3 + $0x1a] sm:$0xff]  ;;  %v2089_v50 = vld [vmem:[#allocation3 + $0x23] sm:$0xff]  ;;  %v2160_v25 = vrot.slane %v4493_v0, 2  ;;  %v2201_v19 = vmul.f32 %v4440_v13, %v1822_v45 }
 0x250   : > { %v2069_v1 = vld [vmem:[#allocation3 + $0x1d] sm:$0xff]  ;;  %v2056_v35 = vmul.f32 %v3062_v8, %v2049_v3  ;;  %v2001_v41 = vrot.slane %v1997_v42, 2  ;;  %v2021_v43 = vrot.slane %v2017_v31, 2  ;;  %2194 = vst [vmem:[#allocation3 + $0x2a] sm:$0x3f] %v4433_v39  ;;  %v2210_v5 = vadd.f32 %v4471_v30, %v2200_v38 }
 0x251   : > { %v2076_v51 = vmul.f32 %v3063_v9, %v2069_v1  ;;  %2192 = vst [vmem:[#allocation3 + $0x1a] sm:$0xc0] %v1821_v27  ;;  %2193 = vst [vmem:[#allocation3 + $0x22] sm:$0xff] %v1822_v45  ;;  %v2041_v20 = vrot.slane %v2037_v16, 2  ;;  %v4825_v8 = vrot.slane %v4322_v23, 2  ;;  %v2096_v53 = vmul.f32 %v4457_v46, %v2089_v50 }
 0x252   : > { %v2060_v54 = vrot.slane %v2056_v35, 2  ;;  %v4826_v12 = vmov %v4822_v10  ;;  %v2008_v10 = vadd.f32 %v2001_v41, %v1988_v58  ;;  %v2081_v48 = vrot.slane %v2077_v52, 2 }
 0x253   : > { %v2046_v62 = vadd.f32 %v4825_v8, %v2026_v22  ;;  %v2002_v27 = vsel %vm791_vm1, %v4826_v12, %v2001_v41  ;;  %v2080_v34 = vrot.slane %v2076_v51, 2  ;;  %v2116_v13 = vmul.f32 %v4463_v61, %v2109_v32  ;;  %v4830_v41 = vld [vmem:[#allocation36_spill] sm:$0xff] }
 0x254   : > { %v2007_v39 = vadd.f32 %v2002_v27, %v1987_v37  ;;  %v2180_v9 = vrot.slane %v4514_v17, 2  ;;  %v4827_v38 = vmov %v4824_v47  ;;  %v2028_v44 = vadd.f32 %v2021_v43, %v2008_v10 }
 0x255   : > { %v2066_v60 = vadd.f32 %v2060_v54, %v2046_v62  ;;  %v2022_v33 = vsel %vm791_vm1, %v4827_v38, %v2021_v43  ;;  %v2211_v46 = vadd.f32 %v4471_v30, %v2201_v19  ;;  %v4532_v47 = vmul.f32 %v3074_v24, %v1822_v45 }
 0x256   : > { %v2027_v18 = vadd.f32 %v2022_v33, %v2007_v39  ;;  %v4828_v58 = vmov %v4825_v8  ;;  %v2100_v14 = vrot.slane %v2096_v53, 2  ;;  %v2048_v42 = vadd.f32 %v2041_v20, %v2028_v44 }
 0x257   : > { %v2042_v22 = vsel %vm791_vm1, %v4828_v58, %v2041_v20  ;;  %v2086_v37 = vadd.f32 %v2080_v34, %v2066_v60  ;;  %v2062_v61 = vsel %vm791_vm1, %v2060_v54, %v2061_v29  ;;  %v2082_v31 = vsel %vm791_vm1, %v2080_v34, %v2081_v48 }
 0x258   : > { %v2214_v36 = vld [vmem:[#allocation3 + $0x19] sm:$0xff]  ;;  %v4829_v16 = vrot.slane %v4315_v28, 2  ;;  %v2047_v1 = vadd.f32 %v2042_v22, %v2027_v18  ;;  %v2120_v30 = vrot.slane %v2116_v13, 2  ;;  %v2136_v45 = vmul.f32 %v4288_v63, %v2129_v15  ;;  %v2294_v60 = vld [vmem:[#allocation3 + $0x25] sm:$0xff]  ;;  %v4835_v22 = vld [vmem:[#allocation40_spill] sm:$0xff] }
 0x259   : > { %v2221_v40 = vmul.f32 %v4255_v6, %v2214_v36  ;;  %v2234_v23 = vld [vmem:[#allocation3 + $0x1c] sm:$0xff]  ;;  %v2068_v52 = vadd.f32 %v2061_v29, %v2048_v42  ;;  %v2106_v50 = vadd.f32 %v2100_v14, %v2086_v37  ;;  %v2285_v8 = vrot.slane %v4532_v47, 2  ;;  %v4831_v6 = vld [vmem:[#allocation39_spill] sm:$0xff]  ;;  %v3075_v29 = vld [vmem:[#allocation21 + $0x9] ss:$0 sm:$0xff] }
 0x25a   : > { %v2230_v3 = vadd.f32 %v4829_v16, %v2210_v5  ;;  %v2254_v35 = vld [vmem:[#allocation3 + $0x1f] sm:$0xff]  ;;  %v2241_v32 = vmul.f32 %v4275_v49, %v2234_v23  ;;  %v2067_v19 = vadd.f32 %v2062_v61, %v2047_v1  ;;  %v2102_v5 = vsel %vm791_vm1, %v2100_v14, %v2101_v55  ;;  %v3076_v61 = vld [vmem:[#allocation21 + $0xb] ss:$0 sm:$0xff]  ;;  %v2314_v23 = vld [vmem:[#allocation3 + $0x2b] sm:$0xff] }
 0x25b   : > { %v2273_v51 = vld [vmem:[#allocation3 + $0x1a] sm:$0xff]  ;;  %v2261_v43 = vmul.f32 %v4830_v41, %v2254_v35  ;;  %v2225_v20 = vrot.slane %v2221_v40, 2  ;;  %v2088_v63 = vadd.f32 %v2081_v48, %v2068_v52  ;;  %v4832_v62 = vrot.slane %v4831_v6, 2 }
 0x25c   : > { %v2245_v15 = vrot.slane %v2241_v32, 2  ;;  %v2280_v53 = vmul.f32 %v3074_v24, %v2273_v51  ;;  %v2087_v12 = vadd.f32 %v2082_v31, %v2067_v19  ;;  %v4833_v49 = vmov %v4829_v16  ;;  %v2293_v39 = vld [vmem:[#allocation3 + $0x1d] sm:$0xff]  ;;  %v3077_v35 = vld [vmem:[#allocation21 + $0xc] ss:$0 sm:$0xff]  ;;  %v2333_v32 = vld [vmem:[#allocation3 + $0x26] sm:$0xff] }
 0x25d   : > { %v2250_v54 = vadd.f32 %v4832_v62, %v2230_v3  ;;  %v2226_v27 = vsel %vm791_vm1, %v4833_v49, %v2225_v20  ;;  %v2232_v10 = vadd.f32 %v2225_v20, %v4490_v56  ;;  %v2265_v34 = vrot.slane %v2261_v43, 2  ;;  %v2313_v16 = vld [vmem:[#allocation3 + $0x23] sm:$0xff]  ;;  %v4838_v51 = vld [vmem:[#allocation41_spill] sm:$0xff]  ;;  %v2334_v20 = vld [vmem:[#allocation3 + $0x2e] sm:$0xff] }
 0x25e   : > { %v2108_v13 = vadd.f32 %v2101_v55, %v2088_v63  ;;  %v2126_v48 = vadd.f32 %v2120_v30, %v2106_v50  ;;  %v2140_v38 = vrot.slane %v2136_v45, 2  ;;  %v2231_v33 = vadd.f32 %v2226_v27, %v2211_v46  ;;  %v2353_v63 = vld [vmem:[#allocation3 + $0x29] sm:$0xff] }
 0x25f   : > { %v2107_v44 = vadd.f32 %v2102_v5, %v2087_v12  ;;  %v4834_v24 = vmov %v4832_v62  ;;  %v2252_v18 = vadd.f32 %v2245_v15, %v2232_v10  ;;  %v2284_v28 = vrot.slane %v2280_v53, 2  ;;  %v4841_v10 = vld [vmem:[#allocation42_spill] sm:$0xff] }
 0x260   : > { %v2246_v47 = vsel %vm791_vm1, %v4834_v24, %v2245_v15  ;;  %v4836_v37 = vrot.slane %v4835_v22, 2  ;;  %v2300_v14 = vmul.f32 %v3075_v29, %v2293_v39  ;;  %v2301_v42 = vmul.f32 %v3075_v29, %v2294_v60  ;;  %v2373_v29 = vld [vmem:[#allocation3 + $0x2c] sm:$0xff] }
 0x261   : > { %v2251_v58 = vadd.f32 %v2246_v47, %v2231_v33  ;;  %v2122_v57 = vsel %vm791_vm1, %v2120_v30, %v2121_v11  ;;  %v2128_v55 = vadd.f32 %v2121_v11, %v2108_v13  ;;  %v2272_v36 = vadd.f32 %v2265_v34, %v2252_v18  ;;  %v4844_v47 = vld [vmem:[#allocation38_spill] sm:$0xff] }
 0x262   : > { %v2270_v56 = vadd.f32 %v4836_v37, %v2250_v54  ;;  %v4837_v46 = vmov %v4836_v37  ;;  %v2127_v3 = vadd.f32 %v2122_v57, %v2107_v44  ;;  %v2304_v40 = vrot.slane %v2300_v14, 2 }
 0x263   : > { %v2266_v31 = vsel %vm791_vm1, %v4837_v46, %v2265_v34  ;;  %v4839_v52 = vrot.slane %v4838_v51, 2  ;;  %v2286_v30 = vsel %vm791_vm1, %v2284_v28, %v2285_v8  ;;  %v2292_v21 = vadd.f32 %v2285_v8, %v2272_v36 }
 0x264   : > { %v2271_v1 = vadd.f32 %v2266_v31, %v2251_v58  ;;  %v2290_v45 = vadd.f32 %v2284_v28, %v2270_v56  ;;  %v2305_v11 = vrot.slane %v2301_v42, 2  ;;  %v2146_v41 = vadd.f32 %v2140_v38, %v2126_v48  ;;  %v4843_v48 = vld [vmem:[#allocation37_spill] sm:$0xff]  ;;  %v2393_v28 = vld [vmem:[#allocation3 + $0x2f] sm:$0xff]  ;;  %v4846_v31 = vld [vmem:[#allocation46_spill] sm:$0xff] }
 0x265   : > { %v2142_v50 = vsel %vm791_vm1, %v2140_v38, %v4839_v52  ;;  %v2320_v5 = vmul.f32 %v3076_v61, %v2313_v16  ;;  %v4840_v15 = vmov %v4839_v52  ;;  %v2321_v53 = vmul.f32 %v3076_v61, %v2314_v23  ;;  %v4847_v16 = vld [vmem:[#allocation43_spill] sm:$0xff]  ;;  %v4850_v52 = vld [vmem:[#allocation44_spill] sm:$0xff] }
 0x266   : > { %v2291_v43 = vadd.f32 %v2286_v30, %v2271_v1  ;;  %v2310_v19 = vadd.f32 %v2304_v40, %v2290_v45  ;;  %v2148_v6 = vadd.f32 %v4840_v15, %v2128_v55  ;;  %v2306_v62 = vsel %vm791_vm1, %v2304_v40, %v2305_v11 }
 0x267   : > { %v2312_v54 = vadd.f32 %v2305_v11, %v2292_v21  ;;  %v2147_v12 = vadd.f32 %v2142_v50, %v2127_v3  ;;  %v2324_v27 = vrot.slane %v2320_v5, 2  ;;  %v2340_v8 = vmul.f32 %v3077_v35, %v2333_v32 }
 0x268   : > { %v2311_v49 = vadd.f32 %v2306_v62, %v2291_v43  ;;  %v4842_v34 = vrot.slane %v4841_v10, 2  ;;  %v2325_v60 = vrot.slane %v2321_v53, 2  ;;  %v2341_v13 = vmul.f32 %v3077_v35, %v2334_v20  ;;  %v4858_v53 = vld [vmem:[#allocation34_spill] sm:$0xff] }
 0x269   : > { %v2360_v38 = vmul.f32 %v4843_v48, %v2353_v63  ;;  %v2166_v33 = vadd.f32 %v2160_v25, %v2146_v41  ;;  %v2330_v44 = vadd.f32 %v2324_v27, %v2310_v19  ;;  %v2344_v24 = vrot.slane %v2340_v8, 2  ;;  %v4853_v41 = vld [vmem:[#allocation33_spill] sm:$0xff] }
 0x26a   : > { %v2162_v39 = vsel %vm791_vm1, %v2160_v25, %v4842_v34  ;;  %v2380_v18 = vmul.f32 %v4844_v47, %v2373_v29  ;;  %v4845_v58 = vmov %v4842_v34  ;;  %v2326_v37 = vsel %vm791_vm1, %v2324_v27, %v2325_v60  ;;  %v4855_v63 = vld [vmem:[#allocation45_spill] sm:$0xff] }
 0x26b   : > { %v2168_v22 = vadd.f32 %v4845_v58, %v2148_v6  ;;  %v2332_v56 = vadd.f32 %v2325_v60, %v2312_v54  ;;  %v2345_v14 = vrot.slane %v2341_v13, 2  ;;  %v2167_v42 = vadd.f32 %v2162_v39, %v2147_v12 }
 0x26c   : > { %v2331_v61 = vadd.f32 %v2326_v37, %v2311_v49  ;;  %v2350_v57 = vadd.f32 %v2344_v24, %v2330_v44  ;;  %v2364_v55 = vrot.slane %v2360_v38, 2  ;;  %v2384_v25 = vrot.slane %v2380_v18, 2 }
 0x26d   : > { %v2346_v46 = vsel %vm791_vm1, %v2344_v24, %v2345_v14  ;;  %v2352_v0 = vadd.f32 %v2345_v14, %v2332_v56  ;;  %v2400_v36 = vmul.f32 %v4846_v31, %v2393_v28  ;;  %v4848_v3 = vrot.slane %v4847_v16, 2  ;;  %v3083_v14 = vld [vmem:[#allocation22] ss:$0 sm:$0xff] }
 0x26e   : > { %v2186_v45 = vadd.f32 %v2180_v9, %v2166_v33  ;;  %v2351_v40 = vadd.f32 %v2346_v46, %v2331_v61  ;;  %v2370_v23 = vadd.f32 %v2364_v55, %v2350_v57  ;;  %v4851_v50 = vrot.slane %v4850_v52, 2  ;;  %v3086_v52 = vld [vmem:[#allocation22 + $0x3] ss:$0 sm:$0xff] }
 0x26f   : > { %v2182_v1 = vsel %vm791_vm1, %v2180_v9, %v4848_v3  ;;  %v4849_v35 = vmov %v4848_v3  ;;  %v2404_v32 = vrot.slane %v2400_v36, 2  ;;  %v1965_v43 = vadd.f32 %v4487_v2, %v4853_v41  ;;  %v4854_v9 = vld [vmem:[#allocation35_spill] sm:$0xff] }
 0x270   : > { %v2188_v51 = vadd.f32 %v4849_v35, %v2168_v22  ;;  %v2366_v30 = vsel %vm791_vm1, %v2364_v55, %v4851_v50  ;;  %v4852_v21 = vmov %v4851_v50  ;;  %v2187_v19 = vadd.f32 %v2182_v1, %v2167_v42  ;;  %v3084_v42 = vld [vmem:[#allocation22 + $0x1] ss:$0 sm:$0xff]  ;;  %v3081_v55 = vld [vmem:[#allocation22 + $0x7] ss:$0 sm:$0xff] }
 0x271   : > { %v2372_v11 = vadd.f32 %v4852_v21, %v2352_v0  ;;  %v2371_v5 = vadd.f32 %v2366_v30, %v2351_v40  ;;  %v2390_v17 = vadd.f32 %v2384_v25, %v2370_v23  ;;  %v1967_v20 = vadd.f32 %v4499_v26, %v4854_v9 }
 0x272   : > { %v4856_v15 = vrot.slane %v4855_v63, 2  ;;  %v1966_v29 = vadd.f32 %v4495_v4, %v4858_v53  ;;  %v2189_v12 = vadd.f32 %v2186_v45, %v1965_v43  ;;  %v2406_v8 = vsel %vm791_vm1, %v2404_v32, %v2405_v7 }
 0x273   : > { %v2410_v27 = vadd.f32 %v2404_v32, %v2390_v17  ;;  %v2191_v2 = vadd.f32 %v2188_v51, %v1967_v20  ;;  %v3087_v32 = vld [vmem:[#allocation22 + $0x4] ss:$0 sm:$0xff] }
 0x274   : > { %v2386_v6 = vsel %vm791_vm1, %v2384_v25, %v4856_v15  ;;  %v4857_v62 = vmov %v4856_v15  ;;  %v2190_v10 = vadd.f32 %v2187_v19, %v1966_v29  ;;  %v3085_v25 = vld [vmem:[#allocation22 + $0x2] ss:$0 sm:$0xff] }
 0x275   : > { %v2392_v54 = vadd.f32 %v4857_v62, %v2372_v11  ;;  %v2391_v49 = vadd.f32 %v2386_v6, %v2371_v5  ;;  %v4621_v39 = vadd.f32 %v2410_v27, %v2189_v12  ;;  %v3088_v5 = vld [vmem:[#allocation22 + $0x5] ss:$0 sm:$0xff]  ;;  %v3089_v12 = vld [vmem:[#allocation22 + $0x6] ss:$0 sm:$0xff] }
 0x277   : > { %v2412_v26 = vadd.f32 %v2405_v7, %v2392_v54  ;;  %v2411_v34 = vadd.f32 %v2406_v8, %v2391_v49  ;;  %v2437_v48 = vrot.slane %v4621_v39, 6  ;;  %v2421_v3 = vmul.f32 %v3081_v55, %v4621_v39 }
 0x279   : > { %v4623_v60 = vadd.f32 %v2412_v26, %v2191_v2  ;;  %v4625_v13 = vadd.f32 %v2411_v34, %v2190_v10 }
 0x27b   : > { %v2440_v4 = vrot.slane %v4623_v60, 6  ;;  %v2438_v38 = vrot.slane %v4625_v13, 6  ;;  %v2423_v16 = vmul.f32 %v3081_v55, %v4623_v60  ;;  %v2422_v30 = vmul.f32 %v3081_v55, %v4625_v13 }
 0x27d   : > { %v2439_v33 = vsel %vm1308_vm4, %v2437_v48, %v2438_v38  ;;  %v2441_v44 = vsel %vm1308_vm4, %v2438_v38, %v2440_v4 }
 0x27e   : > { %2446 = vrot.lane.b32.xlu1 %v2441_v44, %s3722_s19  ;;  %2444 = vrot.lane.b32.xlu0 %v2439_v33, %s3722_s19  ;;  %s3734_s19 = smov 6  }
 0x282   : > { %2468 = vrot.lane.b32.xlu1 %v2441_v44, %s3723_s3  ;;  %2466 = vrot.lane.b32.xlu0 %v2439_v33, %s3723_s3  ;;  %s3735_s3 = smov 7  }
 0x286   : > { %2490 = vrot.lane.b32.xlu1 %v2441_v44, %s3724_s17  ;;  %2488 = vrot.lane.b32.xlu0 %v2439_v33, %s3724_s17 }
 0x28a   : > { %2512 = vrot.lane.b32.xlu1 %v2441_v44, %s3725_s16  ;;  %2510 = vrot.lane.b32.xlu0 %v2439_v33, %s3725_s16 }
 0x28e   : > { %2534 = vrot.lane.b32.xlu1 %v2441_v44, %s3726_s10  ;;  %2532 = vrot.lane.b32.xlu0 %v2439_v33, %s3726_s10  ;;  %s4859_s10 = sld [smem:[#allocation58_spill]] }
 0x292   : > { %2556 = vrot.lane.b32.xlu1 %v2441_v44, %s3727_s6  ;;  %2554 = vrot.lane.b32.xlu0 %v2439_v33, %s3727_s6 }
 0x294   : > { %v3082_v50 = vld [vmem:[%s4859_s10] ss:$0 sm:$0xff] }
 0x295   : > { %v2433_v41 = vadd.f32 %v3082_v50, %v2423_v16  ;;  %v2431_v20 = vadd.f32 %v3082_v50, %v2421_v3  ;;  %v2432_v54 = vadd.f32 %v3082_v50, %v2422_v30 }
 0x296   : > { %2578 = vrot.lane.b32.xlu1 %v2441_v44, %s3728_s14  ;;  %2576 = vrot.lane.b32.xlu0 %v2439_v33, %s3728_s14  ;;  %s3103_s14 = sshll.u32 %s3849_s0, 8  ;;  %s3736_s0 = smov [#allocation24]  }
 0x29a   : > { %2600 = vrot.lane.b32.xlu1 %v2441_v44, %s3729_s2  ;;  %2598 = vrot.lane.b32.xlu0 %v2439_v33, %s3729_s2 }
 0x29e   : > { %2622 = vrot.lane.b32.xlu1 %v2441_v44, %s3730_s5  ;;  %2620 = vrot.lane.b32.xlu0 %v2439_v33, %s3730_s5  ;;  %s4860_s5 = sld [smem:[#allocation59_spill]] }
 0x2a2   : > { %2644 = vrot.lane.b32.xlu1 %v2441_v44, %s3731_s30  ;;  %2642 = vrot.lane.b32.xlu0 %v2439_v33, %s3731_s30 }
 0x2a4   : > { %s4663_s30 = scalar_lea.hbm %s4860_s5, %s3103_s14 }
 0x2a6   : > { %2666 = vrot.lane.b32.xlu1 %v2441_v44, %s3732_s23  ;;  %2664 = vrot.lane.b32.xlu0 %v2439_v33, %s3732_s23  ;;  %s2769_s23 = scalar_lea.sflag [#allocation6], %s4043_s7 }
 0x2aa   : > { %2688 = vrot.lane.b32.xlu1 %v2441_v44, %s3733_s20  ;;  %2686 = vrot.lane.b32.xlu0 %v2439_v33, %s3733_s20 }
 0x2ae   : > { %2710 = vrot.lane.b32.xlu1 %v2441_v44, %s3734_s19  ;;  %2708 = vrot.lane.b32.xlu0 %v2439_v33, %s3734_s19  ;;  %s3609_s19 = sshll.u32 %s3736_s0, 4  ;;  %s3610_s19 = int_to_ptr.vmem [resolvable:$false] %s3609_s19 }
 0x2b2   : > { %2732 = vrot.lane.b32.xlu1 %v2441_v44, %s3735_s3  ;;  %2730 = vrot.lane.b32.xlu0 %v2439_v33, %s3735_s3  ;;  %v3090_v44 = vld [vmem:[#allocation22 + $0x8] ss:$0 sm:$0xff]  ;;  %s3611_s3 = scalar_lea.vmem %s3610_s19, 512 }
 0x2f0   : > { %v2447_v59 = vpop.permute.xlu1 %2446  ;;  %v2445_v7 = vpop.permute.xlu0 %2444 }
 0x2f1   : > { %v2454_v46 = vmul.f32 %v3083_v14, %v2447_v59  ;;  %v2453_v0 = vmul.f32 %v3083_v14, %v2445_v7 }
 0x2f3   : > { %v2458_v40 = vrot.slane %v2454_v46, 2  ;;  %v2457_v23 = vrot.slane %v2453_v0, 2 }
 0x2f4   : > { %v2469_v24 = vpop.permute.xlu1 %2468  ;;  %v2467_v47 = vpop.permute.xlu0 %2466 }
 0x2f5   : > { %v2476_v31 = vmul.f32 %v3084_v42, %v2469_v24  ;;  %v2475_v36 = vmul.f32 %v3084_v42, %v2467_v47  ;;  %v2459_v63 = vsel %vm791_vm1, %v2457_v23, %v2458_v40  ;;  %v2465_v62 = vadd.f32 %v2458_v40, %v2433_v41 }
 0x2f6   : > { %v2463_v49 = vadd.f32 %v2457_v23, %v2431_v20  ;;  %v2464_v26 = vadd.f32 %v2459_v63, %v2432_v54  ;;  %v3094_v63 = vld [vmem:[#allocation22 + $0xc] ss:$0 sm:$0xff] }
 0x2f7   : > { %v2480_v21 = vrot.slane %v2476_v31, 2  ;;  %v2479_v11 = vrot.slane %v2475_v36, 2  ;;  %v3092_v31 = vld [vmem:[#allocation22 + $0xa] ss:$0 sm:$0xff] }
 0x2f8   : > { %v2491_v18 = vpop.permute.xlu1 %2490  ;;  %v2489_v28 = vpop.permute.xlu0 %2488 }
 0x2f9   : > { %v2498_v35 = vmul.f32 %v3085_v25, %v2491_v18  ;;  %v2497_v51 = vmul.f32 %v3085_v25, %v2489_v28  ;;  %v2481_v27 = vsel %vm791_vm1, %v2479_v11, %v2480_v21  ;;  %v2487_v10 = vadd.f32 %v2480_v21, %v2465_v62 }
 0x2fa   : > { %v2485_v4 = vadd.f32 %v2479_v11, %v2463_v49  ;;  %v2486_v59 = vadd.f32 %v2481_v27, %v2464_v26 }
 0x2fb   : > { %v2502_v15 = vrot.slane %v2498_v35, 2  ;;  %v2501_v6 = vrot.slane %v2497_v51, 2  ;;  %v3093_v35 = vld [vmem:[#allocation22 + $0xb] ss:$0 sm:$0xff] }
 0x2fc   : > { %v2513_v58 = vpop.permute.xlu1 %2512  ;;  %v2511_v22 = vpop.permute.xlu0 %2510 }
 0x2fd   : > { %v2520_v43 = vmul.f32 %v3086_v52, %v2513_v58  ;;  %v2519_v19 = vmul.f32 %v3086_v52, %v2511_v22  ;;  %v2503_v48 = vsel %vm791_vm1, %v2501_v6, %v2502_v15  ;;  %v2509_v47 = vadd.f32 %v2502_v15, %v2487_v10  ;;  %v3091_v22 = vld [vmem:[#allocation22 + $0x9] ss:$0 sm:$0xff] }
 0x2fe   : > { %v2507_v18 = vadd.f32 %v2501_v6, %v2485_v4 }
 0x2ff   : > { %v2524_v34 = vrot.slane %v2520_v43, 2  ;;  %v2523_v39 = vrot.slane %v2519_v19, 2 }
 0x300   : > { %v2535_v37 = vpop.permute.xlu1 %2534  ;;  %v2533_v56 = vpop.permute.xlu0 %2532 }
 0x301   : > { %v2542_v53 = vmul.f32 %v3087_v32, %v2535_v37  ;;  %v2541_v29 = vmul.f32 %v3087_v32, %v2533_v56  ;;  %v2508_v37 = vadd.f32 %v2503_v48, %v2486_v59  ;;  %v2525_v56 = vsel %vm791_vm1, %v2523_v39, %v2524_v34 }
 0x302   : > { %v2531_v55 = vadd.f32 %v2524_v34, %v2509_v47  ;;  %v2529_v46 = vadd.f32 %v2523_v39, %v2507_v18 }
 0x303   : > { %v2546_v7 = vrot.slane %v2542_v53, 2  ;;  %v2545_v24 = vrot.slane %v2541_v29, 2 }
 0x304   : > { %v2557_v61 = vpop.permute.xlu1 %2556  ;;  %v2555_v57 = vpop.permute.xlu0 %2554 }
 0x305   : > { %v2564_v2 = vmul.f32 %v3088_v5, %v2557_v61  ;;  %v2563_v8 = vmul.f32 %v3088_v5, %v2555_v57  ;;  %v2547_v36 = vsel %vm791_vm1, %v2545_v24, %v2546_v7  ;;  %v2551_v40 = vadd.f32 %v2545_v24, %v2529_v46  ;;  %v2752_v46 = vld [vmem:[%s4049_s1] sm:$0xff] }
 0x307   : > { %v2568_v28 = vrot.slane %v2564_v2, 2  ;;  %v2567_v58 = vrot.slane %v2563_v8, 2 }
 0x308   : > { %v2579_v1 = vpop.permute.xlu1 %2578  ;;  %v2577_v45 = vpop.permute.xlu0 %2576 }
 0x309   : > { %v2586_v38 = vmul.f32 %v3089_v12, %v2579_v1  ;;  %v2585_v33 = vmul.f32 %v3089_v12, %v2577_v45  ;;  %v2530_v1 = vadd.f32 %v2525_v56, %v2508_v37  ;;  %v2553_v45 = vadd.f32 %v2546_v7, %v2531_v55  ;;  %v3096_v56 = vld [vmem:[#allocation22 + $0xe] ss:$0 sm:$0xff] }
 0x30a   : > { %v2569_v23 = vsel %vm791_vm1, %v2567_v58, %v2568_v28  ;;  %v2573_v43 = vadd.f32 %v2567_v58, %v2551_v40 }
 0x30b   : > { %v2590_v0 = vrot.slane %v2586_v38, 2  ;;  %v2589_v25 = vrot.slane %v2585_v33, 2  ;;  %v2552_v32 = vadd.f32 %v2547_v36, %v2530_v1  ;;  %v2575_v41 = vadd.f32 %v2568_v28, %v2553_v45 }
 0x30c   : > { %v2601_v17 = vpop.permute.xlu1 %2600  ;;  %v2599_v9 = vpop.permute.xlu0 %2598 }
 0x30d   : > { %v2608_v14 = vmul.f32 %v3090_v44, %v2601_v17  ;;  %v2607_v42 = vmul.f32 %v3090_v44, %v2599_v9  ;;  %v2591_v19 = vsel %vm791_vm1, %v2589_v25, %v2590_v0  ;;  %v2574_v15 = vadd.f32 %v2569_v23, %v2552_v32 }
 0x30e   : > { %v2597_v6 = vadd.f32 %v2590_v0, %v2575_v41  ;;  %v2595_v62 = vadd.f32 %v2589_v25, %v2573_v43 }
 0x30f   : > { %v2612_v51 = vrot.slane %v2608_v14, 2  ;;  %v2611_v52 = vrot.slane %v2607_v42, 2  ;;  %v2596_v27 = vadd.f32 %v2591_v19, %v2574_v15  ;;  %v2753_v14 = vld [vmem:[%s4049_s1 + $0x8] sm:$0xff]  ;;  %s714_s1 = scalar_lea.vmem [#allocation24], %s2978_s8 }
 0x310   : > { %v2623_v60 = vpop.permute.xlu1 %2622  ;;  %v2621_v13 = vpop.permute.xlu0 %2620  ;;  %v2757_v1 = vrot.slane %v2753_v14, 2  ;;  %s2782_s6 = sshll.u32 %s714_s1, 4  ;;  %s4658_s6 = int_to_ptr.vmem [resolvable:$true] %s2782_s6 }
 0x311   : > { %v2630_v16 = vmul.f32 %v3091_v22, %v2623_v60  ;;  %v2629_v3 = vmul.f32 %v3091_v22, %v2621_v13  ;;  %v2613_v54 = vsel %vm791_vm1, %v2611_v52, %v2612_v51  ;;  %v2619_v2 = vadd.f32 %v2612_v51, %v2597_v6  ;;  %v3095_v13 = vld [vmem:[#allocation22 + $0xd] ss:$0 sm:$0xff]  ;;  %s3605_s20 = scalar_lea.vmem %s4658_s6, 256  ;;  %p3612_p0 = scmp.lt.s32.totalorder %s4658_s6, %s3610_s19 }
 0x312   : > { %v2617_v8 = vadd.f32 %v2611_v52, %v2595_v62  ;;  %v2618_v4 = vadd.f32 %v2613_v54, %v2596_v27  ;;  %p3606_p4 = scmp.ne.s32.totalorder %s4658_s6, %s3605_s20  ;;  %p3613_p13 = scmp.lt.s32.totalorder %s3611_s3, %s3605_s20 }
 0x313   : > { %v2634_v5 = vrot.slane %v2630_v16, 2  ;;  %v2633_v17 = vrot.slane %v2629_v3, 2 }
 0x314   : > { %v2645_v61 = vpop.permute.xlu1 %2644  ;;  %v2643_v57 = vpop.permute.xlu0 %2642  ;;  %p3607_p11 = pnand %p3606_p4, %p4861_p3  ;;  %p3614_p5 = por %p3613_p13, %p3612_p0 }
 0x315   : > { %v2652_v50 = vmul.f32 %v3092_v31, %v2645_v61  ;;  %v2651_v30 = vmul.f32 %v3092_v31, %v2643_v57  ;;  %v2635_v10 = vsel %vm791_vm1, %v2633_v17, %v2634_v5  ;;  %v2641_v48 = vadd.f32 %v2634_v5, %v2619_v2 }
 0x316   : > { %v2639_v38 = vadd.f32 %v2633_v17, %v2617_v8  ;;  %v2640_v47 = vadd.f32 %v2635_v10, %v2618_v4  ;;  %p3608_p6 = pneg %p3607_p11 }
 0x317   : > { %v2656_v53 = vrot.slane %v2652_v50, 2  ;;  %v2655_v29 = vrot.slane %v2651_v30, 2 }
 0x318   : > { %v2667_v21 = vpop.permute.xlu1 %2666  ;;  %v2665_v11 = vpop.permute.xlu0 %2664  ;;  %p3615_p9 = pnand %p3614_p5, %p3608_p6 }
 0x319   : > { %v2674_v9 = vmul.f32 %v3093_v35, %v2667_v21  ;;  %v2673_v20 = vmul.f32 %v3093_v35, %v2665_v11  ;;  %v2657_v33 = vsel %vm791_vm1, %v2655_v29, %v2656_v53  ;;  %v2663_v18 = vadd.f32 %v2656_v53, %v2641_v48 }
 0x31a   : > { %v2661_v22 = vadd.f32 %v2655_v29, %v2639_v38  ;;  %v2662_v42 = vadd.f32 %v2657_v33, %v2640_v47  ;;  %v2756_v35 = vrot.slane %v2752_v46, 2 }
 0x31b   : > { %v2678_v34 = vrot.slane %v2674_v9, 2  ;;  %v2677_v39 = vrot.slane %v2673_v20, 2 }
 0x31c   : > { %v2689_v12 = vpop.permute.xlu1 %2688  ;;  %v2687_v49 = vpop.permute.xlu0 %2686  ;;  %v2758_v43 = vsel %vm791_vm1, %v2756_v35, %v2757_v1 }
 0x31d   : > { %v2696_v26 = vmul.f32 %v3094_v63, %v2689_v12  ;;  %v2695_v60 = vmul.f32 %v3094_v63, %v2687_v49  ;;  %v2679_v37 = vsel %vm791_vm1, %v2677_v39, %v2678_v34  ;;  %v2685_v61 = vadd.f32 %v2678_v34, %v2663_v18 }
 0x31e   : > { %v2683_v0 = vadd.f32 %v2677_v39, %v2661_v22  ;;  %v2684_v16 = vadd.f32 %v2679_v37, %v2662_v42 }
 0x31f   : > { %v2700_v44 = vrot.slane %v2696_v26, 2  ;;  %v2699_v59 = vrot.slane %v2695_v60, 2 }
 0x320   : > { %v2711_v7 = vpop.permute.xlu1 %2710  ;;  %v2709_v24 = vpop.permute.xlu0 %2708 }
 0x321   : > { %v2718_v28 = vmul.f32 %v3095_v13, %v2711_v7  ;;  %v2717_v58 = vmul.f32 %v3095_v13, %v2709_v24  ;;  %v2701_v25 = vsel %vm791_vm1, %v2699_v59, %v2700_v44  ;;  %v2707_v3 = vadd.f32 %v2700_v44, %v2685_v61 }
 0x322   : > { %v2705_v40 = vadd.f32 %v2699_v59, %v2683_v0  ;;  %v2706_v52 = vadd.f32 %v2701_v25, %v2684_v16 }
 0x323   : > { %v2722_v57 = vrot.slane %v2718_v28, 2  ;;  %v2721_v55 = vrot.slane %v2717_v58, 2 }
 0x324   : > { %v2733_v31 = vpop.permute.xlu1 %2732  ;;  %v2731_v36 = vpop.permute.xlu0 %2730 }
 0x325   : > { %v2740_v45 = vmul.f32 %v3096_v56, %v2733_v31  ;;  %v2723_v23 = vsel %vm791_vm1, %v2721_v55, %v2722_v57  ;;  %v2739_v51 = vmul.f32 %v3096_v56, %v2731_v36  ;;  %v2729_v50 = vadd.f32 %v2722_v57, %v2707_v3 }
 0x326   : > { %v2727_v21 = vadd.f32 %v2721_v55, %v2705_v40  ;;  %v2728_v32 = vadd.f32 %v2723_v23, %v2706_v52 }
 0x327   : > { %v2744_v30 = vrot.slane %v2740_v45, 2  ;;  %v2743_v11 = vrot.slane %v2739_v51, 2 }
 0x329   : > { %v2751_v41 = vadd.f32 %v2744_v30, %v2729_v50  ;;  %v2745_v19 = vsel %vm791_vm1, %v2743_v11, %v2744_v30  ;;  %v2749_v5 = vadd.f32 %v2743_v11, %v2727_v21 }
 0x32a   : > { %v2750_v9 = vadd.f32 %v2745_v19, %v2728_v32 }
 0x32b   : > { %v2764_v17 = vmul.f32 %v2757_v1, %v2751_v41  ;;  %v2762_v20 = vmul.f32 %v2756_v35, %v2749_v5 }
 0x32c   : > { %v2763_v63 = vmul.f32 %v2758_v43, %v2750_v9 }
 0x32d   : > { %2767 = vst [vmem:[%s714_s1 + $0xa] sm:$0x3f] %v2764_v17  ;;  %2765 = vst [vmem:[%s714_s1 - $0x6] sm:$0xc0] %v2762_v20 }
 0x32e   : > { %2766 = vst [vmem:[%s714_s1 + $0x2] sm:$0xff] %v2763_v63 }
 0x32f   : > { %3618 = shalt.err (!%p3615_p9)
}
 0x330   : > { %s3619_s17 = scalar_lea.hbm %s4663_s30, 256  ;;  %s3623_s1 = scalar_lea.hbm %s4860_s5, 512 }
 0x331   : > { %p3620_p10 = scmp.ne.s32.totalorder %s4663_s30, %s3619_s17  ;;  %p3624_p12 = scmp.lt.s32.totalorder %s4663_s30, %s4860_s5 }
 0x332   : > { %p3625_p7 = scmp.lt.s32.totalorder %s3623_s1, %s3619_s17 }
 0x333   : > { %p3621_p8 = pnand %p3620_p10, %p4861_p3 }
 0x334   : > { %p3626_p2 = por %p3625_p7, %p3624_p12 }
 0x335   : > { %p3622_p1 = pneg %p3621_p8 }
 0x337   : > { %p3627_p4 = pnand %p3626_p2, %p3622_p1 }
 0x339   : > { %3630 = shalt.err (!%p3627_p4)
}
 0x33a   : > { %s3737_s2 = smov 128  }
 0x33b   : > { %3150 = dma.vmem_to_hbm [thread:$0]  (%p4861_p3), %s4658_s6, 256, %s4663_s30, %s2769_s23, %s3737_s2, %s3737_s2, %s3711_s4  }
 0x33c PF: > { %s2797_s20 = sand.u32 1, %s3681_s24   ;;  %p4862_p11 = scmp.ne.s32.totalorder %s4784_s28, 0 }
 0x33d   : > { %p4863_p6 = scmp.ge.s32.totalorder %s3693_s27, 2  ;;  %s2798_s0 = scalar_lea.sflag [#allocation6], %s2797_s20 }
 0x33f   : > { %p3191_p0 = pnand %p4863_p6, %p4862_p11 }
 0x341   : > { %p3192_p13 = pneg %p3191_p0 }
 0x343   : > { %3676 = dma.done.wait (%p3192_p13), %s2798_s0, 256  }
 0x344   : > { %3678 = vsyncadd (%p3192_p13), %s2798_s0, 4294967040  ;;  %p36_p5 = scmp.ge.s32.totalorder %s3974_s22, 4   ;;  %s4864_s24 = smov %s3685_s25 }
 0x345   : > { %s4865_s25 = smov %s3689_s26  ;;  %s4866_s26 = smov %s3986_s21 }
 0x346   : > { %s4867_s27 = smov %s3974_s22  ;;  %38 = sbr.rel (!%p36_p5) target bundleno = 25 (0x19), region = 177 }
 0x34b   :  { %2803 = vsyncpa [#allocation5], 1 }
 0x34c   :  { %2805 = vsyncpa [#allocation5 + $0x1], 1 }
 0x34d   :  { %2806 = vsyncpa [#allocation8], 1 }
 0x34e   :  { %2807 = vsyncpa [#allocation11], 1 }
 0x34f   :  { %2808 = vsyncpa [#allocation14], 1 }
 0x350   :  { %2809 = vsyncpa [#allocation17], 1 }
 0x351   :  { %2810 = vsyncpa [#allocation20], 1 }
 0x352   :  { %2811 = vsyncpa [#allocation23], 1 }
 0x353   :  { %2812 = vsyncpa [#allocation6], 1 }
 0x354   :  { %2814 = vsyncpa [#allocation6 + $0x1], 1 }

</bundles_post_ra>
